<compile_context>
chip_gen: v7x
topology: tpu7x:2x2x1
jax: 0.10.0
libtpu: 0.0.40
codegen_flags: <defaults>
</compile_context>

<pallas_src>
import numpy as np
import jax
import jax.numpy as jnp
from jax.experimental import pallas as pl
from jax.experimental.pallas import tpu as pltpu

# ---- model dimensions (consistent with the module's defaults) ----------------
N_AGENTS = 8       # num_agents
NODE_DIM = 4       # node_dim
EDGE_DIM = 1       # edge_dim
HIDDEN_DIM = 64    # hidden_dim (encoder / decoder hidden)
LATENT_DIM = 16    # latent_dim
ODE_HIDDEN = 32    # hidden width inside GNNODEFunc
OUTPUT_DIM = 4     # decoder output_dim
T_STEPS = 8        # len(t_span)

# ---- packed-parameter layout: each param at a sublane-aligned row offset -----
_PARAM_DEFS = (
    ("we1", NODE_DIM, HIDDEN_DIM), ("be1", 1, HIDDEN_DIM),
    ("we2", HIDDEN_DIM, HIDDEN_DIM), ("be2", 1, HIDDEN_DIM),
    ("we3", HIDDEN_DIM, LATENT_DIM), ("be3", 1, LATENT_DIM),
    ("wo1", LATENT_DIM, ODE_HIDDEN), ("bo1", 1, ODE_HIDDEN),
    ("wo2", ODE_HIDDEN, LATENT_DIM), ("bo2", 1, LATENT_DIM),
    ("wd1", LATENT_DIM, HIDDEN_DIM), ("bd1", 1, HIDDEN_DIM),
    ("wd2", HIDDEN_DIM, OUTPUT_DIM), ("bd2", 1, OUTPUT_DIM),
)
PBUF_COLS = 128
PARAM_SLOTS = {}
_row = 0
for _name, _r, _c in _PARAM_DEFS:
    PARAM_SLOTS[_name] = (_row, _r, _c)
    _row += -(-_r // 8) * 8           # round rows up to a sublane multiple (8)
PBUF_ROWS = _row                       # = 320 -> 320*128*4B = 160 KiB, one DMA


# --------------------------- fused Pallas kernel ------------------------------
def make_treat_kernel(dts):
    """dts: tuple of Python floats (len T-1), baked as immediates into the unroll."""
    bf16 = jnp.bfloat16
    f32 = jnp.float32

    def kernel(x_ref, adjI_ref, p_ref, out_ref):
        def pslice(name):                       # static slice of the packed buffer
            off, r, c = PARAM_SLOTS[name]
            return p_ref[off:off + r, 0:c]

        def wbf(name):                          # bf16 MXU-operand view of a weight
            return pslice(name).astype(bf16)

        adjI = adjI_ref[...].astype(bf16)       # residual already folded: adj + I

        # ---------------- encoder (SpatialTemporalGNN) ----------------
        x = x_ref[...].astype(bf16)
        h1 = jnp.maximum(
            jnp.dot(x, wbf("we1"), preferred_element_type=f32) + pslice("be1"), 0.0)
        msg = jnp.dot(adjI, h1.astype(bf16), preferred_element_type=f32)   # h1 + adj@h1
        h2 = jnp.maximum(
            jnp.dot(msg.astype(bf16), wbf("we2"), preferred_element_type=f32)
            + pslice("be2"), 0.0)
        z = (jnp.dot(h2.astype(bf16), wbf("we3"), preferred_element_type=f32)
             + pslice("be3"))                                               # (N, LATENT) f32

        # ---------------- ODE rollout: unrolled fixed-step RK4 ----------------
        wo1 = wbf("wo1")
        wo2 = wbf("wo2")
        # hoisted bias broadcasts (JAX does not CSE broadcast_in_dim inside the loop)
        bo1 = jnp.broadcast_to(pslice("bo1"), (N_AGENTS, ODE_HIDDEN))
        bo2 = jnp.broadcast_to(pslice("bo2"), (N_AGENTS, LATENT_DIM))

        def f(zz):                              # dz/dt; state f32, dot operands bf16
            m = jnp.dot(adjI, zz.astype(bf16), preferred_element_type=f32)  # zz + adj@zz
            hh = jnp.tanh(jnp.dot(m.astype(bf16), wo1, preferred_element_type=f32) + bo1)
            return jnp.dot(hh.astype(bf16), wo2, preferred_element_type=f32) + bo2

        zs = [z]
        for dt in dts:                          # static unroll, dt is a Python float
            k1 = f(z)
            k2 = f(z + (0.5 * dt) * k1)
            k3 = f(z + (0.5 * dt) * k2)
            k4 = f(z + dt * k3)
            z = z + (dt / 6.0) * (k1 + 2.0 * k2 + 2.0 * k3 + k4)   # f32 accumulation
            zs.append(z)
        z_all = jnp.concatenate(zs, axis=0)     # (T*N, LATENT), vreg-resident

        # ---------------- decoder, batched over all T time points ----------------
        rows = z_all.shape[0]
        bd1 = jnp.broadcast_to(pslice("bd1"), (rows, HIDDEN_DIM))
        bd2 = jnp.broadcast_to(pslice("bd2"), (rows, OUTPUT_DIM))
        hd = jnp.maximum(
            jnp.dot(z_all.astype(bf16), wbf("wd1"), preferred_element_type=f32) + bd1,
            0.0)
        out_ref[...] = (
            jnp.dot(hd.astype(bf16), wbf("wd2"), preferred_element_type=f32) + bd2)

    return kernel


# --------------------------- wrappers -----------------------------------------
def pack_params(params):
    """Pack all weights/biases into ONE contiguous f32 VMEM buffer (built once)."""
    enc, ode, dec = params
    named = dict(zip([n for n, _, _ in _PARAM_DEFS], [*enc, *ode, *dec]))
    buf = np.zeros((PBUF_ROWS, PBUF_COLS), np.float32)
    for name, (off, r, c) in PARAM_SLOTS.items():
        buf[off:off + r, :c] = np.asarray(jax.device_get(named[name]), np.float32)
    return jnp.asarray(buf)


def build_adjacency_plus_identity(edge_indices, edge_features, num_agents):
    # Sparse (src, dst) edge list -> dense adjacency with the residual identity
    # folded in: adjI[dst, src] = edge_weight, adjI[i, i] += 1.
    src = edge_indices[:, 0]
    dst = edge_indices[:, 1]
    adj = jnp.zeros((num_agents, num_agents), jnp.float32)
    adj = adj.at[dst, src].add(edge_features[:, 0])
    return adj + jnp.eye(num_agents, dtype=jnp.float32)


def multi_agent_treat_forward(node_features, edge_indices, t_span, packed_params,
                              edge_features=None):
    if edge_features is None:
        edge_features = jnp.ones((edge_indices.shape[0], EDGE_DIM), jnp.float32)

    adjI = build_adjacency_plus_identity(edge_indices, edge_features, N_AGENTS)

    # t_span is concrete at build time -> bake RK4 step sizes as immediates.
    t_np = np.asarray(jax.device_get(t_span), dtype=np.float32)
    dts = tuple(float(d) for d in (t_np[1:] - t_np[:-1]))
    T = int(t_np.shape[0])

    vmem = pl.BlockSpec(memory_space=pltpu.MemorySpace.VMEM)
    out_flat = pl.pallas_call(
        make_treat_kernel(dts),
        out_shape=jax.ShapeDtypeStruct((T * N_AGENTS, OUTPUT_DIM), jnp.float32),
        in_specs=[vmem, vmem, vmem],            # x, adjI, packed params -> 3 DMAs total
        out_specs=vmem,
    )(node_features, adjI, packed_params)

    return out_flat.reshape(T, N_AGENTS, OUTPUT_DIM)


# --------------------------- deterministic params -----------------------------
def init_params(key):
    def dense(k, fan_in, fan_out):
        scale = 1.0 / jnp.sqrt(jnp.float32(fan_in))
        w = jax.random.uniform(k, (fan_in, fan_out), jnp.float32, -scale, scale)
        b = jnp.zeros((1, fan_out), jnp.float32)
        return w, b

    ks = jax.random.split(key, 7)
    enc = (*dense(ks[0], NODE_DIM, HIDDEN_DIM),
           *dense(ks[1], HIDDEN_DIM, HIDDEN_DIM),
           *dense(ks[2], HIDDEN_DIM, LATENT_DIM))
    ode = (*dense(ks[3], LATENT_DIM, ODE_HIDDEN),
           *dense(ks[4], ODE_HIDDEN, LATENT_DIM))
    dec = (*dense(ks[5], LATENT_DIM, HIDDEN_DIM),
           *dense(ks[6], HIDDEN_DIM, OUTPUT_DIM))
    return enc, ode, dec


# ------------------------------- main -----------------------------------------
if __name__ == "__main__":
    key = jax.random.PRNGKey(0)
    k_x, k_p = jax.random.split(key)

    node_features = jax.random.normal(k_x, (N_AGENTS, NODE_DIM), jnp.float32)

    # bidirectional ring graph over the agents
    idx = jnp.arange(N_AGENTS)
    edge_indices = jnp.concatenate(
        [jnp.stack([idx, (idx + 1) % N_AGENTS], axis=1),
         jnp.stack([(idx + 1) % N_AGENTS, idx], axis=1)], axis=0).astype(jnp.int32)

    t_span = jnp.linspace(0.0, 1.0, T_STEPS).astype(jnp.float32)

    params = init_params(k_p)
    packed = pack_params(params)                # built once, reused across calls

    traj = multi_agent_treat_forward(node_features, edge_indices, t_span, packed)
    traj = jax.block_until_ready(traj)

    assert traj.shape == (T_STEPS, N_AGENTS, OUTPUT_DIM)
    assert traj.dtype == jnp.float32
    assert bool(jnp.all(jnp.isfinite(traj)))
    print("KERNEL_OK")
</pallas_src>

<mosaic_0001>
module attributes {stable_mosaic.version = 11 : i64} {
  func.func @kernel(%arg0: memref<8x4xf32, #tpu.memory_space<vmem>>, %arg1: memref<8x8xf32, #tpu.memory_space<vmem>>, %arg2: memref<320x128xf32, #tpu.memory_space<vmem>>, %arg3: memref<64x4xf32, #tpu.memory_space<vmem>>) attributes {dimension_semantics = [], scalar_prefetch = 0 : i64, scratch_operands = 0 : i64, tpu.core_type = #tpu.core_type<tc>} {
    %c0 = arith.constant 0 : index
    %c0_0 = arith.constant 0 : index
    %0 = vector.load %arg1[%c0, %c0_0] : memref<8x8xf32, #tpu.memory_space<vmem>>, vector<8x8xf32>
    %1 = arith.truncf %0 : vector<8x8xf32> to vector<8x8xbf16>
    %c0_1 = arith.constant 0 : index
    %c0_2 = arith.constant 0 : index
    %2 = vector.load %arg0[%c0_1, %c0_2] : memref<8x4xf32, #tpu.memory_space<vmem>>, vector<8x4xf32>
    %3 = arith.truncf %2 : vector<8x4xf32> to vector<8x4xbf16>
    %c0_3 = arith.constant 0 : index
    %c0_4 = arith.constant 0 : index
    %4 = vector.load %arg2[%c0_3, %c0_4] : memref<320x128xf32, #tpu.memory_space<vmem>>, vector<4x64xf32>
    %5 = arith.truncf %4 : vector<4x64xf32> to vector<4x64xbf16>
    %cst = arith.constant dense<0.000000e+00> : vector<8x64xf32>
    %6 = tpu.matmul %3, %5, %cst {dimension_numbers = #tpu.dot_dimension_numbers<[1], [0], [0], [1], [0, 0, 1, 1], [], []>} : vector<8x4xbf16>, vector<4x64xbf16>, vector<8x64xf32> -> vector<8x64xf32>
    %c8 = arith.constant 8 : index
    %c0_5 = arith.constant 0 : index
    %7 = vector.load %arg2[%c8, %c0_5] : memref<320x128xf32, #tpu.memory_space<vmem>>, vector<1x64xf32>
    %8 = vector.broadcast %7 : vector<1x64xf32> to vector<8x64xf32>
    %9 = arith.addf %6, %8 : vector<8x64xf32>
    %cst_6 = arith.constant 0.000000e+00 : f32
    %10 = vector.broadcast %cst_6 : f32 to vector<8x64xf32>
    %11 = arith.maximumf %9, %10 : vector<8x64xf32>
    %12 = arith.truncf %11 : vector<8x64xf32> to vector<8x64xbf16>
    %cst_7 = arith.constant dense<0.000000e+00> : vector<8x64xf32>
    %13 = tpu.matmul %1, %12, %cst_7 {dimension_numbers = #tpu.dot_dimension_numbers<[1], [0], [0], [1], [0, 0, 1, 1], [], []>} : vector<8x8xbf16>, vector<8x64xbf16>, vector<8x64xf32> -> vector<8x64xf32>
    %14 = arith.truncf %13 : vector<8x64xf32> to vector<8x64xbf16>
    %c16 = arith.constant 16 : index
    %c0_8 = arith.constant 0 : index
    %15 = vector.load %arg2[%c16, %c0_8] : memref<320x128xf32, #tpu.memory_space<vmem>>, vector<64x64xf32>
    %16 = arith.truncf %15 : vector<64x64xf32> to vector<64x64xbf16>
    %cst_9 = arith.constant dense<0.000000e+00> : vector<8x64xf32>
    %17 = tpu.matmul %14, %16, %cst_9 {dimension_numbers = #tpu.dot_dimension_numbers<[1], [0], [0], [1], [0, 0, 1, 1], [], []>} : vector<8x64xbf16>, vector<64x64xbf16>, vector<8x64xf32> -> vector<8x64xf32>
    %c80 = arith.constant 80 : index
    %c0_10 = arith.constant 0 : index
    %18 = vector.load %arg2[%c80, %c0_10] : memref<320x128xf32, #tpu.memory_space<vmem>>, vector<1x64xf32>
    %19 = vector.broadcast %18 : vector<1x64xf32> to vector<8x64xf32>
    %20 = arith.addf %17, %19 : vector<8x64xf32>
    %cst_11 = arith.constant 0.000000e+00 : f32
    %21 = vector.broadcast %cst_11 : f32 to vector<8x64xf32>
    %22 = arith.maximumf %20, %21 : vector<8x64xf32>
    %23 = arith.truncf %22 : vector<8x64xf32> to vector<8x64xbf16>
    %c88 = arith.constant 88 : index
    %c0_12 = arith.constant 0 : index
    %24 = vector.load %arg2[%c88, %c0_12] : memref<320x128xf32, #tpu.memory_space<vmem>>, vector<64x16xf32>
    %25 = arith.truncf %24 : vector<64x16xf32> to vector<64x16xbf16>
    %cst_13 = arith.constant dense<0.000000e+00> : vector<8x16xf32>
    %26 = tpu.matmul %23, %25, %cst_13 {dimension_numbers = #tpu.dot_dimension_numbers<[1], [0], [0], [1], [0, 0, 1, 1], [], []>} : vector<8x64xbf16>, vector<64x16xbf16>, vector<8x16xf32> -> vector<8x16xf32>
    %c152 = arith.constant 152 : index
    %c0_14 = arith.constant 0 : index
    %27 = vector.load %arg2[%c152, %c0_14] : memref<320x128xf32, #tpu.memory_space<vmem>>, vector<1x16xf32>
    %28 = vector.broadcast %27 : vector<1x16xf32> to vector<8x16xf32>
    %29 = arith.addf %26, %28 : vector<8x16xf32>
    %c160 = arith.constant 160 : index
    %c0_15 = arith.constant 0 : index
    %30 = vector.load %arg2[%c160, %c0_15] : memref<320x128xf32, #tpu.memory_space<vmem>>, vector<16x32xf32>
    %31 = arith.truncf %30 : vector<16x32xf32> to vector<16x32xbf16>
    %c184 = arith.constant 184 : index
    %c0_16 = arith.constant 0 : index
    %32 = vector.load %arg2[%c184, %c0_16] : memref<320x128xf32, #tpu.memory_space<vmem>>, vector<32x16xf32>
    %33 = arith.truncf %32 : vector<32x16xf32> to vector<32x16xbf16>
    %c176 = arith.constant 176 : index
    %c0_17 = arith.constant 0 : index
    %34 = vector.load %arg2[%c176, %c0_17] : memref<320x128xf32, #tpu.memory_space<vmem>>, vector<1x32xf32>
    %35 = vector.shape_cast %34 : vector<1x32xf32> to vector<1x32xf32>
    %36 = vector.broadcast %35 : vector<1x32xf32> to vector<8x32xf32>
    %c216 = arith.constant 216 : index
    %c0_18 = arith.constant 0 : index
    %37 = vector.load %arg2[%c216, %c0_18] : memref<320x128xf32, #tpu.memory_space<vmem>>, vector<1x16xf32>
    %38 = vector.shape_cast %37 : vector<1x16xf32> to vector<1x16xf32>
    %39 = vector.broadcast %38 : vector<1x16xf32> to vector<8x16xf32>
    %40 = arith.truncf %29 : vector<8x16xf32> to vector<8x16xbf16>
    %cst_19 = arith.constant dense<0.000000e+00> : vector<8x16xf32>
    %41 = tpu.matmul %1, %40, %cst_19 {dimension_numbers = #tpu.dot_dimension_numbers<[1], [0], [0], [1], [0, 0, 1, 1], [], []>} : vector<8x8xbf16>, vector<8x16xbf16>, vector<8x16xf32> -> vector<8x16xf32>
    %42 = arith.truncf %41 : vector<8x16xf32> to vector<8x16xbf16>
    %cst_20 = arith.constant dense<0.000000e+00> : vector<8x32xf32>
    %43 = tpu.matmul %42, %31, %cst_20 {dimension_numbers = #tpu.dot_dimension_numbers<[1], [0], [0], [1], [0, 0, 1, 1], [], []>} : vector<8x16xbf16>, vector<16x32xbf16>, vector<8x32xf32> -> vector<8x32xf32>
    %44 = arith.addf %43, %36 : vector<8x32xf32>
    %45 = math.tanh %44 : vector<8x32xf32>
    %46 = arith.truncf %45 : vector<8x32xf32> to vector<8x32xbf16>
    %cst_21 = arith.constant dense<0.000000e+00> : vector<8x16xf32>
    %47 = tpu.matmul %46, %33, %cst_21 {dimension_numbers = #tpu.dot_dimension_numbers<[1], [0], [0], [1], [0, 0, 1, 1], [], []>} : vector<8x32xbf16>, vector<32x16xbf16>, vector<8x16xf32> -> vector<8x16xf32>
    %48 = arith.addf %47, %39 : vector<8x16xf32>
    %cst_22 = arith.constant 0.0714285746 : f32
    %49 = vector.broadcast %cst_22 : f32 to vector<8x16xf32>
    %50 = arith.mulf %49, %48 : vector<8x16xf32>
    %51 = arith.addf %29, %50 : vector<8x16xf32>
    %52 = arith.truncf %51 : vector<8x16xf32> to vector<8x16xbf16>
    %cst_23 = arith.constant dense<0.000000e+00> : vector<8x16xf32>
    %53 = tpu.matmul %1, %52, %cst_23 {dimension_numbers = #tpu.dot_dimension_numbers<[1], [0], [0], [1], [0, 0, 1, 1], [], []>} : vector<8x8xbf16>, vector<8x16xbf16>, vector<8x16xf32> -> vector<8x16xf32>
    %54 = arith.truncf %53 : vector<8x16xf32> to vector<8x16xbf16>
    %cst_24 = arith.constant dense<0.000000e+00> : vector<8x32xf32>
    %55 = tpu.matmul %54, %31, %cst_24 {dimension_numbers = #tpu.dot_dimension_numbers<[1], [0], [0], [1], [0, 0, 1, 1], [], []>} : vector<8x16xbf16>, vector<16x32xbf16>, vector<8x32xf32> -> vector<8x32xf32>
    %56 = arith.addf %55, %36 : vector<8x32xf32>
    %57 = math.tanh %56 : vector<8x32xf32>
    %58 = arith.truncf %57 : vector<8x32xf32> to vector<8x32xbf16>
    %cst_25 = arith.constant dense<0.000000e+00> : vector<8x16xf32>
    %59 = tpu.matmul %58, %33, %cst_25 {dimension_numbers = #tpu.dot_dimension_numbers<[1], [0], [0], [1], [0, 0, 1, 1], [], []>} : vector<8x32xbf16>, vector<32x16xbf16>, vector<8x16xf32> -> vector<8x16xf32>
    %60 = arith.addf %59, %39 : vector<8x16xf32>
    %cst_26 = arith.constant 0.0714285746 : f32
    %61 = vector.broadcast %cst_26 : f32 to vector<8x16xf32>
    %62 = arith.mulf %61, %60 : vector<8x16xf32>
    %63 = arith.addf %29, %62 : vector<8x16xf32>
    %64 = arith.truncf %63 : vector<8x16xf32> to vector<8x16xbf16>
    %cst_27 = arith.constant dense<0.000000e+00> : vector<8x16xf32>
    %65 = tpu.matmul %1, %64, %cst_27 {dimension_numbers = #tpu.dot_dimension_numbers<[1], [0], [0], [1], [0, 0, 1, 1], [], []>} : vector<8x8xbf16>, vector<8x16xbf16>, vector<8x16xf32> -> vector<8x16xf32>
    %66 = arith.truncf %65 : vector<8x16xf32> to vector<8x16xbf16>
    %cst_28 = arith.constant dense<0.000000e+00> : vector<8x32xf32>
    %67 = tpu.matmul %66, %31, %cst_28 {dimension_numbers = #tpu.dot_dimension_numbers<[1], [0], [0], [1], [0, 0, 1, 1], [], []>} : vector<8x16xbf16>, vector<16x32xbf16>, vector<8x32xf32> -> vector<8x32xf32>
    %68 = arith.addf %67, %36 : vector<8x32xf32>
    %69 = math.tanh %68 : vector<8x32xf32>
    %70 = arith.truncf %69 : vector<8x32xf32> to vector<8x32xbf16>
    %cst_29 = arith.constant dense<0.000000e+00> : vector<8x16xf32>
    %71 = tpu.matmul %70, %33, %cst_29 {dimension_numbers = #tpu.dot_dimension_numbers<[1], [0], [0], [1], [0, 0, 1, 1], [], []>} : vector<8x32xbf16>, vector<32x16xbf16>, vector<8x16xf32> -> vector<8x16xf32>
    %72 = arith.addf %71, %39 : vector<8x16xf32>
    %cst_30 = arith.constant 0.142857149 : f32
    %73 = vector.broadcast %cst_30 : f32 to vector<8x16xf32>
    %74 = arith.mulf %73, %72 : vector<8x16xf32>
    %75 = arith.addf %29, %74 : vector<8x16xf32>
    %76 = arith.truncf %75 : vector<8x16xf32> to vector<8x16xbf16>
    %cst_31 = arith.constant dense<0.000000e+00> : vector<8x16xf32>
    %77 = tpu.matmul %1, %76, %cst_31 {dimension_numbers = #tpu.dot_dimension_numbers<[1], [0], [0], [1], [0, 0, 1, 1], [], []>} : vector<8x8xbf16>, vector<8x16xbf16>, vector<8x16xf32> -> vector<8x16xf32>
    %78 = arith.truncf %77 : vector<8x16xf32> to vector<8x16xbf16>
    %cst_32 = arith.constant dense<0.000000e+00> : vector<8x32xf32>
    %79 = tpu.matmul %78, %31, %cst_32 {dimension_numbers = #tpu.dot_dimension_numbers<[1], [0], [0], [1], [0, 0, 1, 1], [], []>} : vector<8x16xbf16>, vector<16x32xbf16>, vector<8x32xf32> -> vector<8x32xf32>
    %80 = arith.addf %79, %36 : vector<8x32xf32>
    %81 = math.tanh %80 : vector<8x32xf32>
    %82 = arith.truncf %81 : vector<8x32xf32> to vector<8x32xbf16>
    %cst_33 = arith.constant dense<0.000000e+00> : vector<8x16xf32>
    %83 = tpu.matmul %82, %33, %cst_33 {dimension_numbers = #tpu.dot_dimension_numbers<[1], [0], [0], [1], [0, 0, 1, 1], [], []>} : vector<8x32xbf16>, vector<32x16xbf16>, vector<8x16xf32> -> vector<8x16xf32>
    %84 = arith.addf %83, %39 : vector<8x16xf32>
    %cst_34 = arith.constant 2.000000e+00 : f32
    %85 = vector.broadcast %cst_34 : f32 to vector<8x16xf32>
    %86 = arith.mulf %85, %60 : vector<8x16xf32>
    %87 = arith.addf %48, %86 : vector<8x16xf32>
    %cst_35 = arith.constant 2.000000e+00 : f32
    %88 = vector.broadcast %cst_35 : f32 to vector<8x16xf32>
    %89 = arith.mulf %88, %72 : vector<8x16xf32>
    %90 = arith.addf %87, %89 : vector<8x16xf32>
    %91 = arith.addf %90, %84 : vector<8x16xf32>
    %cst_36 = arith.constant 0.0238095243 : f32
    %92 = vector.broadcast %cst_36 : f32 to vector<8x16xf32>
    %93 = arith.mulf %92, %91 : vector<8x16xf32>
    %94 = arith.addf %29, %93 : vector<8x16xf32>
    %95 = arith.truncf %94 : vector<8x16xf32> to vector<8x16xbf16>
    %cst_37 = arith.constant dense<0.000000e+00> : vector<8x16xf32>
    %96 = tpu.matmul %1, %95, %cst_37 {dimension_numbers = #tpu.dot_dimension_numbers<[1], [0], [0], [1], [0, 0, 1, 1], [], []>} : vector<8x8xbf16>, vector<8x16xbf16>, vector<8x16xf32> -> vector<8x16xf32>
    %97 = arith.truncf %96 : vector<8x16xf32> to vector<8x16xbf16>
    %cst_38 = arith.constant dense<0.000000e+00> : vector<8x32xf32>
    %98 = tpu.matmul %97, %31, %cst_38 {dimension_numbers = #tpu.dot_dimension_numbers<[1], [0], [0], [1], [0, 0, 1, 1], [], []>} : vector<8x16xbf16>, vector<16x32xbf16>, vector<8x32xf32> -> vector<8x32xf32>
    %99 = arith.addf %98, %36 : vector<8x32xf32>
    %100 = math.tanh %99 : vector<8x32xf32>
    %101 = arith.truncf %100 : vector<8x32xf32> to vector<8x32xbf16>
    %cst_39 = arith.constant dense<0.000000e+00> : vector<8x16xf32>
    %102 = tpu.matmul %101, %33, %cst_39 {dimension_numbers = #tpu.dot_dimension_numbers<[1], [0], [0], [1], [0, 0, 1, 1], [], []>} : vector<8x32xbf16>, vector<32x16xbf16>, vector<8x16xf32> -> vector<8x16xf32>
    %103 = arith.addf %102, %39 : vector<8x16xf32>
    %cst_40 = arith.constant 0.0714285746 : f32
    %104 = vector.broadcast %cst_40 : f32 to vector<8x16xf32>
    %105 = arith.mulf %104, %103 : vector<8x16xf32>
    %106 = arith.addf %94, %105 : vector<8x16xf32>
    %107 = arith.truncf %106 : vector<8x16xf32> to vector<8x16xbf16>
    %cst_41 = arith.constant dense<0.000000e+00> : vector<8x16xf32>
    %108 = tpu.matmul %1, %107, %cst_41 {dimension_numbers = #tpu.dot_dimension_numbers<[1], [0], [0], [1], [0, 0, 1, 1], [], []>} : vector<8x8xbf16>, vector<8x16xbf16>, vector<8x16xf32> -> vector<8x16xf32>
    %109 = arith.truncf %108 : vector<8x16xf32> to vector<8x16xbf16>
    %cst_42 = arith.constant dense<0.000000e+00> : vector<8x32xf32>
    %110 = tpu.matmul %109, %31, %cst_42 {dimension_numbers = #tpu.dot_dimension_numbers<[1], [0], [0], [1], [0, 0, 1, 1], [], []>} : vector<8x16xbf16>, vector<16x32xbf16>, vector<8x32xf32> -> vector<8x32xf32>
    %111 = arith.addf %110, %36 : vector<8x32xf32>
    %112 = math.tanh %111 : vector<8x32xf32>
    %113 = arith.truncf %112 : vector<8x32xf32> to vector<8x32xbf16>
    %cst_43 = arith.constant dense<0.000000e+00> : vector<8x16xf32>
    %114 = tpu.matmul %113, %33, %cst_43 {dimension_numbers = #tpu.dot_dimension_numbers<[1], [0], [0], [1], [0, 0, 1, 1], [], []>} : vector<8x32xbf16>, vector<32x16xbf16>, vector<8x16xf32> -> vector<8x16xf32>
    %115 = arith.addf %114, %39 : vector<8x16xf32>
    %cst_44 = arith.constant 0.0714285746 : f32
    %116 = vector.broadcast %cst_44 : f32 to vector<8x16xf32>
    %117 = arith.mulf %116, %115 : vector<8x16xf32>
    %118 = arith.addf %94, %117 : vector<8x16xf32>
    %119 = arith.truncf %118 : vector<8x16xf32> to vector<8x16xbf16>
    %cst_45 = arith.constant dense<0.000000e+00> : vector<8x16xf32>
    %120 = tpu.matmul %1, %119, %cst_45 {dimension_numbers = #tpu.dot_dimension_numbers<[1], [0], [0], [1], [0, 0, 1, 1], [], []>} : vector<8x8xbf16>, vector<8x16xbf16>, vector<8x16xf32> -> vector<8x16xf32>
    %121 = arith.truncf %120 : vector<8x16xf32> to vector<8x16xbf16>
    %cst_46 = arith.constant dense<0.000000e+00> : vector<8x32xf32>
    %122 = tpu.matmul %121, %31, %cst_46 {dimension_numbers = #tpu.dot_dimension_numbers<[1], [0], [0], [1], [0, 0, 1, 1], [], []>} : vector<8x16xbf16>, vector<16x32xbf16>, vector<8x32xf32> -> vector<8x32xf32>
    %123 = arith.addf %122, %36 : vector<8x32xf32>
    %124 = math.tanh %123 : vector<8x32xf32>
    %125 = arith.truncf %124 : vector<8x32xf32> to vector<8x32xbf16>
    %cst_47 = arith.constant dense<0.000000e+00> : vector<8x16xf32>
    %126 = tpu.matmul %125, %33, %cst_47 {dimension_numbers = #tpu.dot_dimension_numbers<[1], [0], [0], [1], [0, 0, 1, 1], [], []>} : vector<8x32xbf16>, vector<32x16xbf16>, vector<8x16xf32> -> vector<8x16xf32>
    %127 = arith.addf %126, %39 : vector<8x16xf32>
    %cst_48 = arith.constant 0.142857149 : f32
    %128 = vector.broadcast %cst_48 : f32 to vector<8x16xf32>
    %129 = arith.mulf %128, %127 : vector<8x16xf32>
    %130 = arith.addf %94, %129 : vector<8x16xf32>
    %131 = arith.truncf %130 : vector<8x16xf32> to vector<8x16xbf16>
    %cst_49 = arith.constant dense<0.000000e+00> : vector<8x16xf32>
    %132 = tpu.matmul %1, %131, %cst_49 {dimension_numbers = #tpu.dot_dimension_numbers<[1], [0], [0], [1], [0, 0, 1, 1], [], []>} : vector<8x8xbf16>, vector<8x16xbf16>, vector<8x16xf32> -> vector<8x16xf32>
    %133 = arith.truncf %132 : vector<8x16xf32> to vector<8x16xbf16>
    %cst_50 = arith.constant dense<0.000000e+00> : vector<8x32xf32>
    %134 = tpu.matmul %133, %31, %cst_50 {dimension_numbers = #tpu.dot_dimension_numbers<[1], [0], [0], [1], [0, 0, 1, 1], [], []>} : vector<8x16xbf16>, vector<16x32xbf16>, vector<8x32xf32> -> vector<8x32xf32>
    %135 = arith.addf %134, %36 : vector<8x32xf32>
    %136 = math.tanh %135 : vector<8x32xf32>
    %137 = arith.truncf %136 : vector<8x32xf32> to vector<8x32xbf16>
    %cst_51 = arith.constant dense<0.000000e+00> : vector<8x16xf32>
    %138 = tpu.matmul %137, %33, %cst_51 {dimension_numbers = #tpu.dot_dimension_numbers<[1], [0], [0], [1], [0, 0, 1, 1], [], []>} : vector<8x32xbf16>, vector<32x16xbf16>, vector<8x16xf32> -> vector<8x16xf32>
    %139 = arith.addf %138, %39 : vector<8x16xf32>
    %cst_52 = arith.constant 2.000000e+00 : f32
    %140 = vector.broadcast %cst_52 : f32 to vector<8x16xf32>
    %141 = arith.mulf %140, %115 : vector<8x16xf32>
    %142 = arith.addf %103, %141 : vector<8x16xf32>
    %cst_53 = arith.constant 2.000000e+00 : f32
    %143 = vector.broadcast %cst_53 : f32 to vector<8x16xf32>
    %144 = arith.mulf %143, %127 : vector<8x16xf32>
    %145 = arith.addf %142, %144 : vector<8x16xf32>
    %146 = arith.addf %145, %139 : vector<8x16xf32>
    %cst_54 = arith.constant 0.0238095243 : f32
    %147 = vector.broadcast %cst_54 : f32 to vector<8x16xf32>
    %148 = arith.mulf %147, %146 : vector<8x16xf32>
    %149 = arith.addf %94, %148 : vector<8x16xf32>
    %150 = arith.truncf %149 : vector<8x16xf32> to vector<8x16xbf16>
    %cst_55 = arith.constant dense<0.000000e+00> : vector<8x16xf32>
    %151 = tpu.matmul %1, %150, %cst_55 {dimension_numbers = #tpu.dot_dimension_numbers<[1], [0], [0], [1], [0, 0, 1, 1], [], []>} : vector<8x8xbf16>, vector<8x16xbf16>, vector<8x16xf32> -> vector<8x16xf32>
    %152 = arith.truncf %151 : vector<8x16xf32> to vector<8x16xbf16>
    %cst_56 = arith.constant dense<0.000000e+00> : vector<8x32xf32>
    %153 = tpu.matmul %152, %31, %cst_56 {dimension_numbers = #tpu.dot_dimension_numbers<[1], [0], [0], [1], [0, 0, 1, 1], [], []>} : vector<8x16xbf16>, vector<16x32xbf16>, vector<8x32xf32> -> vector<8x32xf32>
    %154 = arith.addf %153, %36 : vector<8x32xf32>
    %155 = math.tanh %154 : vector<8x32xf32>
    %156 = arith.truncf %155 : vector<8x32xf32> to vector<8x32xbf16>
    %cst_57 = arith.constant dense<0.000000e+00> : vector<8x16xf32>
    %157 = tpu.matmul %156, %33, %cst_57 {dimension_numbers = #tpu.dot_dimension_numbers<[1], [0], [0], [1], [0, 0, 1, 1], [], []>} : vector<8x32xbf16>, vector<32x16xbf16>, vector<8x16xf32> -> vector<8x16xf32>
    %158 = arith.addf %157, %39 : vector<8x16xf32>
    %cst_58 = arith.constant 0.0714285821 : f32
    %159 = vector.broadcast %cst_58 : f32 to vector<8x16xf32>
    %160 = arith.mulf %159, %158 : vector<8x16xf32>
    %161 = arith.addf %149, %160 : vector<8x16xf32>
    %162 = arith.truncf %161 : vector<8x16xf32> to vector<8x16xbf16>
    %cst_59 = arith.constant dense<0.000000e+00> : vector<8x16xf32>
    %163 = tpu.matmul %1, %162, %cst_59 {dimension_numbers = #tpu.dot_dimension_numbers<[1], [0], [0], [1], [0, 0, 1, 1], [], []>} : vector<8x8xbf16>, vector<8x16xbf16>, vector<8x16xf32> -> vector<8x16xf32>
    %164 = arith.truncf %163 : vector<8x16xf32> to vector<8x16xbf16>
    %cst_60 = arith.constant dense<0.000000e+00> : vector<8x32xf32>
    %165 = tpu.matmul %164, %31, %cst_60 {dimension_numbers = #tpu.dot_dimension_numbers<[1], [0], [0], [1], [0, 0, 1, 1], [], []>} : vector<8x16xbf16>, vector<16x32xbf16>, vector<8x32xf32> -> vector<8x32xf32>
    %166 = arith.addf %165, %36 : vector<8x32xf32>
    %167 = math.tanh %166 : vector<8x32xf32>
    %168 = arith.truncf %167 : vector<8x32xf32> to vector<8x32xbf16>
    %cst_61 = arith.constant dense<0.000000e+00> : vector<8x16xf32>
    %169 = tpu.matmul %168, %33, %cst_61 {dimension_numbers = #tpu.dot_dimension_numbers<[1], [0], [0], [1], [0, 0, 1, 1], [], []>} : vector<8x32xbf16>, vector<32x16xbf16>, vector<8x16xf32> -> vector<8x16xf32>
    %170 = arith.addf %169, %39 : vector<8x16xf32>
    %cst_62 = arith.constant 0.0714285821 : f32
    %171 = vector.broadcast %cst_62 : f32 to vector<8x16xf32>
    %172 = arith.mulf %171, %170 : vector<8x16xf32>
    %173 = arith.addf %149, %172 : vector<8x16xf32>
    %174 = arith.truncf %173 : vector<8x16xf32> to vector<8x16xbf16>
    %cst_63 = arith.constant dense<0.000000e+00> : vector<8x16xf32>
    %175 = tpu.matmul %1, %174, %cst_63 {dimension_numbers = #tpu.dot_dimension_numbers<[1], [0], [0], [1], [0, 0, 1, 1], [], []>} : vector<8x8xbf16>, vector<8x16xbf16>, vector<8x16xf32> -> vector<8x16xf32>
    %176 = arith.truncf %175 : vector<8x16xf32> to vector<8x16xbf16>
    %cst_64 = arith.constant dense<0.000000e+00> : vector<8x32xf32>
    %177 = tpu.matmul %176, %31, %cst_64 {dimension_numbers = #tpu.dot_dimension_numbers<[1], [0], [0], [1], [0, 0, 1, 1], [], []>} : vector<8x16xbf16>, vector<16x32xbf16>, vector<8x32xf32> -> vector<8x32xf32>
    %178 = arith.addf %177, %36 : vector<8x32xf32>
    %179 = math.tanh %178 : vector<8x32xf32>
    %180 = arith.truncf %179 : vector<8x32xf32> to vector<8x32xbf16>
    %cst_65 = arith.constant dense<0.000000e+00> : vector<8x16xf32>
    %181 = tpu.matmul %180, %33, %cst_65 {dimension_numbers = #tpu.dot_dimension_numbers<[1], [0], [0], [1], [0, 0, 1, 1], [], []>} : vector<8x32xbf16>, vector<32x16xbf16>, vector<8x16xf32> -> vector<8x16xf32>
    %182 = arith.addf %181, %39 : vector<8x16xf32>
    %cst_66 = arith.constant 0.142857164 : f32
    %183 = vector.broadcast %cst_66 : f32 to vector<8x16xf32>
    %184 = arith.mulf %183, %182 : vector<8x16xf32>
    %185 = arith.addf %149, %184 : vector<8x16xf32>
    %186 = arith.truncf %185 : vector<8x16xf32> to vector<8x16xbf16>
    %cst_67 = arith.constant dense<0.000000e+00> : vector<8x16xf32>
    %187 = tpu.matmul %1, %186, %cst_67 {dimension_numbers = #tpu.dot_dimension_numbers<[1], [0], [0], [1], [0, 0, 1, 1], [], []>} : vector<8x8xbf16>, vector<8x16xbf16>, vector<8x16xf32> -> vector<8x16xf32>
    %188 = arith.truncf %187 : vector<8x16xf32> to vector<8x16xbf16>
    %cst_68 = arith.constant dense<0.000000e+00> : vector<8x32xf32>
    %189 = tpu.matmul %188, %31, %cst_68 {dimension_numbers = #tpu.dot_dimension_numbers<[1], [0], [0], [1], [0, 0, 1, 1], [], []>} : vector<8x16xbf16>, vector<16x32xbf16>, vector<8x32xf32> -> vector<8x32xf32>
    %190 = arith.addf %189, %36 : vector<8x32xf32>
    %191 = math.tanh %190 : vector<8x32xf32>
    %192 = arith.truncf %191 : vector<8x32xf32> to vector<8x32xbf16>
    %cst_69 = arith.constant dense<0.000000e+00> : vector<8x16xf32>
    %193 = tpu.matmul %192, %33, %cst_69 {dimension_numbers = #tpu.dot_dimension_numbers<[1], [0], [0], [1], [0, 0, 1, 1], [], []>} : vector<8x32xbf16>, vector<32x16xbf16>, vector<8x16xf32> -> vector<8x16xf32>
    %194 = arith.addf %193, %39 : vector<8x16xf32>
    %cst_70 = arith.constant 2.000000e+00 : f32
    %195 = vector.broadcast %cst_70 : f32 to vector<8x16xf32>
    %196 = arith.mulf %195, %170 : vector<8x16xf32>
    %197 = arith.addf %158, %196 : vector<8x16xf32>
    %cst_71 = arith.constant 2.000000e+00 : f32
    %198 = vector.broadcast %cst_71 : f32 to vector<8x16xf32>
    %199 = arith.mulf %198, %182 : vector<8x16xf32>
    %200 = arith.addf %197, %199 : vector<8x16xf32>
    %201 = arith.addf %200, %194 : vector<8x16xf32>
    %cst_72 = arith.constant 0.023809528 : f32
    %202 = vector.broadcast %cst_72 : f32 to vector<8x16xf32>
    %203 = arith.mulf %202, %201 : vector<8x16xf32>
    %204 = arith.addf %149, %203 : vector<8x16xf32>
    %205 = arith.truncf %204 : vector<8x16xf32> to vector<8x16xbf16>
    %cst_73 = arith.constant dense<0.000000e+00> : vector<8x16xf32>
    %206 = tpu.matmul %1, %205, %cst_73 {dimension_numbers = #tpu.dot_dimension_numbers<[1], [0], [0], [1], [0, 0, 1, 1], [], []>} : vector<8x8xbf16>, vector<8x16xbf16>, vector<8x16xf32> -> vector<8x16xf32>
    %207 = arith.truncf %206 : vector<8x16xf32> to vector<8x16xbf16>
    %cst_74 = arith.constant dense<0.000000e+00> : vector<8x32xf32>
    %208 = tpu.matmul %207, %31, %cst_74 {dimension_numbers = #tpu.dot_dimension_numbers<[1], [0], [0], [1], [0, 0, 1, 1], [], []>} : vector<8x16xbf16>, vector<16x32xbf16>, vector<8x32xf32> -> vector<8x32xf32>
    %209 = arith.addf %208, %36 : vector<8x32xf32>
    %210 = math.tanh %209 : vector<8x32xf32>
    %211 = arith.truncf %210 : vector<8x32xf32> to vector<8x32xbf16>
    %cst_75 = arith.constant dense<0.000000e+00> : vector<8x16xf32>
    %212 = tpu.matmul %211, %33, %cst_75 {dimension_numbers = #tpu.dot_dimension_numbers<[1], [0], [0], [1], [0, 0, 1, 1], [], []>} : vector<8x32xbf16>, vector<32x16xbf16>, vector<8x16xf32> -> vector<8x16xf32>
    %213 = arith.addf %212, %39 : vector<8x16xf32>
    %cst_76 = arith.constant 0.0714285671 : f32
    %214 = vector.broadcast %cst_76 : f32 to vector<8x16xf32>
    %215 = arith.mulf %214, %213 : vector<8x16xf32>
    %216 = arith.addf %204, %215 : vector<8x16xf32>
    %217 = arith.truncf %216 : vector<8x16xf32> to vector<8x16xbf16>
    %cst_77 = arith.constant dense<0.000000e+00> : vector<8x16xf32>
    %218 = tpu.matmul %1, %217, %cst_77 {dimension_numbers = #tpu.dot_dimension_numbers<[1], [0], [0], [1], [0, 0, 1, 1], [], []>} : vector<8x8xbf16>, vector<8x16xbf16>, vector<8x16xf32> -> vector<8x16xf32>
    %219 = arith.truncf %218 : vector<8x16xf32> to vector<8x16xbf16>
    %cst_78 = arith.constant dense<0.000000e+00> : vector<8x32xf32>
    %220 = tpu.matmul %219, %31, %cst_78 {dimension_numbers = #tpu.dot_dimension_numbers<[1], [0], [0], [1], [0, 0, 1, 1], [], []>} : vector<8x16xbf16>, vector<16x32xbf16>, vector<8x32xf32> -> vector<8x32xf32>
    %221 = arith.addf %220, %36 : vector<8x32xf32>
    %222 = math.tanh %221 : vector<8x32xf32>
    %223 = arith.truncf %222 : vector<8x32xf32> to vector<8x32xbf16>
    %cst_79 = arith.constant dense<0.000000e+00> : vector<8x16xf32>
    %224 = tpu.matmul %223, %33, %cst_79 {dimension_numbers = #tpu.dot_dimension_numbers<[1], [0], [0], [1], [0, 0, 1, 1], [], []>} : vector<8x32xbf16>, vector<32x16xbf16>, vector<8x16xf32> -> vector<8x16xf32>
    %225 = arith.addf %224, %39 : vector<8x16xf32>
    %cst_80 = arith.constant 0.0714285671 : f32
    %226 = vector.broadcast %cst_80 : f32 to vector<8x16xf32>
    %227 = arith.mulf %226, %225 : vector<8x16xf32>
    %228 = arith.addf %204, %227 : vector<8x16xf32>
    %229 = arith.truncf %228 : vector<8x16xf32> to vector<8x16xbf16>
    %cst_81 = arith.constant dense<0.000000e+00> : vector<8x16xf32>
    %230 = tpu.matmul %1, %229, %cst_81 {dimension_numbers = #tpu.dot_dimension_numbers<[1], [0], [0], [1], [0, 0, 1, 1], [], []>} : vector<8x8xbf16>, vector<8x16xbf16>, vector<8x16xf32> -> vector<8x16xf32>
    %231 = arith.truncf %230 : vector<8x16xf32> to vector<8x16xbf16>
    %cst_82 = arith.constant dense<0.000000e+00> : vector<8x32xf32>
    %232 = tpu.matmul %231, %31, %cst_82 {dimension_numbers = #tpu.dot_dimension_numbers<[1], [0], [0], [1], [0, 0, 1, 1], [], []>} : vector<8x16xbf16>, vector<16x32xbf16>, vector<8x32xf32> -> vector<8x32xf32>
    %233 = arith.addf %232, %36 : vector<8x32xf32>
    %234 = math.tanh %233 : vector<8x32xf32>
    %235 = arith.truncf %234 : vector<8x32xf32> to vector<8x32xbf16>
    %cst_83 = arith.constant dense<0.000000e+00> : vector<8x16xf32>
    %236 = tpu.matmul %235, %33, %cst_83 {dimension_numbers = #tpu.dot_dimension_numbers<[1], [0], [0], [1], [0, 0, 1, 1], [], []>} : vector<8x32xbf16>, vector<32x16xbf16>, vector<8x16xf32> -> vector<8x16xf32>
    %237 = arith.addf %236, %39 : vector<8x16xf32>
    %cst_84 = arith.constant 0.142857134 : f32
    %238 = vector.broadcast %cst_84 : f32 to vector<8x16xf32>
    %239 = arith.mulf %238, %237 : vector<8x16xf32>
    %240 = arith.addf %204, %239 : vector<8x16xf32>
    %241 = arith.truncf %240 : vector<8x16xf32> to vector<8x16xbf16>
    %cst_85 = arith.constant dense<0.000000e+00> : vector<8x16xf32>
    %242 = tpu.matmul %1, %241, %cst_85 {dimension_numbers = #tpu.dot_dimension_numbers<[1], [0], [0], [1], [0, 0, 1, 1], [], []>} : vector<8x8xbf16>, vector<8x16xbf16>, vector<8x16xf32> -> vector<8x16xf32>
    %243 = arith.truncf %242 : vector<8x16xf32> to vector<8x16xbf16>
    %cst_86 = arith.constant dense<0.000000e+00> : vector<8x32xf32>
    %244 = tpu.matmul %243, %31, %cst_86 {dimension_numbers = #tpu.dot_dimension_numbers<[1], [0], [0], [1], [0, 0, 1, 1], [], []>} : vector<8x16xbf16>, vector<16x32xbf16>, vector<8x32xf32> -> vector<8x32xf32>
    %245 = arith.addf %244, %36 : vector<8x32xf32>
    %246 = math.tanh %245 : vector<8x32xf32>
    %247 = arith.truncf %246 : vector<8x32xf32> to vector<8x32xbf16>
    %cst_87 = arith.constant dense<0.000000e+00> : vector<8x16xf32>
    %248 = tpu.matmul %247, %33, %cst_87 {dimension_numbers = #tpu.dot_dimension_numbers<[1], [0], [0], [1], [0, 0, 1, 1], [], []>} : vector<8x32xbf16>, vector<32x16xbf16>, vector<8x16xf32> -> vector<8x16xf32>
    %249 = arith.addf %248, %39 : vector<8x16xf32>
    %cst_88 = arith.constant 2.000000e+00 : f32
    %250 = vector.broadcast %cst_88 : f32 to vector<8x16xf32>
    %251 = arith.mulf %250, %225 : vector<8x16xf32>
    %252 = arith.addf %213, %251 : vector<8x16xf32>
    %cst_89 = arith.constant 2.000000e+00 : f32
    %253 = vector.broadcast %cst_89 : f32 to vector<8x16xf32>
    %254 = arith.mulf %253, %237 : vector<8x16xf32>
    %255 = arith.addf %252, %254 : vector<8x16xf32>
    %256 = arith.addf %255, %249 : vector<8x16xf32>
    %cst_90 = arith.constant 0.0238095224 : f32
    %257 = vector.broadcast %cst_90 : f32 to vector<8x16xf32>
    %258 = arith.mulf %257, %256 : vector<8x16xf32>
    %259 = arith.addf %204, %258 : vector<8x16xf32>
    %260 = arith.truncf %259 : vector<8x16xf32> to vector<8x16xbf16>
    %cst_91 = arith.constant dense<0.000000e+00> : vector<8x16xf32>
    %261 = tpu.matmul %1, %260, %cst_91 {dimension_numbers = #tpu.dot_dimension_numbers<[1], [0], [0], [1], [0, 0, 1, 1], [], []>} : vector<8x8xbf16>, vector<8x16xbf16>, vector<8x16xf32> -> vector<8x16xf32>
    %262 = arith.truncf %261 : vector<8x16xf32> to vector<8x16xbf16>
    %cst_92 = arith.constant dense<0.000000e+00> : vector<8x32xf32>
    %263 = tpu.matmul %262, %31, %cst_92 {dimension_numbers = #tpu.dot_dimension_numbers<[1], [0], [0], [1], [0, 0, 1, 1], [], []>} : vector<8x16xbf16>, vector<16x32xbf16>, vector<8x32xf32> -> vector<8x32xf32>
    %264 = arith.addf %263, %36 : vector<8x32xf32>
    %265 = math.tanh %264 : vector<8x32xf32>
    %266 = arith.truncf %265 : vector<8x32xf32> to vector<8x32xbf16>
    %cst_93 = arith.constant dense<0.000000e+00> : vector<8x16xf32>
    %267 = tpu.matmul %266, %33, %cst_93 {dimension_numbers = #tpu.dot_dimension_numbers<[1], [0], [0], [1], [0, 0, 1, 1], [], []>} : vector<8x32xbf16>, vector<32x16xbf16>, vector<8x16xf32> -> vector<8x16xf32>
    %268 = arith.addf %267, %39 : vector<8x16xf32>
    %cst_94 = arith.constant 0.0714285671 : f32
    %269 = vector.broadcast %cst_94 : f32 to vector<8x16xf32>
    %270 = arith.mulf %269, %268 : vector<8x16xf32>
    %271 = arith.addf %259, %270 : vector<8x16xf32>
    %272 = arith.truncf %271 : vector<8x16xf32> to vector<8x16xbf16>
    %cst_95 = arith.constant dense<0.000000e+00> : vector<8x16xf32>
    %273 = tpu.matmul %1, %272, %cst_95 {dimension_numbers = #tpu.dot_dimension_numbers<[1], [0], [0], [1], [0, 0, 1, 1], [], []>} : vector<8x8xbf16>, vector<8x16xbf16>, vector<8x16xf32> -> vector<8x16xf32>
    %274 = arith.truncf %273 : vector<8x16xf32> to vector<8x16xbf16>
    %cst_96 = arith.constant dense<0.000000e+00> : vector<8x32xf32>
    %275 = tpu.matmul %274, %31, %cst_96 {dimension_numbers = #tpu.dot_dimension_numbers<[1], [0], [0], [1], [0, 0, 1, 1], [], []>} : vector<8x16xbf16>, vector<16x32xbf16>, vector<8x32xf32> -> vector<8x32xf32>
    %276 = arith.addf %275, %36 : vector<8x32xf32>
    %277 = math.tanh %276 : vector<8x32xf32>
    %278 = arith.truncf %277 : vector<8x32xf32> to vector<8x32xbf16>
    %cst_97 = arith.constant dense<0.000000e+00> : vector<8x16xf32>
    %279 = tpu.matmul %278, %33, %cst_97 {dimension_numbers = #tpu.dot_dimension_numbers<[1], [0], [0], [1], [0, 0, 1, 1], [], []>} : vector<8x32xbf16>, vector<32x16xbf16>, vector<8x16xf32> -> vector<8x16xf32>
    %280 = arith.addf %279, %39 : vector<8x16xf32>
    %cst_98 = arith.constant 0.0714285671 : f32
    %281 = vector.broadcast %cst_98 : f32 to vector<8x16xf32>
    %282 = arith.mulf %281, %280 : vector<8x16xf32>
    %283 = arith.addf %259, %282 : vector<8x16xf32>
    %284 = arith.truncf %283 : vector<8x16xf32> to vector<8x16xbf16>
    %cst_99 = arith.constant dense<0.000000e+00> : vector<8x16xf32>
    %285 = tpu.matmul %1, %284, %cst_99 {dimension_numbers = #tpu.dot_dimension_numbers<[1], [0], [0], [1], [0, 0, 1, 1], [], []>} : vector<8x8xbf16>, vector<8x16xbf16>, vector<8x16xf32> -> vector<8x16xf32>
    %286 = arith.truncf %285 : vector<8x16xf32> to vector<8x16xbf16>
    %cst_100 = arith.constant dense<0.000000e+00> : vector<8x32xf32>
    %287 = tpu.matmul %286, %31, %cst_100 {dimension_numbers = #tpu.dot_dimension_numbers<[1], [0], [0], [1], [0, 0, 1, 1], [], []>} : vector<8x16xbf16>, vector<16x32xbf16>, vector<8x32xf32> -> vector<8x32xf32>
    %288 = arith.addf %287, %36 : vector<8x32xf32>
    %289 = math.tanh %288 : vector<8x32xf32>
    %290 = arith.truncf %289 : vector<8x32xf32> to vector<8x32xbf16>
    %cst_101 = arith.constant dense<0.000000e+00> : vector<8x16xf32>
    %291 = tpu.matmul %290, %33, %cst_101 {dimension_numbers = #tpu.dot_dimension_numbers<[1], [0], [0], [1], [0, 0, 1, 1], [], []>} : vector<8x32xbf16>, vector<32x16xbf16>, vector<8x16xf32> -> vector<8x16xf32>
    %292 = arith.addf %291, %39 : vector<8x16xf32>
    %cst_102 = arith.constant 0.142857134 : f32
    %293 = vector.broadcast %cst_102 : f32 to vector<8x16xf32>
    %294 = arith.mulf %293, %292 : vector<8x16xf32>
    %295 = arith.addf %259, %294 : vector<8x16xf32>
    %296 = arith.truncf %295 : vector<8x16xf32> to vector<8x16xbf16>
    %cst_103 = arith.constant dense<0.000000e+00> : vector<8x16xf32>
    %297 = tpu.matmul %1, %296, %cst_103 {dimension_numbers = #tpu.dot_dimension_numbers<[1], [0], [0], [1], [0, 0, 1, 1], [], []>} : vector<8x8xbf16>, vector<8x16xbf16>, vector<8x16xf32> -> vector<8x16xf32>
    %298 = arith.truncf %297 : vector<8x16xf32> to vector<8x16xbf16>
    %cst_104 = arith.constant dense<0.000000e+00> : vector<8x32xf32>
    %299 = tpu.matmul %298, %31, %cst_104 {dimension_numbers = #tpu.dot_dimension_numbers<[1], [0], [0], [1], [0, 0, 1, 1], [], []>} : vector<8x16xbf16>, vector<16x32xbf16>, vector<8x32xf32> -> vector<8x32xf32>
    %300 = arith.addf %299, %36 : vector<8x32xf32>
    %301 = math.tanh %300 : vector<8x32xf32>
    %302 = arith.truncf %301 : vector<8x32xf32> to vector<8x32xbf16>
    %cst_105 = arith.constant dense<0.000000e+00> : vector<8x16xf32>
    %303 = tpu.matmul %302, %33, %cst_105 {dimension_numbers = #tpu.dot_dimension_numbers<[1], [0], [0], [1], [0, 0, 1, 1], [], []>} : vector<8x32xbf16>, vector<32x16xbf16>, vector<8x16xf32> -> vector<8x16xf32>
    %304 = arith.addf %303, %39 : vector<8x16xf32>
    %cst_106 = arith.constant 2.000000e+00 : f32
    %305 = vector.broadcast %cst_106 : f32 to vector<8x16xf32>
    %306 = arith.mulf %305, %280 : vector<8x16xf32>
    %307 = arith.addf %268, %306 : vector<8x16xf32>
    %cst_107 = arith.constant 2.000000e+00 : f32
    %308 = vector.broadcast %cst_107 : f32 to vector<8x16xf32>
    %309 = arith.mulf %308, %292 : vector<8x16xf32>
    %310 = arith.addf %307, %309 : vector<8x16xf32>
    %311 = arith.addf %310, %304 : vector<8x16xf32>
    %cst_108 = arith.constant 0.0238095224 : f32
    %312 = vector.broadcast %cst_108 : f32 to vector<8x16xf32>
    %313 = arith.mulf %312, %311 : vector<8x16xf32>
    %314 = arith.addf %259, %313 : vector<8x16xf32>
    %315 = arith.truncf %314 : vector<8x16xf32> to vector<8x16xbf16>
    %cst_109 = arith.constant dense<0.000000e+00> : vector<8x16xf32>
    %316 = tpu.matmul %1, %315, %cst_109 {dimension_numbers = #tpu.dot_dimension_numbers<[1], [0], [0], [1], [0, 0, 1, 1], [], []>} : vector<8x8xbf16>, vector<8x16xbf16>, vector<8x16xf32> -> vector<8x16xf32>
    %317 = arith.truncf %316 : vector<8x16xf32> to vector<8x16xbf16>
    %cst_110 = arith.constant dense<0.000000e+00> : vector<8x32xf32>
    %318 = tpu.matmul %317, %31, %cst_110 {dimension_numbers = #tpu.dot_dimension_numbers<[1], [0], [0], [1], [0, 0, 1, 1], [], []>} : vector<8x16xbf16>, vector<16x32xbf16>, vector<8x32xf32> -> vector<8x32xf32>
    %319 = arith.addf %318, %36 : vector<8x32xf32>
    %320 = math.tanh %319 : vector<8x32xf32>
    %321 = arith.truncf %320 : vector<8x32xf32> to vector<8x32xbf16>
    %cst_111 = arith.constant dense<0.000000e+00> : vector<8x16xf32>
    %322 = tpu.matmul %321, %33, %cst_111 {dimension_numbers = #tpu.dot_dimension_numbers<[1], [0], [0], [1], [0, 0, 1, 1], [], []>} : vector<8x32xbf16>, vector<32x16xbf16>, vector<8x16xf32> -> vector<8x16xf32>
    %323 = arith.addf %322, %39 : vector<8x16xf32>
    %cst_112 = arith.constant 7.142860e-02 : f32
    %324 = vector.broadcast %cst_112 : f32 to vector<8x16xf32>
    %325 = arith.mulf %324, %323 : vector<8x16xf32>
    %326 = arith.addf %314, %325 : vector<8x16xf32>
    %327 = arith.truncf %326 : vector<8x16xf32> to vector<8x16xbf16>
    %cst_113 = arith.constant dense<0.000000e+00> : vector<8x16xf32>
    %328 = tpu.matmul %1, %327, %cst_113 {dimension_numbers = #tpu.dot_dimension_numbers<[1], [0], [0], [1], [0, 0, 1, 1], [], []>} : vector<8x8xbf16>, vector<8x16xbf16>, vector<8x16xf32> -> vector<8x16xf32>
    %329 = arith.truncf %328 : vector<8x16xf32> to vector<8x16xbf16>
    %cst_114 = arith.constant dense<0.000000e+00> : vector<8x32xf32>
    %330 = tpu.matmul %329, %31, %cst_114 {dimension_numbers = #tpu.dot_dimension_numbers<[1], [0], [0], [1], [0, 0, 1, 1], [], []>} : vector<8x16xbf16>, vector<16x32xbf16>, vector<8x32xf32> -> vector<8x32xf32>
    %331 = arith.addf %330, %36 : vector<8x32xf32>
    %332 = math.tanh %331 : vector<8x32xf32>
    %333 = arith.truncf %332 : vector<8x32xf32> to vector<8x32xbf16>
    %cst_115 = arith.constant dense<0.000000e+00> : vector<8x16xf32>
    %334 = tpu.matmul %333, %33, %cst_115 {dimension_numbers = #tpu.dot_dimension_numbers<[1], [0], [0], [1], [0, 0, 1, 1], [], []>} : vector<8x32xbf16>, vector<32x16xbf16>, vector<8x16xf32> -> vector<8x16xf32>
    %335 = arith.addf %334, %39 : vector<8x16xf32>
    %cst_116 = arith.constant 7.142860e-02 : f32
    %336 = vector.broadcast %cst_116 : f32 to vector<8x16xf32>
    %337 = arith.mulf %336, %335 : vector<8x16xf32>
    %338 = arith.addf %314, %337 : vector<8x16xf32>
    %339 = arith.truncf %338 : vector<8x16xf32> to vector<8x16xbf16>
    %cst_117 = arith.constant dense<0.000000e+00> : vector<8x16xf32>
    %340 = tpu.matmul %1, %339, %cst_117 {dimension_numbers = #tpu.dot_dimension_numbers<[1], [0], [0], [1], [0, 0, 1, 1], [], []>} : vector<8x8xbf16>, vector<8x16xbf16>, vector<8x16xf32> -> vector<8x16xf32>
    %341 = arith.truncf %340 : vector<8x16xf32> to vector<8x16xbf16>
    %cst_118 = arith.constant dense<0.000000e+00> : vector<8x32xf32>
    %342 = tpu.matmul %341, %31, %cst_118 {dimension_numbers = #tpu.dot_dimension_numbers<[1], [0], [0], [1], [0, 0, 1, 1], [], []>} : vector<8x16xbf16>, vector<16x32xbf16>, vector<8x32xf32> -> vector<8x32xf32>
    %343 = arith.addf %342, %36 : vector<8x32xf32>
    %344 = math.tanh %343 : vector<8x32xf32>
    %345 = arith.truncf %344 : vector<8x32xf32> to vector<8x32xbf16>
    %cst_119 = arith.constant dense<0.000000e+00> : vector<8x16xf32>
    %346 = tpu.matmul %345, %33, %cst_119 {dimension_numbers = #tpu.dot_dimension_numbers<[1], [0], [0], [1], [0, 0, 1, 1], [], []>} : vector<8x32xbf16>, vector<32x16xbf16>, vector<8x16xf32> -> vector<8x16xf32>
    %347 = arith.addf %346, %39 : vector<8x16xf32>
    %cst_120 = arith.constant 0.142857194 : f32
    %348 = vector.broadcast %cst_120 : f32 to vector<8x16xf32>
    %349 = arith.mulf %348, %347 : vector<8x16xf32>
    %350 = arith.addf %314, %349 : vector<8x16xf32>
    %351 = arith.truncf %350 : vector<8x16xf32> to vector<8x16xbf16>
    %cst_121 = arith.constant dense<0.000000e+00> : vector<8x16xf32>
    %352 = tpu.matmul %1, %351, %cst_121 {dimension_numbers = #tpu.dot_dimension_numbers<[1], [0], [0], [1], [0, 0, 1, 1], [], []>} : vector<8x8xbf16>, vector<8x16xbf16>, vector<8x16xf32> -> vector<8x16xf32>
    %353 = arith.truncf %352 : vector<8x16xf32> to vector<8x16xbf16>
    %cst_122 = arith.constant dense<0.000000e+00> : vector<8x32xf32>
    %354 = tpu.matmul %353, %31, %cst_122 {dimension_numbers = #tpu.dot_dimension_numbers<[1], [0], [0], [1], [0, 0, 1, 1], [], []>} : vector<8x16xbf16>, vector<16x32xbf16>, vector<8x32xf32> -> vector<8x32xf32>
    %355 = arith.addf %354, %36 : vector<8x32xf32>
    %356 = math.tanh %355 : vector<8x32xf32>
    %357 = arith.truncf %356 : vector<8x32xf32> to vector<8x32xbf16>
    %cst_123 = arith.constant dense<0.000000e+00> : vector<8x16xf32>
    %358 = tpu.matmul %357, %33, %cst_123 {dimension_numbers = #tpu.dot_dimension_numbers<[1], [0], [0], [1], [0, 0, 1, 1], [], []>} : vector<8x32xbf16>, vector<32x16xbf16>, vector<8x16xf32> -> vector<8x16xf32>
    %359 = arith.addf %358, %39 : vector<8x16xf32>
    %cst_124 = arith.constant 2.000000e+00 : f32
    %360 = vector.broadcast %cst_124 : f32 to vector<8x16xf32>
    %361 = arith.mulf %360, %335 : vector<8x16xf32>
    %362 = arith.addf %323, %361 : vector<8x16xf32>
    %cst_125 = arith.constant 2.000000e+00 : f32
    %363 = vector.broadcast %cst_125 : f32 to vector<8x16xf32>
    %364 = arith.mulf %363, %347 : vector<8x16xf32>
    %365 = arith.addf %362, %364 : vector<8x16xf32>
    %366 = arith.addf %365, %359 : vector<8x16xf32>
    %cst_126 = arith.constant 0.0238095317 : f32
    %367 = vector.broadcast %cst_126 : f32 to vector<8x16xf32>
    %368 = arith.mulf %367, %366 : vector<8x16xf32>
    %369 = arith.addf %314, %368 : vector<8x16xf32>
    %370 = arith.truncf %369 : vector<8x16xf32> to vector<8x16xbf16>
    %cst_127 = arith.constant dense<0.000000e+00> : vector<8x16xf32>
    %371 = tpu.matmul %1, %370, %cst_127 {dimension_numbers = #tpu.dot_dimension_numbers<[1], [0], [0], [1], [0, 0, 1, 1], [], []>} : vector<8x8xbf16>, vector<8x16xbf16>, vector<8x16xf32> -> vector<8x16xf32>
    %372 = arith.truncf %371 : vector<8x16xf32> to vector<8x16xbf16>
    %cst_128 = arith.constant dense<0.000000e+00> : vector<8x32xf32>
    %373 = tpu.matmul %372, %31, %cst_128 {dimension_numbers = #tpu.dot_dimension_numbers<[1], [0], [0], [1], [0, 0, 1, 1], [], []>} : vector<8x16xbf16>, vector<16x32xbf16>, vector<8x32xf32> -> vector<8x32xf32>
    %374 = arith.addf %373, %36 : vector<8x32xf32>
    %375 = math.tanh %374 : vector<8x32xf32>
    %376 = arith.truncf %375 : vector<8x32xf32> to vector<8x32xbf16>
    %cst_129 = arith.constant dense<0.000000e+00> : vector<8x16xf32>
    %377 = tpu.matmul %376, %33, %cst_129 {dimension_numbers = #tpu.dot_dimension_numbers<[1], [0], [0], [1], [0, 0, 1, 1], [], []>} : vector<8x32xbf16>, vector<32x16xbf16>, vector<8x16xf32> -> vector<8x16xf32>
    %378 = arith.addf %377, %39 : vector<8x16xf32>
    %cst_130 = arith.constant 0.0714285373 : f32
    %379 = vector.broadcast %cst_130 : f32 to vector<8x16xf32>
    %380 = arith.mulf %379, %378 : vector<8x16xf32>
    %381 = arith.addf %369, %380 : vector<8x16xf32>
    %382 = arith.truncf %381 : vector<8x16xf32> to vector<8x16xbf16>
    %cst_131 = arith.constant dense<0.000000e+00> : vector<8x16xf32>
    %383 = tpu.matmul %1, %382, %cst_131 {dimension_numbers = #tpu.dot_dimension_numbers<[1], [0], [0], [1], [0, 0, 1, 1], [], []>} : vector<8x8xbf16>, vector<8x16xbf16>, vector<8x16xf32> -> vector<8x16xf32>
    %384 = arith.truncf %383 : vector<8x16xf32> to vector<8x16xbf16>
    %cst_132 = arith.constant dense<0.000000e+00> : vector<8x32xf32>
    %385 = tpu.matmul %384, %31, %cst_132 {dimension_numbers = #tpu.dot_dimension_numbers<[1], [0], [0], [1], [0, 0, 1, 1], [], []>} : vector<8x16xbf16>, vector<16x32xbf16>, vector<8x32xf32> -> vector<8x32xf32>
    %386 = arith.addf %385, %36 : vector<8x32xf32>
    %387 = math.tanh %386 : vector<8x32xf32>
    %388 = arith.truncf %387 : vector<8x32xf32> to vector<8x32xbf16>
    %cst_133 = arith.constant dense<0.000000e+00> : vector<8x16xf32>
    %389 = tpu.matmul %388, %33, %cst_133 {dimension_numbers = #tpu.dot_dimension_numbers<[1], [0], [0], [1], [0, 0, 1, 1], [], []>} : vector<8x32xbf16>, vector<32x16xbf16>, vector<8x16xf32> -> vector<8x16xf32>
    %390 = arith.addf %389, %39 : vector<8x16xf32>
    %cst_134 = arith.constant 0.0714285373 : f32
    %391 = vector.broadcast %cst_134 : f32 to vector<8x16xf32>
    %392 = arith.mulf %391, %390 : vector<8x16xf32>
    %393 = arith.addf %369, %392 : vector<8x16xf32>
    %394 = arith.truncf %393 : vector<8x16xf32> to vector<8x16xbf16>
    %cst_135 = arith.constant dense<0.000000e+00> : vector<8x16xf32>
    %395 = tpu.matmul %1, %394, %cst_135 {dimension_numbers = #tpu.dot_dimension_numbers<[1], [0], [0], [1], [0, 0, 1, 1], [], []>} : vector<8x8xbf16>, vector<8x16xbf16>, vector<8x16xf32> -> vector<8x16xf32>
    %396 = arith.truncf %395 : vector<8x16xf32> to vector<8x16xbf16>
    %cst_136 = arith.constant dense<0.000000e+00> : vector<8x32xf32>
    %397 = tpu.matmul %396, %31, %cst_136 {dimension_numbers = #tpu.dot_dimension_numbers<[1], [0], [0], [1], [0, 0, 1, 1], [], []>} : vector<8x16xbf16>, vector<16x32xbf16>, vector<8x32xf32> -> vector<8x32xf32>
    %398 = arith.addf %397, %36 : vector<8x32xf32>
    %399 = math.tanh %398 : vector<8x32xf32>
    %400 = arith.truncf %399 : vector<8x32xf32> to vector<8x32xbf16>
    %cst_137 = arith.constant dense<0.000000e+00> : vector<8x16xf32>
    %401 = tpu.matmul %400, %33, %cst_137 {dimension_numbers = #tpu.dot_dimension_numbers<[1], [0], [0], [1], [0, 0, 1, 1], [], []>} : vector<8x32xbf16>, vector<32x16xbf16>, vector<8x16xf32> -> vector<8x16xf32>
    %402 = arith.addf %401, %39 : vector<8x16xf32>
    %cst_138 = arith.constant 0.142857075 : f32
    %403 = vector.broadcast %cst_138 : f32 to vector<8x16xf32>
    %404 = arith.mulf %403, %402 : vector<8x16xf32>
    %405 = arith.addf %369, %404 : vector<8x16xf32>
    %406 = arith.truncf %405 : vector<8x16xf32> to vector<8x16xbf16>
    %cst_139 = arith.constant dense<0.000000e+00> : vector<8x16xf32>
    %407 = tpu.matmul %1, %406, %cst_139 {dimension_numbers = #tpu.dot_dimension_numbers<[1], [0], [0], [1], [0, 0, 1, 1], [], []>} : vector<8x8xbf16>, vector<8x16xbf16>, vector<8x16xf32> -> vector<8x16xf32>
    %408 = arith.truncf %407 : vector<8x16xf32> to vector<8x16xbf16>
    %cst_140 = arith.constant dense<0.000000e+00> : vector<8x32xf32>
    %409 = tpu.matmul %408, %31, %cst_140 {dimension_numbers = #tpu.dot_dimension_numbers<[1], [0], [0], [1], [0, 0, 1, 1], [], []>} : vector<8x16xbf16>, vector<16x32xbf16>, vector<8x32xf32> -> vector<8x32xf32>
    %410 = arith.addf %409, %36 : vector<8x32xf32>
    %411 = math.tanh %410 : vector<8x32xf32>
    %412 = arith.truncf %411 : vector<8x32xf32> to vector<8x32xbf16>
    %cst_141 = arith.constant dense<0.000000e+00> : vector<8x16xf32>
    %413 = tpu.matmul %412, %33, %cst_141 {dimension_numbers = #tpu.dot_dimension_numbers<[1], [0], [0], [1], [0, 0, 1, 1], [], []>} : vector<8x32xbf16>, vector<32x16xbf16>, vector<8x16xf32> -> vector<8x16xf32>
    %414 = arith.addf %413, %39 : vector<8x16xf32>
    %cst_142 = arith.constant 2.000000e+00 : f32
    %415 = vector.broadcast %cst_142 : f32 to vector<8x16xf32>
    %416 = arith.mulf %415, %390 : vector<8x16xf32>
    %417 = arith.addf %378, %416 : vector<8x16xf32>
    %cst_143 = arith.constant 2.000000e+00 : f32
    %418 = vector.broadcast %cst_143 : f32 to vector<8x16xf32>
    %419 = arith.mulf %418, %402 : vector<8x16xf32>
    %420 = arith.addf %417, %419 : vector<8x16xf32>
    %421 = arith.addf %420, %414 : vector<8x16xf32>
    %cst_144 = arith.constant 0.0238095131 : f32
    %422 = vector.broadcast %cst_144 : f32 to vector<8x16xf32>
    %423 = arith.mulf %422, %421 : vector<8x16xf32>
    %424 = arith.addf %369, %423 : vector<8x16xf32>
    %425 = tpu.concatenate %29, %94, %149, %204, %259, %314, %369, %424 in 0 : vector<8x16xf32>, vector<8x16xf32>, vector<8x16xf32>, vector<8x16xf32>, vector<8x16xf32>, vector<8x16xf32>, vector<8x16xf32>, vector<8x16xf32> -> vector<64x16xf32>
    %c240 = arith.constant 240 : index
    %c0_145 = arith.constant 0 : index
    %426 = vector.load %arg2[%c240, %c0_145] : memref<320x128xf32, #tpu.memory_space<vmem>>, vector<1x64xf32>
    %427 = vector.shape_cast %426 : vector<1x64xf32> to vector<1x64xf32>
    %428 = vector.broadcast %427 : vector<1x64xf32> to vector<64x64xf32>
    %c312 = arith.constant 312 : index
    %c0_146 = arith.constant 0 : index
    %429 = vector.load %arg2[%c312, %c0_146] : memref<320x128xf32, #tpu.memory_space<vmem>>, vector<1x4xf32>
    %430 = vector.shape_cast %429 : vector<1x4xf32> to vector<1x4xf32>
    %431 = vector.broadcast %430 : vector<1x4xf32> to vector<64x4xf32>
    %432 = arith.truncf %425 : vector<64x16xf32> to vector<64x16xbf16>
    %c224 = arith.constant 224 : index
    %c0_147 = arith.constant 0 : index
    %433 = vector.load %arg2[%c224, %c0_147] : memref<320x128xf32, #tpu.memory_space<vmem>>, vector<16x64xf32>
    %434 = arith.truncf %433 : vector<16x64xf32> to vector<16x64xbf16>
    %cst_148 = arith.constant dense<0.000000e+00> : vector<64x64xf32>
    %435 = tpu.matmul %432, %434, %cst_148 {dimension_numbers = #tpu.dot_dimension_numbers<[1], [0], [0], [1], [0, 0, 1, 1], [], []>} : vector<64x16xbf16>, vector<16x64xbf16>, vector<64x64xf32> -> vector<64x64xf32>
    %436 = arith.addf %435, %428 : vector<64x64xf32>
    %cst_149 = arith.constant 0.000000e+00 : f32
    %437 = vector.broadcast %cst_149 : f32 to vector<64x64xf32>
    %438 = arith.maximumf %436, %437 : vector<64x64xf32>
    %439 = arith.truncf %438 : vector<64x64xf32> to vector<64x64xbf16>
    %c248 = arith.constant 248 : index
    %c0_150 = arith.constant 0 : index
    %440 = vector.load %arg2[%c248, %c0_150] : memref<320x128xf32, #tpu.memory_space<vmem>>, vector<64x4xf32>
    %441 = arith.truncf %440 : vector<64x4xf32> to vector<64x4xbf16>
    %cst_151 = arith.constant dense<0.000000e+00> : vector<64x4xf32>
    %442 = tpu.matmul %439, %441, %cst_151 {dimension_numbers = #tpu.dot_dimension_numbers<[1], [0], [0], [1], [0, 0, 1, 1], [], []>} : vector<64x64xbf16>, vector<64x4xbf16>, vector<64x4xf32> -> vector<64x4xf32>
    %443 = arith.addf %442, %431 : vector<64x4xf32>
    %c0_152 = arith.constant 0 : index
    %c0_153 = arith.constant 0 : index
    %444 = vector.load %arg3[%c0_152, %c0_153] : memref<64x4xf32, #tpu.memory_space<vmem>>, vector<64x4xf32>
    tpu.vector_store %arg3[%c0_152, %c0_153], %443 {strides = array<i32>} : memref<64x4xf32, #tpu.memory_space<vmem>>, vector<64x4xf32>,
    return
  }
}

</mosaic_0001>

<bundles_post_ra>
// kernel: tpu_custom_call.1
= control target key start
LH: loop header
LB: loop body
LE: loop exit
PB: predicated region body
PF: predicated region fallthrough
CT: control target
= control target key end

     0   :  { %8 = vsyncpa [#allocation3], 0  ;;  %s5342_s12 = smov [#allocation2]   ;;  %s6128_s0 = inlined_call_operand.vmem [shape: f32[8,4], index: 0, kind: input, shape index: {}]   ;;  %s6129_s1 = inlined_call_operand.vmem [shape: f32[8,8], index: 1, kind: input, shape index: {}]   ;;  %s6130_s2 = inlined_call_operand.hbm [shape: f32[320,128], index: 2, kind: input, shape index: {}]   ;;  %s6131_s3 = inlined_call_operand.vmem [shape: f32[64,4], index: 3, kind: output, shape index: {}]  }
   0x1   :  { %s18_s13 = sshll.u32 %s5342_s12, 4  ;;  %s5318_s16 = scalar_lea.hbm %s6130_s2, 5120  ;;  %s19_s13 = int_to_ptr.vmem [resolvable:$true] %s18_s13 }
   0x2   :  { %p5319_p0 = scmp.ne.s32.totalorder %s6130_s2, %s5318_s16  ;;  %p5322_p1 = scmp.lt.u32.totalorder %s5318_s16, %s6130_s2 }
   0x4   :  { %p5324_p2 = pnand %p5322_p1, %p5319_p0 }
   0x6   :  { %5327 = shalt.err (!%p5324_p2)
}
   0x7   :  { %s5328_s21 = scalar_lea.vmem %s19_s13, 5120  ;;  %p5333_p4 = scmp.lt.s32.totalorder %s19_s13, %s19_s13 }
   0x8   :  { %p5329_p3 = scmp.ne.s32.totalorder %s19_s13, %s5328_s21  ;;  %p5334_p5 = scmp.lt.s32.totalorder %s5328_s21, %s5328_s21 }
   0xa   :  { %p5335_p6 = por %p5334_p5, %p5333_p4 }
   0xc   :  { %p5336_p7 = pnand %p5335_p6, %p5329_p3 }
   0xe   :  { %5339 = shalt.err (!%p5336_p7)
}
   0xf   :  { %s5343_s22 = smov 128   ;;  %s5344_s23 = smov 8  }
  0x10   :  { %24 = dma.hbm_to_vmem [thread:$0]  %s6130_s2, 5120, %s19_s13, [#allocation3], %s5343_s22, %s5343_s22, %s5344_s23  }
  0x11   :  { %5340 = dma.done.wait [#allocation3], 5120  }
  0x12   :  { %5341 = vsyncadd [#allocation3], 4294962176  ;;  %v5345_v0 = vmov 0.0   ;;  %vm5346_vm0 = vmmov 0   ;;  %v33_v1 = vld [vmem:[#allocation2] sm:$0xf] }
  0x13   :  { %4632 = vmatprep.subr.bf16.mxu0 %v5345_v0  ;;  %4634 = vmatprep.mubr.msk.bf16.mxu0 %vm5346_vm0, %v5345_v0  ;;  %vm44_vm1 = vcmask 1041408   ;;  %v31_v2 = vld [vmem:[%s6128_s0] sm:$0xff]  ;;  %v34_v3 = vpack.c.bf16 %v33_v1, %v33_v1  ;;  %vm40_vm2 = vcmask 31744   ;;  %v139_v6 = vld [vmem:[#allocation2 + $0x10] sm:$0xff]  ;;  %v140_v7 = vld [vmem:[#allocation2 + $0x18] sm:$0xff]  ;;  %vm94_vm3 = vcmask 1043456  }
  0x14   :  { %4638 = vmatprep.subr.bf16.mxu1 %v5345_v0  ;;  %4640 = vmatprep.mubr.msk.bf16.mxu1 %vm5346_vm0, %v5345_v0  ;;  %v32_v5 = vpack.c.bf16 %v31_v2, %v31_v2  ;;  %v141_v8 = vld [vmem:[#allocation2 + $0x20] sm:$0xff]  ;;  %v147_v9 = vpack.c.bf16 %v140_v7, %v139_v6  ;;  %v142_v10 = vld [vmem:[#allocation2 + $0x28] sm:$0xff]  ;;  %v143_v12 = vld [vmem:[#allocation2 + $0x30] sm:$0xff]  ;;  %vm90_vm4 = vcmask 64512   ;;  %vm156_vm5 = vcmask 523264  }
  0x15   :  { %v46_v4 = vsel %vm44_vm1, %v34_v3, 0  ;;  %v148_v11 = vpack.c.bf16 %v142_v10, %v141_v8  ;;  %v144_v13 = vld [vmem:[#allocation2 + $0x38] sm:$0xff]  ;;  %v4306_v15 = vld [vmem:[#allocation2 + $0x8] ss:$0 sm:$0xff]  ;;  %v29_v22 = vld [vmem:[%s6129_s1] sm:$0xff]  ;;  %vm326_vm6 = vcmask 130048  }
  0x16   :  { %4633 = vmatpush3.bf16.msra.mxu0 %v46_v4  ;;  %v149_v14 = vpack.c.bf16 %v144_v13, %v143_v12  ;;  %v5399_v25 = vpack.c.bf16 %v29_v22, %v29_v22  ;;  %v145_v26 = vld [vmem:[#allocation2 + $0x40] sm:$0xff]  ;;  %v146_v27 = vld [vmem:[#allocation2 + $0x48] sm:$0xff]  ;;  %v202_v29 = vld [vmem:[#allocation2 + $0x58] sm:$0xff]  ;;  %vm372_vm7 = vcmask 261120  }
  0x17   :  { %4644 = vmatprep.subr.bf16.mxu0 %v5345_v0  ;;  %v150_v28 = vpack.c.bf16 %v146_v27, %v145_v26  ;;  %v203_v30 = vld [vmem:[#allocation2 + $0x60] sm:$0xff]  ;;  %v204_v31 = vld [vmem:[#allocation2 + $0x68] sm:$0xff]  ;;  %v205_v33 = vld [vmem:[#allocation2 + $0x70] sm:$0xff] }
  0x18   :  { %v210_v32 = vpack.c.bf16 %v203_v30, %v202_v29  ;;  %v211_v34 = vpack.c.bf16 %v205_v33, %v204_v31  ;;  %v206_v40 = vld [vmem:[#allocation2 + $0x78] sm:$0xff]  ;;  %v207_v41 = vld [vmem:[#allocation2 + $0x80] sm:$0xff]  ;;  %v208_v43 = vld [vmem:[#allocation2 + $0x88] sm:$0xff] }
  0x19   :  { %4635 = vmatmul.mubr.msk.bf16.vlgmr.msra.gmra.mrb[0].mxu0 %vm40_vm2, %v32_v5  ;;  %v212_v42 = vpack.c.bf16 %v207_v41, %v206_v40  ;;  %v209_v44 = vld [vmem:[#allocation2 + $0x90] sm:$0xff]  ;;  %v4311_v54 = vld [vmem:[#allocation2 + $0x98] ss:$0 sm:$0xff]  ;;  %v262_v62 = vld [vmem:[#allocation2 + $0xa0] sm:$0xff] }
  0x1a   :  { %4652 = vmatprep.mubr.msk.bf16.mxu0 %vm5346_vm0, %v5345_v0  ;;  %4645 = vmatpush3.bf16.msra.mxu0 %v147_v9  ;;  %v213_v45 = vpack.c.bf16 %v209_v44, %v208_v43  ;;  %v4309_v46 = vld [vmem:[#allocation2 + $0x50] ss:$0 sm:$0xff]  ;;  %v263_v63 = vld [vmem:[#allocation2 + $0xa8] sm:$0xff]  ;;  %v265_v7 = vld [vmem:[#allocation2 + $0xb8] sm:$0xff] }
  0x1b   :  { %4646 = vmatprep.subr.bf16.mxu0 %v5345_v0  ;;  %v5427_v1 = vpack.c.bf16 %v263_v63, %v262_v62  ;;  %v266_v8 = vld [vmem:[#allocation2 + $0xc0] sm:$0xff]  ;;  %v267_v10 = vld [vmem:[#allocation2 + $0xc8] sm:$0xff]  ;;  %v5442_v13 = vld [vmem:[#allocation2 + $0xb0] ss:$0 sm:$0xff] }
  0x1c   :  { %v5434_v9 = vpack.c.bf16 %v266_v8, %v265_v7 }
  0x1e   :  { %4647 = vmatpush3.bf16.msra.mxu0 %v148_v11  ;;  %v268_v11 = vld [vmem:[#allocation2 + $0xd0] sm:$0xff] }
  0x1f   :  { %4648 = vmatprep.subr.bf16.mxu0 %v5345_v0  ;;  %v5438_v12 = vpack.c.bf16 %v268_v11, %v267_v10 }
  0x22   :  { %4649 = vmatpush3.bf16.msra.mxu0 %v149_v14 }
  0x23   :  { %4650 = vmatprep.subr.bf16.mxu0 %v5345_v0 }
  0x26   :  { %4651 = vmatpush3.bf16.msra.mxu0 %v150_v28 }
  0x27   :  { %4668 = vmatprep.subr.bf16.mxu0 %v5345_v0 }
  0xec   :  { %v82_v16 = vpop.f32.mrb[0].mxu0 }
  0xed   :  { %v83_v17 = vadd.f32 %v4306_v15, %v82_v16  ;;  %v4636_v18 = vpop.f32.mrb[1].mxu0 }
  0xee   :  { %v85_v19 = vpop.f32.mrb[2].mxu0 }
  0xef   :  { %v88_v20 = vmax.f32 %v83_v17, 0.0  ;;  %v4637_v21 = vpop.f32.mrb[3].mxu0 }
  0xf0   :  { %v5450_v21 = vld [vmem:[#allocation2 + $0xd8] ss:$0 sm:$0xff] }
  0xf1   :  { %v89_v23 = vpack.c.bf16 %v88_v20, %v88_v20 }
  0xf3   :  { %v96_v24 = vsel %vm94_vm3, %v89_v23, 0 }
  0xf4   :  { %4639 = vmatpush3.bf16.msra.mxu1 %v96_v24 }
  0xf5   :  { %4656 = vmatprep.subr.bf16.mxu1 %v5345_v0 }
  0xf7   :  { %4641 = vmatmul.mubr.msk.bf16.vlgmr.msra.gmra.mrb[0].mxu1 %vm90_vm4, %v5399_v25 }
  0xf8   :  { %4664 = vmatprep.mubr.msk.bf16.mxu1 %vm5346_vm0, %v5345_v0  ;;  %4657 = vmatpush3.bf16.msra.mxu1 %v210_v32 }
  0xf9   :  { %4658 = vmatprep.subr.bf16.mxu1 %v5345_v0 }
  0xfc   :  { %4659 = vmatpush3.bf16.msra.mxu1 %v211_v34 }
  0xfd   :  { %4660 = vmatprep.subr.bf16.mxu1 %v5345_v0 }
 0x100   :  { %4661 = vmatpush3.bf16.msra.mxu1 %v212_v42 }
 0x101   :  { %4662 = vmatprep.subr.bf16.mxu1 %v5345_v0 }
 0x104   :  { %4663 = vmatpush3.bf16.msra.mxu1 %v213_v45 }
 0x105   :  { %4674 = vmatprep.subr.bf16.mxu1 %v5345_v0 }
 0x1ca   :  { %v132_v35 = vpop.f32.mrb[0].mxu1 }
 0x1cb   :  { %v138_v36 = vpack.c.bf16 %v132_v35, %v132_v35  ;;  %v4642_v37 = vpop.f32.mrb[1].mxu1 }
 0x1cc   :  { %v135_v38 = vpop.f32.mrb[2].mxu1 }
 0x1cd   :  { %v4643_v39 = vpop.f32.mrb[3].mxu1  ;;  %4653 = vmatmul.mubr.msk.bf16.vlgmr.msra.gmra.mrb[4].mxu0 %vm156_vm5, %v138_v36 }
 0x1ce   :  { %4670 = vmatprep.mubr.msk.bf16.mxu0 %vm5346_vm0, %v5345_v0 }
 0x2a0   :  { %v194_v47 = vpop.f32.mrb[4].mxu0 }
 0x2a1   :  { %v195_v48 = vadd.f32 %v4309_v46, %v194_v47  ;;  %v4654_v49 = vpop.f32.mrb[5].mxu0 }
 0x2a2   :  { %v197_v50 = vpop.f32.mrb[6].mxu0 }
 0x2a3   :  { %v200_v51 = vmax.f32 %v195_v48, 0.0  ;;  %v4655_v52 = vpop.f32.mrb[7].mxu0 }
 0x2a5   :  { %v201_v53 = vpack.c.bf16 %v200_v51, %v200_v51 }
 0x2a7   :  { %4665 = vmatmul.mubr.msk.bf16.vlgmr.msra.gmra.mrb[4].mxu1 %vm156_vm5, %v201_v53 }
 0x2a8   :  { %4676 = vmatprep.mubr.msk.bf16.mxu1 %vm5346_vm0, %v5345_v0  ;;  %4675 = vmatpush3.bf16.msra.mxu1 %v5427_v1 }
 0x2a9   :  { %4688 = vmatprep.subr.bf16.mxu1 %v5345_v0 }
 0x37a   :  { %v256_v55 = vpop.f32.mrb[4].mxu1 }
 0x37b   :  { %v5417_v56 = vadd.f32 %v4311_v54, %v256_v55  ;;  %v4666_v57 = vpop.f32.mrb[5].mxu1 }
 0x37c   :  { %v259_v58 = vpop.f32.mrb[6].mxu1 }
 0x37d   :  { %v4667_v59 = vpop.f32.mrb[7].mxu1  ;;  %v281_v60 = vpack.c.bf16 %v5417_v56, %v5417_v56 }
 0x37f   :  { %v283_v61 = vsel %vm94_vm3, %v281_v60, 0 }
 0x380   :  { %4669 = vmatpush3.bf16.msra.mxu0 %v283_v61 }
 0x381   :  { %4680 = vmatprep.subr.bf16.mxu0 %v5345_v0 }
 0x383   :  { %4671 = vmatmul.mubr.msk.bf16.vlgmr.msra.gmra.mrb[8].mxu0 %vm90_vm4, %v5399_v25 }
 0x384   :  { %4684 = vmatprep.mubr.msk.bf16.mxu0 %vm5346_vm0, %v5345_v0  ;;  %4681 = vmatpush3.bf16.msra.mxu0 %v5434_v9 }
 0x385   :  { %4682 = vmatprep.subr.bf16.mxu0 %v5345_v0 }
 0x388   :  { %4683 = vmatpush3.bf16.msra.mxu0 %v5438_v12 }
 0x389   :  { %4694 = vmatprep.subr.bf16.mxu0 %v5345_v0 }
 0x456   :  { %v319_v2 = vpop.f32.mrb[8].mxu0 }
 0x457   :  { %v325_v3 = vpack.c.bf16 %v319_v2, %v319_v2  ;;  %v4672_v4 = vpop.f32.mrb[9].mxu0 }
 0x458   :  { %v322_v5 = vpop.f32.mrb[10].mxu0 }
 0x459   :  { %v4673_v6 = vpop.f32.mrb[11].mxu0  ;;  %4677 = vmatmul.mubr.msk.bf16.vlgmr.msra.gmra.mrb[8].mxu1 %vm326_vm6, %v325_v3 }
 0x45a   :  { %4690 = vmatprep.mubr.msk.bf16.mxu1 %vm5346_vm0, %v5345_v0 }
 0x52c   :  { %v364_v14 = vpop.f32.mrb[8].mxu1 }
 0x52d   :  { %v365_v15 = vadd.f32 %v5442_v13, %v364_v14  ;;  %v4678_v16 = vpop.f32.mrb[9].mxu1 }
 0x52e   :  { %v367_v17 = vpop.f32.mrb[10].mxu1 }
 0x52f   :  { %5259 = vtanh.f32 %v365_v15  ;;  %v4679_v18 = vpop.f32.mrb[11].mxu1 }
 0x539   :  { %v5260_v19 = vpop.eup %5259 }
 0x53a   :  { %v371_v20 = vpack.c.bf16 %v5260_v19, %v5260_v19 }
 0x53c   :  { %4685 = vmatmul.mubr.msk.bf16.vlgmr.msra.gmra.mrb[12].mxu0 %vm372_vm7, %v371_v20 }
 0x53d   :  { %4695 = vmatpush3.bf16.msra.mxu0 %v5427_v1  ;;  %4696 = vmatprep.mubr.msk.bf16.mxu0 %vm5346_vm0, %v5345_v0 }
 0x53e   :  { %4708 = vmatprep.subr.bf16.mxu0 %v5345_v0 }
 0x60f   :  { %v410_v22 = vpop.f32.mrb[12].mxu0 }
 0x610   :  { %v5453_v23 = vadd.f32 %v5450_v21, %v410_v22  ;;  %v4686_v24 = vpop.f32.mrb[13].mxu0 }
 0x611   :  { %v413_v26 = vpop.f32.mrb[14].mxu0 }
 0x612   :  { %v416_v27 = vmul.f32 0.071428575, %v5453_v23  ;;  %v4687_v28 = vpop.f32.mrb[15].mxu0 }
 0x614   :  { %v417_v29 = vadd.f32 %v416_v27, %v5417_v56 }
 0x616   :  { %v418_v30 = vpack.c.bf16 %v417_v29, %v417_v29 }
 0x618   :  { %v420_v31 = vsel %vm94_vm3, %v418_v30, 0 }
 0x619   :  { %4689 = vmatpush3.bf16.msra.mxu1 %v420_v31 }
 0x61a   :  { %4700 = vmatprep.subr.bf16.mxu1 %v5345_v0 }
 0x61c   :  { %4691 = vmatmul.mubr.msk.bf16.vlgmr.msra.gmra.mrb[12].mxu1 %vm90_vm4, %v5399_v25 }
 0x61d   :  { %4701 = vmatpush3.bf16.msra.mxu1 %v5434_v9  ;;  %4704 = vmatprep.mubr.msk.bf16.mxu1 %vm5346_vm0, %v5345_v0 }
 0x61e   :  { %4702 = vmatprep.subr.bf16.mxu1 %v5345_v0 }
 0x621   :  { %4703 = vmatpush3.bf16.msra.mxu1 %v5438_v12 }
 0x622   :  { %4714 = vmatprep.subr.bf16.mxu1 %v5345_v0 }
 0x6ef   :  { %v456_v32 = vpop.f32.mrb[12].mxu1 }
 0x6f0   :  { %v462_v33 = vpack.c.bf16 %v456_v32, %v456_v32  ;;  %v4692_v34 = vpop.f32.mrb[13].mxu1 }
 0x6f1   :  { %v459_v35 = vpop.f32.mrb[14].mxu1 }
 0x6f2   :  { %v4693_v36 = vpop.f32.mrb[15].mxu1  ;;  %4697 = vmatmul.mubr.msk.bf16.vlgmr.msra.gmra.mrb[16].mxu0 %vm326_vm6, %v462_v33 }
 0x6f3   :  { %4710 = vmatprep.mubr.msk.bf16.mxu0 %vm5346_vm0, %v5345_v0 }
 0x7c5   :  { %v500_v37 = vpop.f32.mrb[16].mxu0 }
 0x7c6   :  { %v501_v38 = vadd.f32 %v5442_v13, %v500_v37  ;;  %v4698_v39 = vpop.f32.mrb[17].mxu0 }
 0x7c7   :  { %v503_v40 = vpop.f32.mrb[18].mxu0 }
 0x7c8   :  { %5261 = vtanh.f32 %v501_v38  ;;  %v4699_v41 = vpop.f32.mrb[19].mxu0 }
 0x7d2   :  { %v5262_v42 = vpop.eup %5261 }
 0x7d3   :  { %v507_v43 = vpack.c.bf16 %v5262_v42, %v5262_v42 }
 0x7d5   :  { %4705 = vmatmul.mubr.msk.bf16.vlgmr.msra.gmra.mrb[16].mxu1 %vm372_vm7, %v507_v43 }
 0x7d6   :  { %4715 = vmatpush3.bf16.msra.mxu1 %v5427_v1  ;;  %4716 = vmatprep.mubr.msk.bf16.mxu1 %vm5346_vm0, %v5345_v0 }
 0x7d7   :  { %4728 = vmatprep.subr.bf16.mxu1 %v5345_v0 }
 0x8a8   :  { %v545_v44 = vpop.f32.mrb[16].mxu1 }
 0x8a9   :  { %v546_v45 = vadd.f32 %v5450_v21, %v545_v44  ;;  %v4706_v46 = vpop.f32.mrb[17].mxu1 }
 0x8aa   :  { %v548_v47 = vpop.f32.mrb[18].mxu1 }
 0x8ab   :  { %v551_v48 = vmul.f32 0.071428575, %v546_v45  ;;  %v4707_v49 = vpop.f32.mrb[19].mxu1  ;;  %v821_v4 = vmul.f32 2.0, %v546_v45 }
 0x8ad   :  { %v552_v50 = vadd.f32 %v551_v48, %v5417_v56  ;;  %v822_v10 = vadd.f32 %v821_v4, %v5453_v23 }
 0x8af   :  { %v553_v51 = vpack.c.bf16 %v552_v50, %v552_v50 }
 0x8b1   :  { %v555_v52 = vsel %vm94_vm3, %v553_v51, 0 }
 0x8b2   :  { %4709 = vmatpush3.bf16.msra.mxu0 %v555_v52 }
 0x8b3   :  { %4720 = vmatprep.subr.bf16.mxu0 %v5345_v0 }
 0x8b5   :  { %4711 = vmatmul.mubr.msk.bf16.vlgmr.msra.gmra.mrb[20].mxu0 %vm90_vm4, %v5399_v25 }
 0x8b6   :  { %4721 = vmatpush3.bf16.msra.mxu0 %v5434_v9  ;;  %4724 = vmatprep.mubr.msk.bf16.mxu0 %vm5346_vm0, %v5345_v0 }
 0x8b7   :  { %4722 = vmatprep.subr.bf16.mxu0 %v5345_v0 }
 0x8ba   :  { %4723 = vmatpush3.bf16.msra.mxu0 %v5438_v12 }
 0x8bb   :  { %4734 = vmatprep.subr.bf16.mxu0 %v5345_v0 }
 0x988   :  { %v591_v53 = vpop.f32.mrb[20].mxu0 }
 0x989   :  { %v597_v54 = vpack.c.bf16 %v591_v53, %v591_v53  ;;  %v4712_v55 = vpop.f32.mrb[21].mxu0 }
 0x98a   :  { %v594_v57 = vpop.f32.mrb[22].mxu0 }
 0x98b   :  { %v4713_v58 = vpop.f32.mrb[23].mxu0  ;;  %4717 = vmatmul.mubr.msk.bf16.vlgmr.msra.gmra.mrb[20].mxu1 %vm326_vm6, %v597_v54 }
 0x98c   :  { %4730 = vmatprep.mubr.msk.bf16.mxu1 %vm5346_vm0, %v5345_v0 }
 0xa5e   :  { %v635_v59 = vpop.f32.mrb[20].mxu1 }
 0xa5f   :  { %v636_v60 = vadd.f32 %v5442_v13, %v635_v59  ;;  %v4718_v61 = vpop.f32.mrb[21].mxu1 }
 0xa60   :  { %v638_v62 = vpop.f32.mrb[22].mxu1 }
 0xa61   :  { %5263 = vtanh.f32 %v636_v60  ;;  %v4719_v63 = vpop.f32.mrb[23].mxu1 }
 0xa6b   :  { %v5264_v2 = vpop.eup %5263 }
 0xa6c   :  { %v642_v3 = vpack.c.bf16 %v5264_v2, %v5264_v2 }
 0xa6e   :  { %4725 = vmatmul.mubr.msk.bf16.vlgmr.msra.gmra.mrb[24].mxu0 %vm372_vm7, %v642_v3 }
 0xa6f   :  { %4735 = vmatpush3.bf16.msra.mxu0 %v5427_v1  ;;  %4736 = vmatprep.mubr.msk.bf16.mxu0 %vm5346_vm0, %v5345_v0 }
 0xa70   :  { %4748 = vmatprep.subr.bf16.mxu0 %v5345_v0 }
 0xb41   :  { %v680_v5 = vpop.f32.mrb[24].mxu0 }
 0xb42   :  { %v681_v6 = vadd.f32 %v5450_v21, %v680_v5  ;;  %v4726_v7 = vpop.f32.mrb[25].mxu0 }
 0xb43   :  { %v683_v8 = vpop.f32.mrb[26].mxu0 }
 0xb44   :  { %v686_v11 = vmul.f32 0.14285715, %v681_v6  ;;  %v823_v14 = vmul.f32 2.0, %v681_v6  ;;  %v4727_v15 = vpop.f32.mrb[27].mxu0 }
 0xb46   :  { %v687_v16 = vadd.f32 %v686_v11, %v5417_v56  ;;  %v824_v17 = vadd.f32 %v823_v14, %v822_v10 }
 0xb48   :  { %v688_v18 = vpack.c.bf16 %v687_v16, %v687_v16 }
 0xb4a   :  { %v690_v19 = vsel %vm94_vm3, %v688_v18, 0 }
 0xb4b   :  { %4729 = vmatpush3.bf16.msra.mxu1 %v690_v19 }
 0xb4c   :  { %4740 = vmatprep.subr.bf16.mxu1 %v5345_v0 }
 0xb4e   :  { %4731 = vmatmul.mubr.msk.bf16.vlgmr.msra.gmra.mrb[24].mxu1 %vm90_vm4, %v5399_v25 }
 0xb4f   :  { %4741 = vmatpush3.bf16.msra.mxu1 %v5434_v9  ;;  %4744 = vmatprep.mubr.msk.bf16.mxu1 %vm5346_vm0, %v5345_v0 }
 0xb50   :  { %4742 = vmatprep.subr.bf16.mxu1 %v5345_v0 }
 0xb53   :  { %4743 = vmatpush3.bf16.msra.mxu1 %v5438_v12 }
 0xb54   :  { %4754 = vmatprep.subr.bf16.mxu1 %v5345_v0 }
 0xc21   :  { %v726_v20 = vpop.f32.mrb[24].mxu1 }
 0xc22   :  { %v732_v22 = vpack.c.bf16 %v726_v20, %v726_v20  ;;  %v4732_v23 = vpop.f32.mrb[25].mxu1 }
 0xc23   :  { %v729_v24 = vpop.f32.mrb[26].mxu1 }
 0xc24   :  { %v4733_v26 = vpop.f32.mrb[27].mxu1  ;;  %4737 = vmatmul.mubr.msk.bf16.vlgmr.msra.gmra.mrb[28].mxu0 %vm326_vm6, %v732_v22 }
 0xc25   :  { %4750 = vmatprep.mubr.msk.bf16.mxu0 %vm5346_vm0, %v5345_v0 }
 0xcf7   :  { %v770_v27 = vpop.f32.mrb[28].mxu0 }
 0xcf8   :  { %v771_v28 = vadd.f32 %v5442_v13, %v770_v27  ;;  %v4738_v29 = vpop.f32.mrb[29].mxu0 }
 0xcf9   :  { %v773_v30 = vpop.f32.mrb[30].mxu0 }
 0xcfa   :  { %5265 = vtanh.f32 %v771_v28  ;;  %v4739_v31 = vpop.f32.mrb[31].mxu0 }
 0xd04   :  { %v5266_v32 = vpop.eup %5265 }
 0xd05   :  { %v777_v33 = vpack.c.bf16 %v5266_v32, %v5266_v32 }
 0xd07   :  { %4745 = vmatmul.mubr.msk.bf16.vlgmr.msra.gmra.mrb[28].mxu1 %vm372_vm7, %v777_v33 }
 0xd08   :  { %4755 = vmatpush3.bf16.msra.mxu1 %v5427_v1  ;;  %4756 = vmatprep.mubr.msk.bf16.mxu1 %vm5346_vm0, %v5345_v0 }
 0xd09   :  { %4768 = vmatprep.subr.bf16.mxu1 %v5345_v0 }
 0xdda   :  { %v815_v34 = vpop.f32.mrb[28].mxu1 }
 0xddb   :  { %v816_v35 = vadd.f32 %v5450_v21, %v815_v34  ;;  %v4746_v36 = vpop.f32.mrb[29].mxu1 }
 0xddc   :  { %v818_v37 = vpop.f32.mrb[30].mxu1 }
 0xddd   :  { %v825_v38 = vadd.f32 %v824_v17, %v816_v35  ;;  %v4747_v39 = vpop.f32.mrb[31].mxu1 }
 0xddf   :  { %v826_v40 = vmul.f32 0.023809524, %v825_v38 }
 0xde1   :  { %v5521_v41 = vadd.f32 %v826_v40, %v5417_v56 }
 0xde3   :  { %v828_v42 = vpack.c.bf16 %v5521_v41, %v5521_v41 }
 0xde5   :  { %v830_v43 = vsel %vm94_vm3, %v828_v42, 0 }
 0xde6   :  { %4749 = vmatpush3.bf16.msra.mxu0 %v830_v43 }
 0xde7   :  { %4760 = vmatprep.subr.bf16.mxu0 %v5345_v0 }
 0xde9   :  { %4751 = vmatmul.mubr.msk.bf16.vlgmr.msra.gmra.mrb[32].mxu0 %vm90_vm4, %v5399_v25 }
 0xdea   :  { %4761 = vmatpush3.bf16.msra.mxu0 %v5434_v9  ;;  %4764 = vmatprep.mubr.msk.bf16.mxu0 %vm5346_vm0, %v5345_v0 }
 0xdeb   :  { %4762 = vmatprep.subr.bf16.mxu0 %v5345_v0 }
 0xdee   :  { %4763 = vmatpush3.bf16.msra.mxu0 %v5438_v12 }
 0xdef   :  { %4774 = vmatprep.subr.bf16.mxu0 %v5345_v0 }
 0xebc   :  { %v866_v44 = vpop.f32.mrb[32].mxu0 }
 0xebd   :  { %v872_v45 = vpack.c.bf16 %v866_v44, %v866_v44  ;;  %v4752_v46 = vpop.f32.mrb[33].mxu0 }
 0xebe   :  { %v869_v47 = vpop.f32.mrb[34].mxu0 }
 0xebf   :  { %v4753_v48 = vpop.f32.mrb[35].mxu0  ;;  %4757 = vmatmul.mubr.msk.bf16.vlgmr.msra.gmra.mrb[32].mxu1 %vm326_vm6, %v872_v45 }
 0xec0   :  { %4770 = vmatprep.mubr.msk.bf16.mxu1 %vm5346_vm0, %v5345_v0 }
 0xf92   :  { %v910_v49 = vpop.f32.mrb[32].mxu1 }
 0xf93   :  { %v911_v50 = vadd.f32 %v5442_v13, %v910_v49  ;;  %v4758_v51 = vpop.f32.mrb[33].mxu1 }
 0xf94   :  { %v913_v52 = vpop.f32.mrb[34].mxu1 }
 0xf95   :  { %5267 = vtanh.f32 %v911_v50  ;;  %v4759_v53 = vpop.f32.mrb[35].mxu1 }
 0xf9f   :  { %v5268_v54 = vpop.eup %5267 }
 0xfa0   :  { %v917_v55 = vpack.c.bf16 %v5268_v54, %v5268_v54 }
 0xfa2   :  { %4765 = vmatmul.mubr.msk.bf16.vlgmr.msra.gmra.mrb[36].mxu0 %vm372_vm7, %v917_v55 }
 0xfa3   :  { %4775 = vmatpush3.bf16.msra.mxu0 %v5427_v1  ;;  %4776 = vmatprep.mubr.msk.bf16.mxu0 %vm5346_vm0, %v5345_v0 }
 0xfa4   :  { %4788 = vmatprep.subr.bf16.mxu0 %v5345_v0 }
0x1075   :  { %v955_v57 = vpop.f32.mrb[36].mxu0 }
0x1076   :  { %v5545_v58 = vadd.f32 %v5450_v21, %v955_v57  ;;  %v4766_v59 = vpop.f32.mrb[37].mxu0 }
0x1077   :  { %v958_v60 = vpop.f32.mrb[38].mxu0 }
0x1078   :  { %v961_v61 = vmul.f32 0.071428575, %v5545_v58  ;;  %v4767_v62 = vpop.f32.mrb[39].mxu0 }
0x107a   :  { %v962_v63 = vadd.f32 %v961_v61, %v5521_v41 }
0x107c   :  { %v963_v2 = vpack.c.bf16 %v962_v63, %v962_v63 }
0x107e   :  { %v965_v3 = vsel %vm94_vm3, %v963_v2, 0 }
0x107f   :  { %4769 = vmatpush3.bf16.msra.mxu1 %v965_v3 }
0x1080   :  { %4780 = vmatprep.subr.bf16.mxu1 %v5345_v0 }
0x1082   :  { %4771 = vmatmul.mubr.msk.bf16.vlgmr.msra.gmra.mrb[36].mxu1 %vm90_vm4, %v5399_v25 }
0x1083   :  { %4781 = vmatpush3.bf16.msra.mxu1 %v5434_v9  ;;  %4784 = vmatprep.mubr.msk.bf16.mxu1 %vm5346_vm0, %v5345_v0 }
0x1084   :  { %4782 = vmatprep.subr.bf16.mxu1 %v5345_v0 }
0x1087   :  { %4783 = vmatpush3.bf16.msra.mxu1 %v5438_v12 }
0x1088   :  { %4794 = vmatprep.subr.bf16.mxu1 %v5345_v0 }
0x1155   :  { %v1001_v4 = vpop.f32.mrb[36].mxu1 }
0x1156   :  { %v1007_v5 = vpack.c.bf16 %v1001_v4, %v1001_v4  ;;  %v4772_v6 = vpop.f32.mrb[37].mxu1 }
0x1157   :  { %v1004_v7 = vpop.f32.mrb[38].mxu1 }
0x1158   :  { %v4773_v8 = vpop.f32.mrb[39].mxu1  ;;  %4777 = vmatmul.mubr.msk.bf16.vlgmr.msra.gmra.mrb[40].mxu0 %vm326_vm6, %v1007_v5 }
0x1159   :  { %4790 = vmatprep.mubr.msk.bf16.mxu0 %vm5346_vm0, %v5345_v0 }
0x122b   :  { %v1045_v10 = vpop.f32.mrb[40].mxu0 }
0x122c   :  { %v1046_v11 = vadd.f32 %v5442_v13, %v1045_v10  ;;  %v4778_v14 = vpop.f32.mrb[41].mxu0 }
0x122d   :  { %v1048_v15 = vpop.f32.mrb[42].mxu0 }
0x122e   :  { %5269 = vtanh.f32 %v1046_v11  ;;  %v4779_v16 = vpop.f32.mrb[43].mxu0 }
0x1238   :  { %v5270_v17 = vpop.eup %5269 }
0x1239   :  { %v1052_v18 = vpack.c.bf16 %v5270_v17, %v5270_v17 }
0x123b   :  { %4785 = vmatmul.mubr.msk.bf16.vlgmr.msra.gmra.mrb[40].mxu1 %vm372_vm7, %v1052_v18 }
0x123c   :  { %4795 = vmatpush3.bf16.msra.mxu1 %v5427_v1  ;;  %4796 = vmatprep.mubr.msk.bf16.mxu1 %vm5346_vm0, %v5345_v0 }
0x123d   :  { %4808 = vmatprep.subr.bf16.mxu1 %v5345_v0 }
0x130e   :  { %v1090_v19 = vpop.f32.mrb[40].mxu1 }
0x130f   :  { %v1091_v20 = vadd.f32 %v5450_v21, %v1090_v19  ;;  %v4786_v22 = vpop.f32.mrb[41].mxu1 }
0x1310   :  { %v1093_v23 = vpop.f32.mrb[42].mxu1 }
0x1311   :  { %v1096_v24 = vmul.f32 0.071428575, %v1091_v20  ;;  %v4787_v26 = vpop.f32.mrb[43].mxu1  ;;  %v1366_v43 = vmul.f32 2.0, %v1091_v20 }
0x1313   :  { %v1097_v27 = vadd.f32 %v1096_v24, %v5521_v41  ;;  %v1367_v48 = vadd.f32 %v1366_v43, %v5545_v58 }
0x1315   :  { %v1098_v28 = vpack.c.bf16 %v1097_v27, %v1097_v27 }
0x1317   :  { %v1100_v29 = vsel %vm94_vm3, %v1098_v28, 0 }
0x1318   :  { %4789 = vmatpush3.bf16.msra.mxu0 %v1100_v29 }
0x1319   :  { %4800 = vmatprep.subr.bf16.mxu0 %v5345_v0 }
0x131b   :  { %4791 = vmatmul.mubr.msk.bf16.vlgmr.msra.gmra.mrb[44].mxu0 %vm90_vm4, %v5399_v25 }
0x131c   :  { %4801 = vmatpush3.bf16.msra.mxu0 %v5434_v9  ;;  %4804 = vmatprep.mubr.msk.bf16.mxu0 %vm5346_vm0, %v5345_v0 }
0x131d   :  { %4802 = vmatprep.subr.bf16.mxu0 %v5345_v0 }
0x1320   :  { %4803 = vmatpush3.bf16.msra.mxu0 %v5438_v12 }
0x1321   :  { %4814 = vmatprep.subr.bf16.mxu0 %v5345_v0 }
0x13ee   :  { %v1136_v30 = vpop.f32.mrb[44].mxu0 }
0x13ef   :  { %v1142_v31 = vpack.c.bf16 %v1136_v30, %v1136_v30  ;;  %v4792_v32 = vpop.f32.mrb[45].mxu0 }
0x13f0   :  { %v1139_v33 = vpop.f32.mrb[46].mxu0 }
0x13f1   :  { %v4793_v34 = vpop.f32.mrb[47].mxu0  ;;  %4797 = vmatmul.mubr.msk.bf16.vlgmr.msra.gmra.mrb[44].mxu1 %vm326_vm6, %v1142_v31 }
0x13f2   :  { %4810 = vmatprep.mubr.msk.bf16.mxu1 %vm5346_vm0, %v5345_v0 }
0x14c4   :  { %v1180_v35 = vpop.f32.mrb[44].mxu1 }
0x14c5   :  { %v1181_v36 = vadd.f32 %v5442_v13, %v1180_v35  ;;  %v4798_v37 = vpop.f32.mrb[45].mxu1 }
0x14c6   :  { %v1183_v38 = vpop.f32.mrb[46].mxu1 }
0x14c7   :  { %5271 = vtanh.f32 %v1181_v36  ;;  %v4799_v39 = vpop.f32.mrb[47].mxu1 }
0x14d1   :  { %v5272_v40 = vpop.eup %5271 }
0x14d2   :  { %v1187_v42 = vpack.c.bf16 %v5272_v40, %v5272_v40 }
0x14d4   :  { %4805 = vmatmul.mubr.msk.bf16.vlgmr.msra.gmra.mrb[48].mxu0 %vm372_vm7, %v1187_v42 }
0x14d5   :  { %4815 = vmatpush3.bf16.msra.mxu0 %v5427_v1  ;;  %4816 = vmatprep.mubr.msk.bf16.mxu0 %vm5346_vm0, %v5345_v0 }
0x14d6   :  { %4828 = vmatprep.subr.bf16.mxu0 %v5345_v0 }
0x15a7   :  { %v1225_v44 = vpop.f32.mrb[48].mxu0 }
0x15a8   :  { %v1226_v45 = vadd.f32 %v5450_v21, %v1225_v44  ;;  %v4806_v46 = vpop.f32.mrb[49].mxu0 }
0x15a9   :  { %v1228_v47 = vpop.f32.mrb[50].mxu0 }
0x15aa   :  { %v1231_v49 = vmul.f32 0.14285715, %v1226_v45  ;;  %v1368_v50 = vmul.f32 2.0, %v1226_v45  ;;  %v4807_v51 = vpop.f32.mrb[51].mxu0 }
0x15ac   :  { %v1232_v52 = vadd.f32 %v1231_v49, %v5521_v41  ;;  %v1369_v53 = vadd.f32 %v1368_v50, %v1367_v48 }
0x15ae   :  { %v1233_v54 = vpack.c.bf16 %v1232_v52, %v1232_v52 }
0x15b0   :  { %v1235_v55 = vsel %vm94_vm3, %v1233_v54, 0 }
0x15b1   :  { %4809 = vmatpush3.bf16.msra.mxu1 %v1235_v55 }
0x15b2   :  { %4820 = vmatprep.subr.bf16.mxu1 %v5345_v0 }
0x15b4   :  { %4811 = vmatmul.mubr.msk.bf16.vlgmr.msra.gmra.mrb[48].mxu1 %vm90_vm4, %v5399_v25 }
0x15b5   :  { %4821 = vmatpush3.bf16.msra.mxu1 %v5434_v9  ;;  %4824 = vmatprep.mubr.msk.bf16.mxu1 %vm5346_vm0, %v5345_v0 }
0x15b6   :  { %4822 = vmatprep.subr.bf16.mxu1 %v5345_v0 }
0x15b9   :  { %4823 = vmatpush3.bf16.msra.mxu1 %v5438_v12 }
0x15ba   :  { %4834 = vmatprep.subr.bf16.mxu1 %v5345_v0 }
0x1687   :  { %v1271_v57 = vpop.f32.mrb[48].mxu1 }
0x1688   :  { %v1277_v58 = vpack.c.bf16 %v1271_v57, %v1271_v57  ;;  %v4812_v59 = vpop.f32.mrb[49].mxu1 }
0x1689   :  { %v1274_v60 = vpop.f32.mrb[50].mxu1 }
0x168a   :  { %v4813_v61 = vpop.f32.mrb[51].mxu1  ;;  %4817 = vmatmul.mubr.msk.bf16.vlgmr.msra.gmra.mrb[52].mxu0 %vm326_vm6, %v1277_v58 }
0x168b   :  { %4830 = vmatprep.mubr.msk.bf16.mxu0 %vm5346_vm0, %v5345_v0 }
0x175d   :  { %v1315_v62 = vpop.f32.mrb[52].mxu0 }
0x175e   :  { %v1316_v63 = vadd.f32 %v5442_v13, %v1315_v62  ;;  %v4818_v2 = vpop.f32.mrb[53].mxu0 }
0x175f   :  { %v1318_v3 = vpop.f32.mrb[54].mxu0 }
0x1760   :  { %5273 = vtanh.f32 %v1316_v63  ;;  %v4819_v4 = vpop.f32.mrb[55].mxu0 }
0x176a   :  { %v5274_v5 = vpop.eup %5273 }
0x176b   :  { %v1322_v6 = vpack.c.bf16 %v5274_v5, %v5274_v5 }
0x176d   :  { %4825 = vmatmul.mubr.msk.bf16.vlgmr.msra.gmra.mrb[52].mxu1 %vm372_vm7, %v1322_v6 }
0x176e   :  { %4835 = vmatpush3.bf16.msra.mxu1 %v5427_v1  ;;  %4836 = vmatprep.mubr.msk.bf16.mxu1 %vm5346_vm0, %v5345_v0 }
0x176f   :  { %4848 = vmatprep.subr.bf16.mxu1 %v5345_v0 }
0x1840   :  { %v1360_v7 = vpop.f32.mrb[52].mxu1 }
0x1841   :  { %v1361_v8 = vadd.f32 %v5450_v21, %v1360_v7  ;;  %v4826_v10 = vpop.f32.mrb[53].mxu1 }
0x1842   :  { %v1363_v11 = vpop.f32.mrb[54].mxu1 }
0x1843   :  { %v1370_v14 = vadd.f32 %v1369_v53, %v1361_v8  ;;  %v4827_v15 = vpop.f32.mrb[55].mxu1 }
0x1845   :  { %v1371_v16 = vmul.f32 0.023809524, %v1370_v14 }
0x1847   :  { %v5613_v17 = vadd.f32 %v1371_v16, %v5521_v41 }
0x1849   :  { %v1373_v18 = vpack.c.bf16 %v5613_v17, %v5613_v17 }
0x184b   :  { %v1375_v19 = vsel %vm94_vm3, %v1373_v18, 0 }
0x184c   :  { %4829 = vmatpush3.bf16.msra.mxu0 %v1375_v19 }
0x184d   :  { %4840 = vmatprep.subr.bf16.mxu0 %v5345_v0 }
0x184f   :  { %4831 = vmatmul.mubr.msk.bf16.vlgmr.msra.gmra.mrb[56].mxu0 %vm90_vm4, %v5399_v25 }
0x1850   :  { %4841 = vmatpush3.bf16.msra.mxu0 %v5434_v9  ;;  %4844 = vmatprep.mubr.msk.bf16.mxu0 %vm5346_vm0, %v5345_v0 }
0x1851   :  { %4842 = vmatprep.subr.bf16.mxu0 %v5345_v0 }
0x1854   :  { %4843 = vmatpush3.bf16.msra.mxu0 %v5438_v12 }
0x1855   :  { %4854 = vmatprep.subr.bf16.mxu0 %v5345_v0 }
0x1922   :  { %v1411_v20 = vpop.f32.mrb[56].mxu0 }
0x1923   :  { %v1417_v22 = vpack.c.bf16 %v1411_v20, %v1411_v20  ;;  %v4832_v23 = vpop.f32.mrb[57].mxu0 }
0x1924   :  { %v1414_v24 = vpop.f32.mrb[58].mxu0 }
0x1925   :  { %v4833_v26 = vpop.f32.mrb[59].mxu0  ;;  %4837 = vmatmul.mubr.msk.bf16.vlgmr.msra.gmra.mrb[56].mxu1 %vm326_vm6, %v1417_v22 }
0x1926   :  { %4850 = vmatprep.mubr.msk.bf16.mxu1 %vm5346_vm0, %v5345_v0 }
0x19f8   :  { %v1455_v27 = vpop.f32.mrb[56].mxu1 }
0x19f9   :  { %v1456_v28 = vadd.f32 %v5442_v13, %v1455_v27  ;;  %v4838_v29 = vpop.f32.mrb[57].mxu1 }
0x19fa   :  { %v1458_v30 = vpop.f32.mrb[58].mxu1 }
0x19fb   :  { %5275 = vtanh.f32 %v1456_v28  ;;  %v4839_v31 = vpop.f32.mrb[59].mxu1 }
0x1a05   :  { %v5276_v32 = vpop.eup %5275 }
0x1a06   :  { %v1462_v33 = vpack.c.bf16 %v5276_v32, %v5276_v32 }
0x1a08   :  { %4845 = vmatmul.mubr.msk.bf16.vlgmr.msra.gmra.mrb[60].mxu0 %vm372_vm7, %v1462_v33 }
0x1a09   :  { %4855 = vmatpush3.bf16.msra.mxu0 %v5427_v1  ;;  %4856 = vmatprep.mubr.msk.bf16.mxu0 %vm5346_vm0, %v5345_v0 }
0x1a0a   :  { %4868 = vmatprep.subr.bf16.mxu0 %v5345_v0 }
0x1adb   :  { %v1500_v34 = vpop.f32.mrb[60].mxu0 }
0x1adc   :  { %v5637_v35 = vadd.f32 %v5450_v21, %v1500_v34  ;;  %v4846_v36 = vpop.f32.mrb[61].mxu0 }
0x1add   :  { %v1503_v37 = vpop.f32.mrb[62].mxu0 }
0x1ade   :  { %v1506_v38 = vmul.f32 0.07142858, %v5637_v35  ;;  %v4847_v39 = vpop.f32.mrb[63].mxu0 }
0x1ae0   :  { %v1507_v40 = vadd.f32 %v1506_v38, %v5613_v17 }
0x1ae2   :  { %v1508_v42 = vpack.c.bf16 %v1507_v40, %v1507_v40 }
0x1ae4   :  { %v1510_v43 = vsel %vm94_vm3, %v1508_v42, 0 }
0x1ae5   :  { %4849 = vmatpush3.bf16.msra.mxu1 %v1510_v43 }
0x1ae6   :  { %4860 = vmatprep.subr.bf16.mxu1 %v5345_v0 }
0x1ae8   :  { %4851 = vmatmul.mubr.msk.bf16.vlgmr.msra.gmra.mrb[60].mxu1 %vm90_vm4, %v5399_v25 }
0x1ae9   :  { %4861 = vmatpush3.bf16.msra.mxu1 %v5434_v9  ;;  %4864 = vmatprep.mubr.msk.bf16.mxu1 %vm5346_vm0, %v5345_v0 }
0x1aea   :  { %4862 = vmatprep.subr.bf16.mxu1 %v5345_v0 }
0x1aed   :  { %4863 = vmatpush3.bf16.msra.mxu1 %v5438_v12 }
0x1aee   :  { %4874 = vmatprep.subr.bf16.mxu1 %v5345_v0 }
0x1bbb   :  { %v1546_v44 = vpop.f32.mrb[60].mxu1 }
0x1bbc   :  { %v1552_v45 = vpack.c.bf16 %v1546_v44, %v1546_v44  ;;  %v4852_v46 = vpop.f32.mrb[61].mxu1 }
0x1bbd   :  { %v1549_v47 = vpop.f32.mrb[62].mxu1 }
0x1bbe   :  { %v4853_v48 = vpop.f32.mrb[63].mxu1  ;;  %4857 = vmatmul.mubr.msk.bf16.vlgmr.msra.gmra.mrb[64].mxu0 %vm326_vm6, %v1552_v45 }
0x1bbf   :  { %4870 = vmatprep.mubr.msk.bf16.mxu0 %vm5346_vm0, %v5345_v0 }
0x1c91   :  { %v1590_v49 = vpop.f32.mrb[64].mxu0 }
0x1c92   :  { %v1591_v50 = vadd.f32 %v5442_v13, %v1590_v49  ;;  %v4858_v51 = vpop.f32.mrb[65].mxu0 }
0x1c93   :  { %v1593_v52 = vpop.f32.mrb[66].mxu0 }
0x1c94   :  { %5277 = vtanh.f32 %v1591_v50  ;;  %v4859_v53 = vpop.f32.mrb[67].mxu0 }
0x1c9e   :  { %v5278_v54 = vpop.eup %5277 }
0x1c9f   :  { %v1597_v55 = vpack.c.bf16 %v5278_v54, %v5278_v54 }
0x1ca1   :  { %4865 = vmatmul.mubr.msk.bf16.vlgmr.msra.gmra.mrb[64].mxu1 %vm372_vm7, %v1597_v55 }
0x1ca2   :  { %4875 = vmatpush3.bf16.msra.mxu1 %v5427_v1  ;;  %4876 = vmatprep.mubr.msk.bf16.mxu1 %vm5346_vm0, %v5345_v0 }
0x1ca3   :  { %4888 = vmatprep.subr.bf16.mxu1 %v5345_v0 }
0x1d74   :  { %v1635_v57 = vpop.f32.mrb[64].mxu1 }
0x1d75   :  { %v1636_v58 = vadd.f32 %v5450_v21, %v1635_v57  ;;  %v4866_v59 = vpop.f32.mrb[65].mxu1 }
0x1d76   :  { %v1638_v60 = vpop.f32.mrb[66].mxu1 }
0x1d77   :  { %v1641_v61 = vmul.f32 0.07142858, %v1636_v58  ;;  %v4867_v62 = vpop.f32.mrb[67].mxu1  ;;  %v1911_v20 = vmul.f32 2.0, %v1636_v58 }
0x1d79   :  { %v1642_v63 = vadd.f32 %v1641_v61, %v5613_v17  ;;  %v1912_v27 = vadd.f32 %v1911_v20, %v5637_v35 }
0x1d7b   :  { %v1643_v2 = vpack.c.bf16 %v1642_v63, %v1642_v63 }
0x1d7d   :  { %v1645_v3 = vsel %vm94_vm3, %v1643_v2, 0 }
0x1d7e   :  { %4869 = vmatpush3.bf16.msra.mxu0 %v1645_v3 }
0x1d7f   :  { %4880 = vmatprep.subr.bf16.mxu0 %v5345_v0 }
0x1d81   :  { %4871 = vmatmul.mubr.msk.bf16.vlgmr.msra.gmra.mrb[68].mxu0 %vm90_vm4, %v5399_v25 }
0x1d82   :  { %4881 = vmatpush3.bf16.msra.mxu0 %v5434_v9  ;;  %4884 = vmatprep.mubr.msk.bf16.mxu0 %vm5346_vm0, %v5345_v0 }
0x1d83   :  { %4882 = vmatprep.subr.bf16.mxu0 %v5345_v0 }
0x1d86   :  { %4883 = vmatpush3.bf16.msra.mxu0 %v5438_v12 }
0x1d87   :  { %4894 = vmatprep.subr.bf16.mxu0 %v5345_v0 }
0x1e54   :  { %v1681_v4 = vpop.f32.mrb[68].mxu0 }
0x1e55   :  { %v1687_v5 = vpack.c.bf16 %v1681_v4, %v1681_v4  ;;  %v4872_v6 = vpop.f32.mrb[69].mxu0 }
0x1e56   :  { %v1684_v7 = vpop.f32.mrb[70].mxu0 }
0x1e57   :  { %v4873_v8 = vpop.f32.mrb[71].mxu0  ;;  %4877 = vmatmul.mubr.msk.bf16.vlgmr.msra.gmra.mrb[68].mxu1 %vm326_vm6, %v1687_v5 }
0x1e58   :  { %4890 = vmatprep.mubr.msk.bf16.mxu1 %vm5346_vm0, %v5345_v0 }
0x1f2a   :  { %v1725_v10 = vpop.f32.mrb[68].mxu1 }
0x1f2b   :  { %v1726_v11 = vadd.f32 %v5442_v13, %v1725_v10  ;;  %v4878_v14 = vpop.f32.mrb[69].mxu1 }
0x1f2c   :  { %v1728_v15 = vpop.f32.mrb[70].mxu1 }
0x1f2d   :  { %5279 = vtanh.f32 %v1726_v11  ;;  %v4879_v16 = vpop.f32.mrb[71].mxu1 }
0x1f37   :  { %v5280_v18 = vpop.eup %5279 }
0x1f38   :  { %v1732_v19 = vpack.c.bf16 %v5280_v18, %v5280_v18 }
0x1f3a   :  { %4885 = vmatmul.mubr.msk.bf16.vlgmr.msra.gmra.mrb[72].mxu0 %vm372_vm7, %v1732_v19 }
0x1f3b   :  { %4895 = vmatpush3.bf16.msra.mxu0 %v5427_v1  ;;  %4896 = vmatprep.mubr.msk.bf16.mxu0 %vm5346_vm0, %v5345_v0 }
0x1f3c   :  { %4908 = vmatprep.subr.bf16.mxu0 %v5345_v0 }
0x200d   :  { %v1770_v22 = vpop.f32.mrb[72].mxu0 }
0x200e   :  { %v1771_v23 = vadd.f32 %v5450_v21, %v1770_v22  ;;  %v4886_v24 = vpop.f32.mrb[73].mxu0 }
0x200f   :  { %v1773_v26 = vpop.f32.mrb[74].mxu0 }
0x2010   :  { %v1776_v28 = vmul.f32 0.14285716, %v1771_v23  ;;  %v1913_v29 = vmul.f32 2.0, %v1771_v23  ;;  %v4887_v30 = vpop.f32.mrb[75].mxu0 }
0x2012   :  { %v1777_v31 = vadd.f32 %v1776_v28, %v5613_v17  ;;  %v1914_v32 = vadd.f32 %v1913_v29, %v1912_v27 }
0x2014   :  { %v1778_v33 = vpack.c.bf16 %v1777_v31, %v1777_v31 }
0x2016   :  { %v1780_v34 = vsel %vm94_vm3, %v1778_v33, 0 }
0x2017   :  { %4889 = vmatpush3.bf16.msra.mxu1 %v1780_v34 }
0x2018   :  { %4900 = vmatprep.subr.bf16.mxu1 %v5345_v0 }
0x201a   :  { %4891 = vmatmul.mubr.msk.bf16.vlgmr.msra.gmra.mrb[72].mxu1 %vm90_vm4, %v5399_v25 }
0x201b   :  { %4901 = vmatpush3.bf16.msra.mxu1 %v5434_v9  ;;  %4904 = vmatprep.mubr.msk.bf16.mxu1 %vm5346_vm0, %v5345_v0 }
0x201c   :  { %4902 = vmatprep.subr.bf16.mxu1 %v5345_v0 }
0x201f   :  { %4903 = vmatpush3.bf16.msra.mxu1 %v5438_v12 }
0x2020   :  { %4914 = vmatprep.subr.bf16.mxu1 %v5345_v0 }
0x20ed   :  { %v1816_v35 = vpop.f32.mrb[72].mxu1 }
0x20ee   :  { %v1822_v36 = vpack.c.bf16 %v1816_v35, %v1816_v35  ;;  %v4892_v37 = vpop.f32.mrb[73].mxu1 }
0x20ef   :  { %v1819_v38 = vpop.f32.mrb[74].mxu1 }
0x20f0   :  { %v4893_v39 = vpop.f32.mrb[75].mxu1  ;;  %4897 = vmatmul.mubr.msk.bf16.vlgmr.msra.gmra.mrb[76].mxu0 %vm326_vm6, %v1822_v36 }
0x20f1   :  { %4910 = vmatprep.mubr.msk.bf16.mxu0 %vm5346_vm0, %v5345_v0 }
0x21c3   :  { %v1860_v40 = vpop.f32.mrb[76].mxu0 }
0x21c4   :  { %v1861_v42 = vadd.f32 %v5442_v13, %v1860_v40  ;;  %v4898_v43 = vpop.f32.mrb[77].mxu0 }
0x21c5   :  { %v1863_v44 = vpop.f32.mrb[78].mxu0 }
0x21c6   :  { %5281 = vtanh.f32 %v1861_v42  ;;  %v4899_v45 = vpop.f32.mrb[79].mxu0 }
0x21d0   :  { %v5282_v46 = vpop.eup %5281 }
0x21d1   :  { %v1867_v47 = vpack.c.bf16 %v5282_v46, %v5282_v46 }
0x21d3   :  { %4905 = vmatmul.mubr.msk.bf16.vlgmr.msra.gmra.mrb[76].mxu1 %vm372_vm7, %v1867_v47 }
0x21d4   :  { %4915 = vmatpush3.bf16.msra.mxu1 %v5427_v1  ;;  %4916 = vmatprep.mubr.msk.bf16.mxu1 %vm5346_vm0, %v5345_v0 }
0x21d5   :  { %4928 = vmatprep.subr.bf16.mxu1 %v5345_v0 }
0x22a6   :  { %v1905_v48 = vpop.f32.mrb[76].mxu1 }
0x22a7   :  { %v1906_v49 = vadd.f32 %v5450_v21, %v1905_v48  ;;  %v4906_v50 = vpop.f32.mrb[77].mxu1 }
0x22a8   :  { %v1908_v51 = vpop.f32.mrb[78].mxu1  ;;  %v5767_v50 = vld [vmem:[#allocation2 + $0xb0] ss:$0 sm:$0xff] }
0x22a9   :  { %v1915_v52 = vadd.f32 %v1914_v32, %v1906_v49  ;;  %v4907_v53 = vpop.f32.mrb[79].mxu1 }
0x22ab   :  { %v1916_v54 = vmul.f32 0.023809528, %v1915_v52 }
0x22ad   :  { %v5705_v55 = vadd.f32 %v1916_v54, %v5613_v17 }
0x22af   :  { %v1918_v57 = vpack.c.bf16 %v5705_v55, %v5705_v55 }
0x22b1   :  { %v1920_v58 = vsel %vm94_vm3, %v1918_v57, 0 }
0x22b2   :  { %4909 = vmatpush3.bf16.msra.mxu0 %v1920_v58 }
0x22b3   :  { %4920 = vmatprep.subr.bf16.mxu0 %v5345_v0 }
0x22b5   :  { %4911 = vmatmul.mubr.msk.bf16.vlgmr.msra.gmra.mrb[80].mxu0 %vm90_vm4, %v5399_v25 }
0x22b6   :  { %4921 = vmatpush3.bf16.msra.mxu0 %v5434_v9  ;;  %4924 = vmatprep.mubr.msk.bf16.mxu0 %vm5346_vm0, %v5345_v0 }
0x22b7   :  { %4922 = vmatprep.subr.bf16.mxu0 %v5345_v0 }
0x22ba   :  { %4923 = vmatpush3.bf16.msra.mxu0 %v5438_v12 }
0x22bb   :  { %4934 = vmatprep.subr.bf16.mxu0 %v5345_v0 }
0x2388   :  { %v1956_v59 = vpop.f32.mrb[80].mxu0 }
0x2389   :  { %v1962_v60 = vpack.c.bf16 %v1956_v59, %v1956_v59  ;;  %v4912_v61 = vpop.f32.mrb[81].mxu0 }
0x238a   :  { %v1959_v62 = vpop.f32.mrb[82].mxu0  ;;  %v5775_v61 = vld [vmem:[#allocation2 + $0xd8] ss:$0 sm:$0xff] }
0x238b   :  { %v4913_v63 = vpop.f32.mrb[83].mxu0  ;;  %4917 = vmatmul.mubr.msk.bf16.vlgmr.msra.gmra.mrb[80].mxu1 %vm326_vm6, %v1962_v60 }
0x238c   :  { %4930 = vmatprep.mubr.msk.bf16.mxu1 %vm5346_vm0, %v5345_v0 }
0x245e   :  { %v2000_v2 = vpop.f32.mrb[80].mxu1 }
0x245f   :  { %v2001_v3 = vadd.f32 %v5442_v13, %v2000_v2  ;;  %v4918_v4 = vpop.f32.mrb[81].mxu1 }
0x2460   :  { %v2003_v5 = vpop.f32.mrb[82].mxu1 }
0x2461   :  { %5283 = vtanh.f32 %v2001_v3  ;;  %v4919_v6 = vpop.f32.mrb[83].mxu1 }
0x246b   :  { %v5284_v7 = vpop.eup %5283 }
0x246c   :  { %v2007_v8 = vpack.c.bf16 %v5284_v7, %v5284_v7 }
0x246e   :  { %4925 = vmatmul.mubr.msk.bf16.vlgmr.msra.gmra.mrb[84].mxu0 %vm372_vm7, %v2007_v8 }
0x246f   :  { %4935 = vmatpush3.bf16.msra.mxu0 %v5427_v1  ;;  %4936 = vmatprep.mubr.msk.bf16.mxu0 %vm5346_vm0, %v5345_v0 }
0x2470   :  { %4948 = vmatprep.subr.bf16.mxu0 %v5345_v0 }
0x2541   :  { %v2045_v10 = vpop.f32.mrb[84].mxu0 }
0x2542   :  { %v5729_v11 = vadd.f32 %v5450_v21, %v2045_v10  ;;  %v4926_v14 = vpop.f32.mrb[85].mxu0 }
0x2543   :  { %v2048_v15 = vpop.f32.mrb[86].mxu0 }
0x2544   :  { %v2051_v16 = vmul.f32 0.07142857, %v5729_v11  ;;  %v4927_v18 = vpop.f32.mrb[87].mxu0 }
0x2546   :  { %v2052_v19 = vadd.f32 %v2051_v16, %v5705_v55 }
0x2548   :  { %v2053_v20 = vpack.c.bf16 %v2052_v19, %v2052_v19 }
0x254a   :  { %v2055_v22 = vsel %vm94_vm3, %v2053_v20, 0 }
0x254b   :  { %4929 = vmatpush3.bf16.msra.mxu1 %v2055_v22 }
0x254c   :  { %4940 = vmatprep.subr.bf16.mxu1 %v5345_v0 }
0x254e   :  { %4931 = vmatmul.mubr.msk.bf16.vlgmr.msra.gmra.mrb[84].mxu1 %vm90_vm4, %v5399_v25 }
0x254f   :  { %4941 = vmatpush3.bf16.msra.mxu1 %v5434_v9  ;;  %4944 = vmatprep.mubr.msk.bf16.mxu1 %vm5346_vm0, %v5345_v0 }
0x2550   :  { %4942 = vmatprep.subr.bf16.mxu1 %v5345_v0 }
0x2553   :  { %4943 = vmatpush3.bf16.msra.mxu1 %v5438_v12 }
0x2554   :  { %4954 = vmatprep.subr.bf16.mxu1 %v5345_v0 }
0x2621   :  { %v2091_v23 = vpop.f32.mrb[84].mxu1 }
0x2622   :  { %v2097_v24 = vpack.c.bf16 %v2091_v23, %v2091_v23  ;;  %v4932_v26 = vpop.f32.mrb[85].mxu1 }
0x2623   :  { %v2094_v27 = vpop.f32.mrb[86].mxu1 }
0x2624   :  { %v4933_v28 = vpop.f32.mrb[87].mxu1  ;;  %4937 = vmatmul.mubr.msk.bf16.vlgmr.msra.gmra.mrb[88].mxu0 %vm326_vm6, %v2097_v24 }
0x2625   :  { %4950 = vmatprep.mubr.msk.bf16.mxu0 %vm5346_vm0, %v5345_v0 }
0x26f7   :  { %v2135_v29 = vpop.f32.mrb[88].mxu0 }
0x26f8   :  { %v2136_v30 = vadd.f32 %v5442_v13, %v2135_v29  ;;  %v4938_v31 = vpop.f32.mrb[89].mxu0 }
0x26f9   :  { %v2138_v32 = vpop.f32.mrb[90].mxu0 }
0x26fa   :  { %5285 = vtanh.f32 %v2136_v30  ;;  %v4939_v33 = vpop.f32.mrb[91].mxu0 }
0x2704   :  { %v5286_v34 = vpop.eup %5285 }
0x2705   :  { %v2142_v35 = vpack.c.bf16 %v5286_v34, %v5286_v34 }
0x2707   :  { %4945 = vmatmul.mubr.msk.bf16.vlgmr.msra.gmra.mrb[88].mxu1 %vm372_vm7, %v2142_v35 }
0x2708   :  { %4955 = vmatpush3.bf16.msra.mxu1 %v5427_v1  ;;  %4956 = vmatprep.mubr.msk.bf16.mxu1 %vm5346_vm0, %v5345_v0 }
0x2709   :  { %4968 = vmatprep.subr.bf16.mxu1 %v5345_v0 }
0x27da   :  { %v2180_v36 = vpop.f32.mrb[88].mxu1 }
0x27db   :  { %v2181_v37 = vadd.f32 %v5450_v21, %v2180_v36  ;;  %v4946_v38 = vpop.f32.mrb[89].mxu1 }
0x27dc   :  { %v2183_v13 = vpop.f32.mrb[90].mxu1 }
0x27dd   :  { %v2186_v39 = vmul.f32 0.07142857, %v2181_v37  ;;  %v4947_v40 = vpop.f32.mrb[91].mxu1  ;;  %v2456_v59 = vmul.f32 2.0, %v2181_v37 }
0x27df   :  { %v2187_v42 = vadd.f32 %v2186_v39, %v5705_v55  ;;  %v2457_v3 = vadd.f32 %v2456_v59, %v5729_v11 }
0x27e1   :  { %v2188_v43 = vpack.c.bf16 %v2187_v42, %v2187_v42 }
0x27e3   :  { %v2190_v44 = vsel %vm94_vm3, %v2188_v43, 0 }
0x27e4   :  { %4949 = vmatpush3.bf16.msra.mxu0 %v2190_v44 }
0x27e5   :  { %4960 = vmatprep.subr.bf16.mxu0 %v5345_v0 }
0x27e7   :  { %4951 = vmatmul.mubr.msk.bf16.vlgmr.msra.gmra.mrb[92].mxu0 %vm90_vm4, %v5399_v25 }
0x27e8   :  { %4961 = vmatpush3.bf16.msra.mxu0 %v5434_v9  ;;  %4964 = vmatprep.mubr.msk.bf16.mxu0 %vm5346_vm0, %v5345_v0 }
0x27e9   :  { %4962 = vmatprep.subr.bf16.mxu0 %v5345_v0 }
0x27ec   :  { %4963 = vmatpush3.bf16.msra.mxu0 %v5438_v12 }
0x27ed   :  { %4974 = vmatprep.subr.bf16.mxu0 %v5345_v0 }
0x28ba   :  { %v2226_v21 = vpop.f32.mrb[92].mxu0 }
0x28bb   :  { %v2232_v45 = vpack.c.bf16 %v2226_v21, %v2226_v21  ;;  %v4952_v46 = vpop.f32.mrb[93].mxu0 }
0x28bc   :  { %v2229_v47 = vpop.f32.mrb[94].mxu0 }
0x28bd   :  { %v4953_v48 = vpop.f32.mrb[95].mxu0  ;;  %4957 = vmatmul.mubr.msk.bf16.vlgmr.msra.gmra.mrb[92].mxu1 %vm326_vm6, %v2232_v45 }
0x28be   :  { %4970 = vmatprep.mubr.msk.bf16.mxu1 %vm5346_vm0, %v5345_v0 }
0x2990   :  { %v2270_v49 = vpop.f32.mrb[92].mxu1 }
0x2991   :  { %v2271_v51 = vadd.f32 %v5767_v50, %v2270_v49  ;;  %v4958_v52 = vpop.f32.mrb[93].mxu1 }
0x2992   :  { %v2273_v53 = vpop.f32.mrb[94].mxu1 }
0x2993   :  { %5287 = vtanh.f32 %v2271_v51  ;;  %v4959_v54 = vpop.f32.mrb[95].mxu1 }
0x299d   :  { %v5288_v57 = vpop.eup %5287 }
0x299e   :  { %v2277_v58 = vpack.c.bf16 %v5288_v57, %v5288_v57 }
0x29a0   :  { %4965 = vmatmul.mubr.msk.bf16.vlgmr.msra.gmra.mrb[96].mxu0 %vm372_vm7, %v2277_v58 }
0x29a1   :  { %4975 = vmatpush3.bf16.msra.mxu0 %v5427_v1  ;;  %4976 = vmatprep.mubr.msk.bf16.mxu0 %vm5346_vm0, %v5345_v0 }
0x29a2   :  { %4988 = vmatprep.subr.bf16.mxu0 %v5345_v0 }
0x2a73   :  { %v2315_v60 = vpop.f32.mrb[96].mxu0 }
0x2a74   :  { %v2316_v62 = vadd.f32 %v5775_v61, %v2315_v60  ;;  %v4966_v63 = vpop.f32.mrb[97].mxu0 }
0x2a75   :  { %v2318_v2 = vpop.f32.mrb[98].mxu0 }
0x2a76   :  { %v2321_v4 = vmul.f32 0.14285713, %v2316_v62  ;;  %v2458_v5 = vmul.f32 2.0, %v2316_v62  ;;  %v4967_v6 = vpop.f32.mrb[99].mxu0 }
0x2a78   :  { %v2322_v7 = vadd.f32 %v2321_v4, %v5705_v55  ;;  %v2459_v8 = vadd.f32 %v2458_v5, %v2457_v3 }
0x2a7a   :  { %v2323_v10 = vpack.c.bf16 %v2322_v7, %v2322_v7 }
0x2a7c   :  { %v2325_v14 = vsel %vm94_vm3, %v2323_v10, 0 }
0x2a7d   :  { %4969 = vmatpush3.bf16.msra.mxu1 %v2325_v14 }
0x2a7e   :  { %4980 = vmatprep.subr.bf16.mxu1 %v5345_v0 }
0x2a80   :  { %4971 = vmatmul.mubr.msk.bf16.vlgmr.msra.gmra.mrb[96].mxu1 %vm90_vm4, %v5399_v25 }
0x2a81   :  { %4981 = vmatpush3.bf16.msra.mxu1 %v5434_v9  ;;  %4984 = vmatprep.mubr.msk.bf16.mxu1 %vm5346_vm0, %v5345_v0 }
0x2a82   :  { %4982 = vmatprep.subr.bf16.mxu1 %v5345_v0 }
0x2a85   :  { %4983 = vmatpush3.bf16.msra.mxu1 %v5438_v12 }
0x2a86   :  { %4994 = vmatprep.subr.bf16.mxu1 %v5345_v0 }
0x2b53   :  { %v2361_v11 = vpop.f32.mrb[96].mxu1 }
0x2b54   :  { %v2367_v15 = vpack.c.bf16 %v2361_v11, %v2361_v11  ;;  %v4972_v16 = vpop.f32.mrb[97].mxu1 }
0x2b55   :  { %v2364_v18 = vpop.f32.mrb[98].mxu1 }
0x2b56   :  { %v4973_v19 = vpop.f32.mrb[99].mxu1  ;;  %4977 = vmatmul.mubr.msk.bf16.vlgmr.msra.gmra.mrb[100].mxu0 %vm326_vm6, %v2367_v15 }
0x2b57   :  { %4990 = vmatprep.mubr.msk.bf16.mxu0 %vm5346_vm0, %v5345_v0 }
0x2c29   :  { %v2405_v20 = vpop.f32.mrb[100].mxu0 }
0x2c2a   :  { %v2406_v22 = vadd.f32 %v5767_v50, %v2405_v20  ;;  %v4978_v23 = vpop.f32.mrb[101].mxu0 }
0x2c2b   :  { %v2408_v24 = vpop.f32.mrb[102].mxu0 }
0x2c2c   :  { %5289 = vtanh.f32 %v2406_v22  ;;  %v4979_v26 = vpop.f32.mrb[103].mxu0 }
0x2c36   :  { %v5290_v27 = vpop.eup %5289 }
0x2c37   :  { %v2412_v28 = vpack.c.bf16 %v5290_v27, %v5290_v27 }
0x2c39   :  { %4985 = vmatmul.mubr.msk.bf16.vlgmr.msra.gmra.mrb[100].mxu1 %vm372_vm7, %v2412_v28 }
0x2c3a   :  { %4995 = vmatpush3.bf16.msra.mxu1 %v5427_v1  ;;  %4996 = vmatprep.mubr.msk.bf16.mxu1 %vm5346_vm0, %v5345_v0 }
0x2c3b   :  { %5008 = vmatprep.subr.bf16.mxu1 %v5345_v0 }
0x2d0c   :  { %v2450_v29 = vpop.f32.mrb[100].mxu1 }
0x2d0d   :  { %v2451_v30 = vadd.f32 %v5775_v61, %v2450_v29  ;;  %v4986_v31 = vpop.f32.mrb[101].mxu1 }
0x2d0e   :  { %v2453_v32 = vpop.f32.mrb[102].mxu1 }
0x2d0f   :  { %v2460_v33 = vadd.f32 %v2459_v8, %v2451_v30  ;;  %v4987_v34 = vpop.f32.mrb[103].mxu1 }
0x2d11   :  { %v2461_v35 = vmul.f32 0.023809522, %v2460_v33 }
0x2d13   :  { %v5801_v36 = vadd.f32 %v2461_v35, %v5705_v55 }
0x2d15   :  { %v2463_v37 = vpack.c.bf16 %v5801_v36, %v5801_v36 }
0x2d17   :  { %v2465_v38 = vsel %vm94_vm3, %v2463_v37, 0 }
0x2d18   :  { %4989 = vmatpush3.bf16.msra.mxu0 %v2465_v38 }
0x2d19   :  { %5000 = vmatprep.subr.bf16.mxu0 %v5345_v0 }
0x2d1b   :  { %4991 = vmatmul.mubr.msk.bf16.vlgmr.msra.gmra.mrb[104].mxu0 %vm90_vm4, %v5399_v25 }
0x2d1c   :  { %5001 = vmatpush3.bf16.msra.mxu0 %v5434_v9  ;;  %5004 = vmatprep.mubr.msk.bf16.mxu0 %vm5346_vm0, %v5345_v0 }
0x2d1d   :  { %5002 = vmatprep.subr.bf16.mxu0 %v5345_v0 }
0x2d20   :  { %5003 = vmatpush3.bf16.msra.mxu0 %v5438_v12 }
0x2d21   :  { %5014 = vmatprep.subr.bf16.mxu0 %v5345_v0 }
0x2dee   :  { %v2501_v13 = vpop.f32.mrb[104].mxu0 }
0x2def   :  { %v2507_v39 = vpack.c.bf16 %v2501_v13, %v2501_v13  ;;  %v4992_v40 = vpop.f32.mrb[105].mxu0 }
0x2df0   :  { %v2504_v42 = vpop.f32.mrb[106].mxu0 }
0x2df1   :  { %v4993_v43 = vpop.f32.mrb[107].mxu0  ;;  %4997 = vmatmul.mubr.msk.bf16.vlgmr.msra.gmra.mrb[104].mxu1 %vm326_vm6, %v2507_v39 }
0x2df2   :  { %5010 = vmatprep.mubr.msk.bf16.mxu1 %vm5346_vm0, %v5345_v0 }
0x2ec4   :  { %v2545_v44 = vpop.f32.mrb[104].mxu1 }
0x2ec5   :  { %v2546_v21 = vadd.f32 %v5767_v50, %v2545_v44  ;;  %v4998_v45 = vpop.f32.mrb[105].mxu1 }
0x2ec6   :  { %v2548_v46 = vpop.f32.mrb[106].mxu1 }
0x2ec7   :  { %5291 = vtanh.f32 %v2546_v21  ;;  %v4999_v47 = vpop.f32.mrb[107].mxu1 }
0x2ed1   :  { %v5292_v48 = vpop.eup %5291 }
0x2ed2   :  { %v2552_v49 = vpack.c.bf16 %v5292_v48, %v5292_v48 }
0x2ed4   :  { %5005 = vmatmul.mubr.msk.bf16.vlgmr.msra.gmra.mrb[108].mxu0 %vm372_vm7, %v2552_v49 }
0x2ed5   :  { %5015 = vmatpush3.bf16.msra.mxu0 %v5427_v1  ;;  %5016 = vmatprep.mubr.msk.bf16.mxu0 %vm5346_vm0, %v5345_v0 }
0x2ed6   :  { %5028 = vmatprep.subr.bf16.mxu0 %v5345_v0 }
0x2fa7   :  { %v2590_v51 = vpop.f32.mrb[108].mxu0 }
0x2fa8   :  { %v5825_v52 = vadd.f32 %v5775_v61, %v2590_v51  ;;  %v5006_v53 = vpop.f32.mrb[109].mxu0 }
0x2fa9   :  { %v2593_v54 = vpop.f32.mrb[110].mxu0 }
0x2faa   :  { %v2596_v57 = vmul.f32 0.07142857, %v5825_v52  ;;  %v5007_v58 = vpop.f32.mrb[111].mxu0 }
0x2fac   :  { %v2597_v59 = vadd.f32 %v2596_v57, %v5801_v36 }
0x2fae   :  { %v2598_v60 = vpack.c.bf16 %v2597_v59, %v2597_v59 }
0x2fb0   :  { %v2600_v62 = vsel %vm94_vm3, %v2598_v60, 0 }
0x2fb1   :  { %5009 = vmatpush3.bf16.msra.mxu1 %v2600_v62 }
0x2fb2   :  { %5020 = vmatprep.subr.bf16.mxu1 %v5345_v0 }
0x2fb4   :  { %5011 = vmatmul.mubr.msk.bf16.vlgmr.msra.gmra.mrb[108].mxu1 %vm90_vm4, %v5399_v25 }
0x2fb5   :  { %5021 = vmatpush3.bf16.msra.mxu1 %v5434_v9  ;;  %5024 = vmatprep.mubr.msk.bf16.mxu1 %vm5346_vm0, %v5345_v0 }
0x2fb6   :  { %5022 = vmatprep.subr.bf16.mxu1 %v5345_v0 }
0x2fb9   :  { %5023 = vmatpush3.bf16.msra.mxu1 %v5438_v12 }
0x2fba   :  { %5034 = vmatprep.subr.bf16.mxu1 %v5345_v0 }
0x3087   :  { %v2636_v63 = vpop.f32.mrb[108].mxu1 }
0x3088   :  { %v2642_v2 = vpack.c.bf16 %v2636_v63, %v2636_v63  ;;  %v5012_v3 = vpop.f32.mrb[109].mxu1 }
0x3089   :  { %v2639_v4 = vpop.f32.mrb[110].mxu1 }
0x308a   :  { %v5013_v5 = vpop.f32.mrb[111].mxu1  ;;  %5017 = vmatmul.mubr.msk.bf16.vlgmr.msra.gmra.mrb[112].mxu0 %vm326_vm6, %v2642_v2 }
0x308b   :  { %5030 = vmatprep.mubr.msk.bf16.mxu0 %vm5346_vm0, %v5345_v0 }
0x315d   :  { %v2680_v6 = vpop.f32.mrb[112].mxu0 }
0x315e   :  { %v2681_v7 = vadd.f32 %v5767_v50, %v2680_v6  ;;  %v5018_v8 = vpop.f32.mrb[113].mxu0 }
0x315f   :  { %v2683_v10 = vpop.f32.mrb[114].mxu0 }
0x3160   :  { %5293 = vtanh.f32 %v2681_v7  ;;  %v5019_v14 = vpop.f32.mrb[115].mxu0 }
0x316a   :  { %v5294_v11 = vpop.eup %5293 }
0x316b   :  { %v2687_v15 = vpack.c.bf16 %v5294_v11, %v5294_v11 }
0x316d   :  { %5025 = vmatmul.mubr.msk.bf16.vlgmr.msra.gmra.mrb[112].mxu1 %vm372_vm7, %v2687_v15 }
0x316e   :  { %5035 = vmatpush3.bf16.msra.mxu1 %v5427_v1  ;;  %5036 = vmatprep.mubr.msk.bf16.mxu1 %vm5346_vm0, %v5345_v0 }
0x316f   :  { %5048 = vmatprep.subr.bf16.mxu1 %v5345_v0 }
0x3240   :  { %v2725_v16 = vpop.f32.mrb[112].mxu1 }
0x3241   :  { %v2726_v18 = vadd.f32 %v5775_v61, %v2725_v16  ;;  %v5026_v19 = vpop.f32.mrb[113].mxu1 }
0x3242   :  { %v2728_v20 = vpop.f32.mrb[114].mxu1 }
0x3243   :  { %v2731_v22 = vmul.f32 0.07142857, %v2726_v18  ;;  %v5027_v23 = vpop.f32.mrb[115].mxu1  ;;  %v3001_v40 = vmul.f32 2.0, %v2726_v18 }
0x3245   :  { %v2732_v24 = vadd.f32 %v2731_v22, %v5801_v36  ;;  %v3002_v45 = vadd.f32 %v3001_v40, %v5825_v52 }
0x3247   :  { %v2733_v26 = vpack.c.bf16 %v2732_v24, %v2732_v24 }
0x3249   :  { %v2735_v27 = vsel %vm94_vm3, %v2733_v26, 0 }
0x324a   :  { %5029 = vmatpush3.bf16.msra.mxu0 %v2735_v27 }
0x324b   :  { %5040 = vmatprep.subr.bf16.mxu0 %v5345_v0 }
0x324d   :  { %5031 = vmatmul.mubr.msk.bf16.vlgmr.msra.gmra.mrb[116].mxu0 %vm90_vm4, %v5399_v25 }
0x324e   :  { %5041 = vmatpush3.bf16.msra.mxu0 %v5434_v9  ;;  %5044 = vmatprep.mubr.msk.bf16.mxu0 %vm5346_vm0, %v5345_v0 }
0x324f   :  { %5042 = vmatprep.subr.bf16.mxu0 %v5345_v0 }
0x3252   :  { %5043 = vmatpush3.bf16.msra.mxu0 %v5438_v12 }
0x3253   :  { %5054 = vmatprep.subr.bf16.mxu0 %v5345_v0 }
0x3320   :  { %v2771_v28 = vpop.f32.mrb[116].mxu0 }
0x3321   :  { %v2777_v29 = vpack.c.bf16 %v2771_v28, %v2771_v28  ;;  %v5032_v30 = vpop.f32.mrb[117].mxu0 }
0x3322   :  { %v2774_v31 = vpop.f32.mrb[118].mxu0 }
0x3323   :  { %v5033_v32 = vpop.f32.mrb[119].mxu0  ;;  %5037 = vmatmul.mubr.msk.bf16.vlgmr.msra.gmra.mrb[116].mxu1 %vm326_vm6, %v2777_v29 }
0x3324   :  { %5050 = vmatprep.mubr.msk.bf16.mxu1 %vm5346_vm0, %v5345_v0 }
0x33f6   :  { %v2815_v33 = vpop.f32.mrb[116].mxu1 }
0x33f7   :  { %v2816_v34 = vadd.f32 %v5767_v50, %v2815_v33  ;;  %v5038_v35 = vpop.f32.mrb[117].mxu1 }
0x33f8   :  { %v2818_v37 = vpop.f32.mrb[118].mxu1 }
0x33f9   :  { %5295 = vtanh.f32 %v2816_v34  ;;  %v5039_v38 = vpop.f32.mrb[119].mxu1 }
0x3403   :  { %v5296_v13 = vpop.eup %5295 }
0x3404   :  { %v2822_v39 = vpack.c.bf16 %v5296_v13, %v5296_v13 }
0x3406   :  { %5045 = vmatmul.mubr.msk.bf16.vlgmr.msra.gmra.mrb[120].mxu0 %vm372_vm7, %v2822_v39 }
0x3407   :  { %5055 = vmatpush3.bf16.msra.mxu0 %v5427_v1  ;;  %5056 = vmatprep.mubr.msk.bf16.mxu0 %vm5346_vm0, %v5345_v0 }
0x3408   :  { %5068 = vmatprep.subr.bf16.mxu0 %v5345_v0 }
0x34d9   :  { %v2860_v42 = vpop.f32.mrb[120].mxu0 }
0x34da   :  { %v2861_v43 = vadd.f32 %v5775_v61, %v2860_v42  ;;  %v5046_v44 = vpop.f32.mrb[121].mxu0 }
0x34db   :  { %v2863_v21 = vpop.f32.mrb[122].mxu0 }
0x34dc   :  { %v2866_v46 = vmul.f32 0.14285713, %v2861_v43  ;;  %v3003_v47 = vmul.f32 2.0, %v2861_v43  ;;  %v5047_v48 = vpop.f32.mrb[123].mxu0 }
0x34de   :  { %v2867_v49 = vadd.f32 %v2866_v46, %v5801_v36  ;;  %v3004_v51 = vadd.f32 %v3003_v47, %v3002_v45 }
0x34e0   :  { %v2868_v53 = vpack.c.bf16 %v2867_v49, %v2867_v49 }
0x34e2   :  { %v2870_v54 = vsel %vm94_vm3, %v2868_v53, 0 }
0x34e3   :  { %5049 = vmatpush3.bf16.msra.mxu1 %v2870_v54 }
0x34e4   :  { %5060 = vmatprep.subr.bf16.mxu1 %v5345_v0 }
0x34e6   :  { %5051 = vmatmul.mubr.msk.bf16.vlgmr.msra.gmra.mrb[120].mxu1 %vm90_vm4, %v5399_v25 }
0x34e7   :  { %5061 = vmatpush3.bf16.msra.mxu1 %v5434_v9  ;;  %5064 = vmatprep.mubr.msk.bf16.mxu1 %vm5346_vm0, %v5345_v0 }
0x34e8   :  { %5062 = vmatprep.subr.bf16.mxu1 %v5345_v0 }
0x34eb   :  { %5063 = vmatpush3.bf16.msra.mxu1 %v5438_v12 }
0x34ec   :  { %5074 = vmatprep.subr.bf16.mxu1 %v5345_v0 }
0x35b9   :  { %v2906_v52 = vpop.f32.mrb[120].mxu1 }
0x35ba   :  { %v2912_v57 = vpack.c.bf16 %v2906_v52, %v2906_v52  ;;  %v5052_v58 = vpop.f32.mrb[121].mxu1 }
0x35bb   :  { %v2909_v59 = vpop.f32.mrb[122].mxu1 }
0x35bc   :  { %v5053_v60 = vpop.f32.mrb[123].mxu1  ;;  %5057 = vmatmul.mubr.msk.bf16.vlgmr.msra.gmra.mrb[124].mxu0 %vm326_vm6, %v2912_v57 }
0x35bd   :  { %5070 = vmatprep.mubr.msk.bf16.mxu0 %vm5346_vm0, %v5345_v0 }
0x368f   :  { %v2950_v62 = vpop.f32.mrb[124].mxu0 }
0x3690   :  { %v2951_v63 = vadd.f32 %v5767_v50, %v2950_v62  ;;  %v5058_v2 = vpop.f32.mrb[125].mxu0 }
0x3691   :  { %v2953_v3 = vpop.f32.mrb[126].mxu0 }
0x3692   :  { %5297 = vtanh.f32 %v2951_v63  ;;  %v5059_v4 = vpop.f32.mrb[127].mxu0 }
0x369c   :  { %v5298_v5 = vpop.eup %5297 }
0x369d   :  { %v2957_v6 = vpack.c.bf16 %v5298_v5, %v5298_v5 }
0x369f   :  { %5065 = vmatmul.mubr.msk.bf16.vlgmr.msra.gmra.mrb[124].mxu1 %vm372_vm7, %v2957_v6 }
0x36a0   :  { %5075 = vmatpush3.bf16.msra.mxu1 %v5427_v1  ;;  %5076 = vmatprep.mubr.msk.bf16.mxu1 %vm5346_vm0, %v5345_v0 }
0x36a1   :  { %5088 = vmatprep.subr.bf16.mxu1 %v5345_v0 }
0x3772   :  { %v2995_v7 = vpop.f32.mrb[124].mxu1 }
0x3773   :  { %v2996_v8 = vadd.f32 %v5775_v61, %v2995_v7  ;;  %v5066_v10 = vpop.f32.mrb[125].mxu1 }
0x3774   :  { %v2998_v14 = vpop.f32.mrb[126].mxu1 }
0x3775   :  { %v3005_v11 = vadd.f32 %v3004_v51, %v2996_v8  ;;  %v5067_v15 = vpop.f32.mrb[127].mxu1 }
0x3777   :  { %v3006_v16 = vmul.f32 0.023809522, %v3005_v11 }
0x3779   :  { %v5893_v18 = vadd.f32 %v3006_v16, %v5801_v36 }
0x377b   :  { %v3008_v19 = vpack.c.bf16 %v5893_v18, %v5893_v18 }
0x377d   :  { %v3010_v20 = vsel %vm94_vm3, %v3008_v19, 0 }
0x377e   :  { %5069 = vmatpush3.bf16.msra.mxu0 %v3010_v20 }
0x377f   :  { %5080 = vmatprep.subr.bf16.mxu0 %v5345_v0 }
0x3781   :  { %5071 = vmatmul.mubr.msk.bf16.vlgmr.msra.gmra.mrb[128].mxu0 %vm90_vm4, %v5399_v25 }
0x3782   :  { %5081 = vmatpush3.bf16.msra.mxu0 %v5434_v9  ;;  %5084 = vmatprep.mubr.msk.bf16.mxu0 %vm5346_vm0, %v5345_v0 }
0x3783   :  { %5082 = vmatprep.subr.bf16.mxu0 %v5345_v0 }
0x3786   :  { %5083 = vmatpush3.bf16.msra.mxu0 %v5438_v12 }
0x3787   :  { %5094 = vmatprep.subr.bf16.mxu0 %v5345_v0 }
0x3854   :  { %v3046_v22 = vpop.f32.mrb[128].mxu0 }
0x3855   :  { %v3052_v23 = vpack.c.bf16 %v3046_v22, %v3046_v22  ;;  %v5072_v24 = vpop.f32.mrb[129].mxu0 }
0x3856   :  { %v3049_v26 = vpop.f32.mrb[130].mxu0 }
0x3857   :  { %v5073_v27 = vpop.f32.mrb[131].mxu0  ;;  %5077 = vmatmul.mubr.msk.bf16.vlgmr.msra.gmra.mrb[128].mxu1 %vm326_vm6, %v3052_v23 }
0x3858   :  { %5090 = vmatprep.mubr.msk.bf16.mxu1 %vm5346_vm0, %v5345_v0 }
0x392a   :  { %v3090_v28 = vpop.f32.mrb[128].mxu1 }
0x392b   :  { %v3091_v29 = vadd.f32 %v5767_v50, %v3090_v28  ;;  %v5078_v30 = vpop.f32.mrb[129].mxu1 }
0x392c   :  { %v3093_v31 = vpop.f32.mrb[130].mxu1 }
0x392d   :  { %5299 = vtanh.f32 %v3091_v29  ;;  %v5079_v32 = vpop.f32.mrb[131].mxu1 }
0x3937   :  { %v5300_v33 = vpop.eup %5299 }
0x3938   :  { %v3097_v34 = vpack.c.bf16 %v5300_v33, %v5300_v33 }
0x393a   :  { %5085 = vmatmul.mubr.msk.bf16.vlgmr.msra.gmra.mrb[132].mxu0 %vm372_vm7, %v3097_v34 }
0x393b   :  { %5095 = vmatpush3.bf16.msra.mxu0 %v5427_v1  ;;  %5096 = vmatprep.mubr.msk.bf16.mxu0 %vm5346_vm0, %v5345_v0 }
0x393c   :  { %5108 = vmatprep.subr.bf16.mxu0 %v5345_v0 }
0x3a0d   :  { %v3135_v35 = vpop.f32.mrb[132].mxu0 }
0x3a0e   :  { %v5917_v37 = vadd.f32 %v5775_v61, %v3135_v35  ;;  %v5086_v38 = vpop.f32.mrb[133].mxu0 }
0x3a0f   :  { %v3138_v13 = vpop.f32.mrb[134].mxu0 }
0x3a10   :  { %v3141_v39 = vmul.f32 0.0714286, %v5917_v37  ;;  %v5087_v40 = vpop.f32.mrb[135].mxu0 }
0x3a12   :  { %v3142_v42 = vadd.f32 %v3141_v39, %v5893_v18 }
0x3a14   :  { %v3143_v43 = vpack.c.bf16 %v3142_v42, %v3142_v42 }
0x3a16   :  { %v3145_v44 = vsel %vm94_vm3, %v3143_v43, 0 }
0x3a17   :  { %5089 = vmatpush3.bf16.msra.mxu1 %v3145_v44 }
0x3a18   :  { %5100 = vmatprep.subr.bf16.mxu1 %v5345_v0 }
0x3a1a   :  { %5091 = vmatmul.mubr.msk.bf16.vlgmr.msra.gmra.mrb[132].mxu1 %vm90_vm4, %v5399_v25 }
0x3a1b   :  { %5101 = vmatpush3.bf16.msra.mxu1 %v5434_v9  ;;  %5104 = vmatprep.mubr.msk.bf16.mxu1 %vm5346_vm0, %v5345_v0 }
0x3a1c   :  { %5102 = vmatprep.subr.bf16.mxu1 %v5345_v0 }
0x3a1f   :  { %5103 = vmatpush3.bf16.msra.mxu1 %v5438_v12 }
0x3a20   :  { %5114 = vmatprep.subr.bf16.mxu1 %v5345_v0 }
0x3aed   :  { %v3181_v21 = vpop.f32.mrb[132].mxu1 }
0x3aee   :  { %v3187_v45 = vpack.c.bf16 %v3181_v21, %v3181_v21  ;;  %v5092_v46 = vpop.f32.mrb[133].mxu1 }
0x3aef   :  { %v3184_v47 = vpop.f32.mrb[134].mxu1 }
0x3af0   :  { %v5093_v48 = vpop.f32.mrb[135].mxu1  ;;  %5097 = vmatmul.mubr.msk.bf16.vlgmr.msra.gmra.mrb[136].mxu0 %vm326_vm6, %v3187_v45 }
0x3af1   :  { %5110 = vmatprep.mubr.msk.bf16.mxu0 %vm5346_vm0, %v5345_v0 }
0x3bc3   :  { %v3225_v49 = vpop.f32.mrb[136].mxu0 }
0x3bc4   :  { %v3226_v51 = vadd.f32 %v5767_v50, %v3225_v49  ;;  %v5098_v53 = vpop.f32.mrb[137].mxu0 }
0x3bc5   :  { %v3228_v54 = vpop.f32.mrb[138].mxu0 }
0x3bc6   :  { %5301 = vtanh.f32 %v3226_v51  ;;  %v5099_v52 = vpop.f32.mrb[139].mxu0 }
0x3bd0   :  { %v5302_v57 = vpop.eup %5301 }
0x3bd1   :  { %v3232_v58 = vpack.c.bf16 %v5302_v57, %v5302_v57 }
0x3bd3   :  { %5105 = vmatmul.mubr.msk.bf16.vlgmr.msra.gmra.mrb[136].mxu1 %vm372_vm7, %v3232_v58 }
0x3bd4   :  { %5115 = vmatpush3.bf16.msra.mxu1 %v5427_v1  ;;  %5116 = vmatprep.mubr.msk.bf16.mxu1 %vm5346_vm0, %v5345_v0 }
0x3bd5   :  { %5128 = vmatprep.subr.bf16.mxu1 %v5345_v0 }
0x3ca6   :  { %v3270_v59 = vpop.f32.mrb[136].mxu1 }
0x3ca7   :  { %v3271_v60 = vadd.f32 %v5775_v61, %v3270_v59  ;;  %v5106_v62 = vpop.f32.mrb[137].mxu1 }
0x3ca8   :  { %v3273_v63 = vpop.f32.mrb[138].mxu1 }
0x3ca9   :  { %v3276_v2 = vmul.f32 0.0714286, %v3271_v60  ;;  %v5107_v3 = vpop.f32.mrb[139].mxu1  ;;  %v3546_v26 = vmul.f32 2.0, %v3271_v60 }
0x3cab   :  { %v3277_v4 = vadd.f32 %v3276_v2, %v5893_v18  ;;  %v3547_v31 = vadd.f32 %v3546_v26, %v5917_v37 }
0x3cad   :  { %v3278_v5 = vpack.c.bf16 %v3277_v4, %v3277_v4 }
0x3caf   :  { %v3280_v6 = vsel %vm94_vm3, %v3278_v5, 0 }
0x3cb0   :  { %5109 = vmatpush3.bf16.msra.mxu0 %v3280_v6 }
0x3cb1   :  { %5120 = vmatprep.subr.bf16.mxu0 %v5345_v0 }
0x3cb3   :  { %5111 = vmatmul.mubr.msk.bf16.vlgmr.msra.gmra.mrb[140].mxu0 %vm90_vm4, %v5399_v25 }
0x3cb4   :  { %5121 = vmatpush3.bf16.msra.mxu0 %v5434_v9  ;;  %5124 = vmatprep.mubr.msk.bf16.mxu0 %vm5346_vm0, %v5345_v0 }
0x3cb5   :  { %5122 = vmatprep.subr.bf16.mxu0 %v5345_v0 }
0x3cb8   :  { %5123 = vmatpush3.bf16.msra.mxu0 %v5438_v12 }
0x3cb9   :  { %5134 = vmatprep.subr.bf16.mxu0 %v5345_v0 }
0x3d86   :  { %v3316_v7 = vpop.f32.mrb[140].mxu0 }
0x3d87   :  { %v3322_v8 = vpack.c.bf16 %v3316_v7, %v3316_v7  ;;  %v5112_v10 = vpop.f32.mrb[141].mxu0 }
0x3d88   :  { %v3319_v14 = vpop.f32.mrb[142].mxu0 }
0x3d89   :  { %v5113_v11 = vpop.f32.mrb[143].mxu0  ;;  %5117 = vmatmul.mubr.msk.bf16.vlgmr.msra.gmra.mrb[140].mxu1 %vm326_vm6, %v3322_v8 }
0x3d8a   :  { %5130 = vmatprep.mubr.msk.bf16.mxu1 %vm5346_vm0, %v5345_v0 }
0x3e5c   :  { %v3360_v15 = vpop.f32.mrb[140].mxu1 }
0x3e5d   :  { %v3361_v16 = vadd.f32 %v5767_v50, %v3360_v15  ;;  %v5118_v19 = vpop.f32.mrb[141].mxu1 }
0x3e5e   :  { %v3363_v20 = vpop.f32.mrb[142].mxu1 }
0x3e5f   :  { %5303 = vtanh.f32 %v3361_v16  ;;  %v5119_v22 = vpop.f32.mrb[143].mxu1 }
0x3e69   :  { %v5304_v23 = vpop.eup %5303 }
0x3e6a   :  { %v3367_v24 = vpack.c.bf16 %v5304_v23, %v5304_v23 }
0x3e6c   :  { %5125 = vmatmul.mubr.msk.bf16.vlgmr.msra.gmra.mrb[144].mxu0 %vm372_vm7, %v3367_v24 }
0x3e6d   :  { %5135 = vmatpush3.bf16.msra.mxu0 %v5427_v1  ;;  %5136 = vmatprep.mubr.msk.bf16.mxu0 %vm5346_vm0, %v5345_v0 }
0x3e6e   :  { %5148 = vmatprep.subr.bf16.mxu0 %v5345_v0 }
0x3f3f   :  { %v3405_v27 = vpop.f32.mrb[144].mxu0 }
0x3f40   :  { %v3406_v28 = vadd.f32 %v5775_v61, %v3405_v27  ;;  %v5126_v29 = vpop.f32.mrb[145].mxu0 }
0x3f41   :  { %v3408_v30 = vpop.f32.mrb[146].mxu0 }
0x3f42   :  { %v3411_v32 = vmul.f32 0.1428572, %v3406_v28  ;;  %v3548_v33 = vmul.f32 2.0, %v3406_v28  ;;  %v5127_v34 = vpop.f32.mrb[147].mxu0 }
0x3f44   :  { %v3412_v35 = vadd.f32 %v3411_v32, %v5893_v18  ;;  %v3549_v38 = vadd.f32 %v3548_v33, %v3547_v31 }
0x3f46   :  { %v3413_v13 = vpack.c.bf16 %v3412_v35, %v3412_v35 }
0x3f48   :  { %v3415_v39 = vsel %vm94_vm3, %v3413_v13, 0 }
0x3f49   :  { %5129 = vmatpush3.bf16.msra.mxu1 %v3415_v39 }
0x3f4a   :  { %5140 = vmatprep.subr.bf16.mxu1 %v5345_v0 }
0x3f4c   :  { %5131 = vmatmul.mubr.msk.bf16.vlgmr.msra.gmra.mrb[144].mxu1 %vm90_vm4, %v5399_v25 }
0x3f4d   :  { %5141 = vmatpush3.bf16.msra.mxu1 %v5434_v9  ;;  %5144 = vmatprep.mubr.msk.bf16.mxu1 %vm5346_vm0, %v5345_v0 }
0x3f4e   :  { %5142 = vmatprep.subr.bf16.mxu1 %v5345_v0 }
0x3f51   :  { %5143 = vmatpush3.bf16.msra.mxu1 %v5438_v12 }
0x3f52   :  { %5154 = vmatprep.subr.bf16.mxu1 %v5345_v0 }
0x401f   :  { %v3451_v37 = vpop.f32.mrb[144].mxu1 }
0x4020   :  { %v3457_v40 = vpack.c.bf16 %v3451_v37, %v3451_v37  ;;  %v5132_v42 = vpop.f32.mrb[145].mxu1 }
0x4021   :  { %v3454_v43 = vpop.f32.mrb[146].mxu1 }
0x4022   :  { %v5133_v44 = vpop.f32.mrb[147].mxu1  ;;  %5137 = vmatmul.mubr.msk.bf16.vlgmr.msra.gmra.mrb[148].mxu0 %vm326_vm6, %v3457_v40 }
0x4023   :  { %5150 = vmatprep.mubr.msk.bf16.mxu0 %vm5346_vm0, %v5345_v0 }
0x40f5   :  { %v3495_v21 = vpop.f32.mrb[148].mxu0 }
0x40f6   :  { %v3496_v45 = vadd.f32 %v5767_v50, %v3495_v21  ;;  %v5138_v46 = vpop.f32.mrb[149].mxu0 }
0x40f7   :  { %v3498_v47 = vpop.f32.mrb[150].mxu0 }
0x40f8   :  { %5305 = vtanh.f32 %v3496_v45  ;;  %v5139_v48 = vpop.f32.mrb[151].mxu0 }
0x4102   :  { %v5306_v49 = vpop.eup %5305 }
0x4103   :  { %v3502_v51 = vpack.c.bf16 %v5306_v49, %v5306_v49 }
0x4105   :  { %5145 = vmatmul.mubr.msk.bf16.vlgmr.msra.gmra.mrb[148].mxu1 %vm372_vm7, %v3502_v51 }
0x4106   :  { %5155 = vmatpush3.bf16.msra.mxu1 %v5427_v1  ;;  %5156 = vmatprep.mubr.msk.bf16.mxu1 %vm5346_vm0, %v5345_v0 }
0x4107   :  { %5168 = vmatprep.subr.bf16.mxu1 %v5345_v0 }
0x41d8   :  { %v3540_v53 = vpop.f32.mrb[148].mxu1 }
0x41d9   :  { %v3541_v54 = vadd.f32 %v5775_v61, %v3540_v53  ;;  %v5146_v52 = vpop.f32.mrb[149].mxu1 }
0x41da   :  { %v3543_v57 = vpop.f32.mrb[150].mxu1 }
0x41db   :  { %v3550_v58 = vadd.f32 %v3549_v38, %v3541_v54  ;;  %v5147_v59 = vpop.f32.mrb[151].mxu1 }
0x41dd   :  { %v3551_v60 = vmul.f32 0.023809532, %v3550_v58 }
0x41df   :  { %v5985_v62 = vadd.f32 %v3551_v60, %v5893_v18 }
0x41e1   :  { %v3553_v63 = vpack.c.bf16 %v5985_v62, %v5985_v62 }
0x41e3   :  { %v3555_v2 = vsel %vm94_vm3, %v3553_v63, 0 }
0x41e4   :  { %5149 = vmatpush3.bf16.msra.mxu0 %v3555_v2 }
0x41e5   :  { %5160 = vmatprep.subr.bf16.mxu0 %v5345_v0 }
0x41e7   :  { %5151 = vmatmul.mubr.msk.bf16.vlgmr.msra.gmra.mrb[152].mxu0 %vm90_vm4, %v5399_v25 }
0x41e8   :  { %5161 = vmatpush3.bf16.msra.mxu0 %v5434_v9  ;;  %5164 = vmatprep.mubr.msk.bf16.mxu0 %vm5346_vm0, %v5345_v0 }
0x41e9   :  { %5162 = vmatprep.subr.bf16.mxu0 %v5345_v0 }
0x41ec   :  { %5163 = vmatpush3.bf16.msra.mxu0 %v5438_v12 }
0x41ed   :  { %5174 = vmatprep.subr.bf16.mxu0 %v5345_v0 }
0x42ba   :  { %v3591_v3 = vpop.f32.mrb[152].mxu0 }
0x42bb   :  { %v3597_v4 = vpack.c.bf16 %v3591_v3, %v3591_v3  ;;  %v5152_v5 = vpop.f32.mrb[153].mxu0 }
0x42bc   :  { %v3594_v6 = vpop.f32.mrb[154].mxu0 }
0x42bd   :  { %v5153_v7 = vpop.f32.mrb[155].mxu0  ;;  %5157 = vmatmul.mubr.msk.bf16.vlgmr.msra.gmra.mrb[152].mxu1 %vm326_vm6, %v3597_v4 }
0x42be   :  { %5170 = vmatprep.mubr.msk.bf16.mxu1 %vm5346_vm0, %v5345_v0 }
0x4390   :  { %v3635_v8 = vpop.f32.mrb[152].mxu1 }
0x4391   :  { %v3636_v10 = vadd.f32 %v5767_v50, %v3635_v8  ;;  %v5158_v14 = vpop.f32.mrb[153].mxu1 }
0x4392   :  { %v3638_v11 = vpop.f32.mrb[154].mxu1 }
0x4393   :  { %5307 = vtanh.f32 %v3636_v10  ;;  %v5159_v15 = vpop.f32.mrb[155].mxu1 }
0x439d   :  { %v5308_v16 = vpop.eup %5307 }
0x439e   :  { %v3642_v19 = vpack.c.bf16 %v5308_v16, %v5308_v16 }
0x43a0   :  { %5165 = vmatmul.mubr.msk.bf16.vlgmr.msra.gmra.mrb[156].mxu0 %vm372_vm7, %v3642_v19 }
0x43a1   :  { %5175 = vmatpush3.bf16.msra.mxu0 %v5427_v1  ;;  %5176 = vmatprep.mubr.msk.bf16.mxu0 %vm5346_vm0, %v5345_v0 }
0x43a2   :  { %5188 = vmatprep.subr.bf16.mxu0 %v5345_v0 }
0x4473   :  { %v3680_v20 = vpop.f32.mrb[156].mxu0 }
0x4474   :  { %v6009_v22 = vadd.f32 %v5775_v61, %v3680_v20  ;;  %v5166_v23 = vpop.f32.mrb[157].mxu0 }
0x4475   :  { %v3683_v24 = vpop.f32.mrb[158].mxu0 }
0x4476   :  { %v3686_v26 = vmul.f32 0.07142854, %v6009_v22  ;;  %v5167_v27 = vpop.f32.mrb[159].mxu0 }
0x4478   :  { %v3687_v28 = vadd.f32 %v3686_v26, %v5985_v62 }
0x447a   :  { %v3688_v29 = vpack.c.bf16 %v3687_v28, %v3687_v28 }
0x447c   :  { %v3690_v30 = vsel %vm94_vm3, %v3688_v29, 0 }
0x447d   :  { %5169 = vmatpush3.bf16.msra.mxu1 %v3690_v30 }
0x447e   :  { %5180 = vmatprep.subr.bf16.mxu1 %v5345_v0 }
0x4480   :  { %5171 = vmatmul.mubr.msk.bf16.vlgmr.msra.gmra.mrb[156].mxu1 %vm90_vm4, %v5399_v25 }
0x4481   :  { %5181 = vmatpush3.bf16.msra.mxu1 %v5434_v9  ;;  %5184 = vmatprep.mubr.msk.bf16.mxu1 %vm5346_vm0, %v5345_v0 }
0x4482   :  { %5182 = vmatprep.subr.bf16.mxu1 %v5345_v0 }
0x4485   :  { %5183 = vmatpush3.bf16.msra.mxu1 %v5438_v12 }
0x4486   :  { %5194 = vmatprep.subr.bf16.mxu1 %v5345_v0 }
0x4553   :  { %v3726_v31 = vpop.f32.mrb[156].mxu1 }
0x4554   :  { %v3732_v32 = vpack.c.bf16 %v3726_v31, %v3726_v31  ;;  %v5172_v33 = vpop.f32.mrb[157].mxu1 }
0x4555   :  { %v3729_v34 = vpop.f32.mrb[158].mxu1  ;;  %v4205_v33 = vld [vmem:[#allocation2 + $0x100] sm:$0xff] }
0x4556   :  { %v5173_v35 = vpop.f32.mrb[159].mxu1  ;;  %5177 = vmatmul.mubr.msk.bf16.vlgmr.msra.gmra.mrb[160].mxu0 %vm326_vm6, %v3732_v32  ;;  %v4204_v32 = vld [vmem:[#allocation2 + $0xf8] sm:$0xff] }
0x4557   :  { %5190 = vmatprep.mubr.msk.bf16.mxu0 %vm5346_vm0, %v5345_v0  ;;  %v4212_v34 = vpack.c.bf16 %v4205_v33, %v4204_v32 }
0x4629   :  { %v3770_v38 = vpop.f32.mrb[160].mxu0 }
0x462a   :  { %v3771_v13 = vadd.f32 %v5767_v50, %v3770_v38  ;;  %v5178_v39 = vpop.f32.mrb[161].mxu0 }
0x462b   :  { %v3773_v37 = vpop.f32.mrb[162].mxu0  ;;  %v6077_v39 = vld [vmem:[#allocation2 + $0xf0] ss:$0 sm:$0xff] }
0x462c   :  { %5309 = vtanh.f32 %v3771_v13  ;;  %v5179_v40 = vpop.f32.mrb[163].mxu0 }
0x4636   :  { %v5310_v42 = vpop.eup %5309 }
0x4637   :  { %v3777_v43 = vpack.c.bf16 %v5310_v42, %v5310_v42 }
0x4639   :  { %5185 = vmatmul.mubr.msk.bf16.vlgmr.msra.gmra.mrb[160].mxu1 %vm372_vm7, %v3777_v43  ;;  %v4206_v43 = vld [vmem:[#allocation2 + $0x108] sm:$0xff] }
0x463a   :  { %5195 = vmatpush3.bf16.msra.mxu1 %v5427_v1  ;;  %5196 = vmatprep.mubr.msk.bf16.mxu1 %vm5346_vm0, %v5345_v0 }
0x463b   :  { %5208 = vmatprep.subr.bf16.mxu1 %v5345_v0 }
0x470c   :  { %v3815_v44 = vpop.f32.mrb[160].mxu1 }
0x470d   :  { %v3816_v21 = vadd.f32 %v5775_v61, %v3815_v44  ;;  %v5186_v45 = vpop.f32.mrb[161].mxu1  ;;  %v4207_v44 = vld [vmem:[#allocation2 + $0x110] sm:$0xff] }
0x470e   :  { %v3818_v46 = vpop.f32.mrb[162].mxu1 }
0x470f   :  { %v3821_v47 = vmul.f32 0.07142854, %v3816_v21  ;;  %v5187_v48 = vpop.f32.mrb[163].mxu1  ;;  %v4091_v7 = vmul.f32 2.0, %v3816_v21 }
0x4711   :  { %v3822_v49 = vadd.f32 %v3821_v47, %v5985_v62  ;;  %v4092_v15 = vadd.f32 %v4091_v7, %v6009_v22  ;;  %v4113_v22 = vld [vmem:[#allocation2 + $0xe8] sm:$0xff] }
0x4713   :  { %v3823_v51 = vpack.c.bf16 %v3822_v49, %v3822_v49 }
0x4715   :  { %v3825_v53 = vsel %vm94_vm3, %v3823_v51, 0  ;;  %v4213_v51 = vpack.c.bf16 %v4207_v44, %v4206_v43 }
0x4716   :  { %5189 = vmatpush3.bf16.msra.mxu0 %v3825_v53 }
0x4717   :  { %5200 = vmatprep.subr.bf16.mxu0 %v5345_v0 }
0x4719   :  { %5191 = vmatmul.mubr.msk.bf16.vlgmr.msra.gmra.mrb[164].mxu0 %vm90_vm4, %v5399_v25 }
0x471a   :  { %5201 = vmatpush3.bf16.msra.mxu0 %v5434_v9  ;;  %5204 = vmatprep.mubr.msk.bf16.mxu0 %vm5346_vm0, %v5345_v0 }
0x471b   :  { %5202 = vmatprep.subr.bf16.mxu0 %v5345_v0 }
0x471e   :  { %5203 = vmatpush3.bf16.msra.mxu0 %v5438_v12 }
0x471f   :  { %5214 = vmatprep.subr.bf16.mxu0 %v5345_v0 }
0x47ec   :  { %v3861_v54 = vpop.f32.mrb[164].mxu0 }
0x47ed   :  { %v3867_v52 = vpack.c.bf16 %v3861_v54, %v3861_v54  ;;  %v5192_v57 = vpop.f32.mrb[165].mxu0  ;;  %v4208_v54 = vld [vmem:[#allocation2 + $0x118] sm:$0xff] }
0x47ee   :  { %v3864_v58 = vpop.f32.mrb[166].mxu0 }
0x47ef   :  { %v5193_v59 = vpop.f32.mrb[167].mxu0  ;;  %5197 = vmatmul.mubr.msk.bf16.vlgmr.msra.gmra.mrb[164].mxu1 %vm326_vm6, %v3867_v52  ;;  %v4209_v52 = vld [vmem:[#allocation2 + $0x120] sm:$0xff] }
0x47f0   :  { %5210 = vmatprep.mubr.msk.bf16.mxu1 %vm5346_vm0, %v5345_v0  ;;  %v4214_v58 = vpack.c.bf16 %v4209_v52, %v4208_v54  ;;  %v4210_v59 = vld [vmem:[#allocation2 + $0x128] sm:$0xff] }
0x48c2   :  { %v3905_v60 = vpop.f32.mrb[164].mxu1 }
0x48c3   :  { %v3906_v63 = vadd.f32 %v5767_v50, %v3905_v60  ;;  %v5198_v2 = vpop.f32.mrb[165].mxu1  ;;  %v4211_v60 = vld [vmem:[#allocation2 + $0x130] sm:$0xff] }
0x48c4   :  { %v3908_v3 = vpop.f32.mrb[166].mxu1 }
0x48c5   :  { %5311 = vtanh.f32 %v3906_v63  ;;  %v5199_v4 = vpop.f32.mrb[167].mxu1  ;;  %v4215_v63 = vpack.c.bf16 %v4211_v60, %v4210_v59  ;;  %v5317_v3 = vld [vmem:[#allocation2 + $0xd8] ss:$0 sm:$0xff] }
0x48cf   :  { %v5312_v5 = vpop.eup %5311 }
0x48d0   :  { %v3912_v6 = vpack.c.bf16 %v5312_v5, %v5312_v5 }
0x48d2   :  { %5205 = vmatmul.mubr.msk.bf16.vlgmr.msra.gmra.mrb[168].mxu0 %vm372_vm7, %v3912_v6 }
0x48d3   :  { %5215 = vmatpush3.bf16.msra.mxu0 %v5427_v1  ;;  %5216 = vmatprep.mubr.msk.bf16.mxu0 %vm5346_vm0, %v5345_v0 }
0x49a5   :  { %v3950_v8 = vpop.f32.mrb[168].mxu0 }
0x49a6   :  { %v3951_v10 = vadd.f32 %v5775_v61, %v3950_v8  ;;  %v5206_v14 = vpop.f32.mrb[169].mxu0  ;;  %v4112_v61 = vld [vmem:[#allocation2 + $0xe0] sm:$0xff] }
0x49a7   :  { %v3953_v11 = vpop.f32.mrb[170].mxu0  ;;  %v4114_v27 = vpack.c.bf16 %v4113_v22, %v4112_v61 }
0x49a8   :  { %v3956_v16 = vmul.f32 0.14285707, %v3951_v10  ;;  %v4093_v19 = vmul.f32 2.0, %v3951_v10  ;;  %v5207_v20 = vpop.f32.mrb[171].mxu0 }
0x49a9   :  { %5228 = vmatprep.subr.bf16.mxu0 %v4114_v27 }
0x49aa   :  { %v3957_v23 = vadd.f32 %v3956_v16, %v5985_v62  ;;  %v6055_v24 = vadd.f32 %v4093_v19, %v4092_v15  ;;  %v4400_v15 = vld [vmem:[#allocation2 + $0x138] ss:$0 sm:$0xff] }
0x49ac   :  { %v3958_v26 = vpack.c.bf16 %v3957_v23, %v3957_v23 }
0x49ae   :  { %v3960_v1 = vsel %vm94_vm3, %v3958_v26, 0 }
0x49af   :  { %5209 = vmatpush3.bf16.msra.mxu1 %v3960_v1 }
0x49b0   :  { %5220 = vmatprep.subr.bf16.mxu1 %v5345_v0 }
0x49b2   :  { %5211 = vmatmul.mubr.msk.bf16.vlgmr.msra.gmra.mrb[168].mxu1 %vm90_vm4, %v5399_v25  ;;  %v4108_v25 = vpack.c.bf16 %v5521_v41, %v5417_v56 }
0x49b3   :  { %5221 = vmatpush3.bf16.msra.mxu1 %v5434_v9  ;;  %5224 = vmatprep.mubr.msk.bf16.mxu1 %vm5346_vm0, %v5345_v0 }
0x49b4   :  { %5222 = vmatprep.subr.bf16.mxu1 %v5345_v0  ;;  %v4109_v0 = vpack.c.bf16 %v5705_v55, %v5613_v17 }
0x49b7   :  { %5223 = vmatpush3.bf16.msra.mxu1 %v5438_v12  ;;  %v4110_v12 = vpack.c.bf16 %v5893_v18, %v5801_v36 }
0x49b8   :  { %5238 = vmatprep.subr.bf16.mxu1 %v4212_v34 }
0x4a85   :  { %v3996_v28 = vpop.f32.mrb[168].mxu1 }
0x4a86   :  { %v4002_v29 = vpack.c.bf16 %v3996_v28, %v3996_v28  ;;  %v5212_v30 = vpop.f32.mrb[169].mxu1 }
0x4a87   :  { %v3999_v31 = vpop.f32.mrb[170].mxu1 }
0x4a88   :  { %5217 = vmatmul.mubr.msk.bf16.vlgmr.msra.gmra.mrb[172].mxu0 %vm326_vm6, %v4002_v29  ;;  %v5213_v9 = vpop.f32.mrb[171].mxu1 }
0x4a89   :  { %5230 = vmatprep.mubr.msk.bf16.mxu0 %vm326_vm6, %v4108_v25  ;;  %5229 = vmatpush3.bf16.msra.mxu0 %v4114_v27 }
0x4a90   :  { %5231 = vmatmul.mubr.msk.bf16.vlgmr.msra.gmra.mrb[176].mxu0 %vm326_vm6, %v4109_v0 }
0x4a91   :  { %5234 = vmatprep.mubr.msk.bf16.mxu0 %vm326_vm6, %v4110_v12 }
0x4b5b   :  { %v4040_v56 = vpop.f32.mrb[172].mxu0 }
0x4b5c   :  { %v4041_v41 = vadd.f32 %v5767_v50, %v4040_v56  ;;  %v5218_v35 = vpop.f32.mrb[173].mxu0 }
0x4b5d   :  { %v4043_v38 = vpop.f32.mrb[174].mxu0 }
0x4b5e   :  { %5313 = vtanh.f32 %v4041_v41  ;;  %v5219_v13 = vpop.f32.mrb[175].mxu0 }
0x4b63   :  { %v5232_v17 = vpop.f32.mrb[176].mxu0 }
0x4b64   :  { %v4170_v55 = vadd.f32 %v5232_v17, %v6077_v39  ;;  %v4161_v36 = vpop.f32.mrb[177].mxu0 }
0x4b65   :  { %v4162_v18 = vadd.f32 %v6077_v39, %v4161_v36  ;;  %v5233_v37 = vpop.f32.mrb[178].mxu0 }
0x4b66   :  { %v4173_v40 = vadd.f32 %v5233_v37, %v6077_v39  ;;  %v4164_v42 = vpop.f32.mrb[179].mxu0  ;;  %v4194_v45 = vmax.f32 %v4170_v55, 0.0 }
0x4b67   :  { %v4165_v50 = vadd.f32 %v6077_v39, %v4164_v42  ;;  %v4192_v48 = vmax.f32 %v4162_v18, 0.0 }
0x4b68   :  { %v5314_v21 = vpop.eup %5313  ;;  %v4195_v46 = vmax.f32 %v4173_v40, 0.0 }
0x4b69   :  { %v4047_v47 = vpack.c.bf16 %v5314_v21, %v5314_v21  ;;  %v4193_v49 = vmax.f32 %v4165_v50, 0.0 }
0x4b6a   :  { %v4201_v53 = vpack.c.bf16 %v4195_v46, %v4194_v45 }
0x4b6b   :  { %v4200_v57 = vpack.c.bf16 %v4193_v49, %v4192_v48  ;;  %5225 = vmatmul.mubr.msk.bf16.vlgmr.msra.gmra.mrb[172].mxu1 %vm372_vm7, %v4047_v47 }
0x4b6c   :  { %5239 = vmatpush3.bf16.msra.mxu1 %v4212_v34 }
0x4b6d   :  { %5246 = vmatprep.mubr.msk.bf16.mxu1 %vm156_vm5, %v4200_v57  ;;  %5240 = vmatprep.subr.bf16.mxu1 %v4213_v51 }
0x4b70   :  { %5241 = vmatpush3.bf16.msra.mxu1 %v4213_v51 }
0x4b71   :  { %5242 = vmatprep.subr.bf16.mxu1 %v4214_v58 }
0x4b74   :  { %5243 = vmatpush3.bf16.msra.mxu1 %v4214_v58 }
0x4b75   :  { %5244 = vmatprep.subr.bf16.mxu1 %v4215_v63 }
0x4b78   :  { %5245 = vmatpush3.bf16.msra.mxu1 %v4215_v63 }
0x4b7b   :  { %5247 = vmatmul.mubr.msk.bf16.vlgmr.msra.gmra.mrb[176].mxu1 %vm156_vm5, %v4201_v53 }
0x4c3e   :  { %v4085_v2 = vpop.f32.mrb[172].mxu1 }
0x4c3f   :  { %v4086_v4 = vadd.f32 %v5317_v3, %v4085_v2  ;;  %v5226_v5 = vpop.f32.mrb[173].mxu1 }
0x4c40   :  { %v4088_v6 = vpop.f32.mrb[174].mxu1 }
0x4c41   :  { %v4095_v7 = vadd.f32 %v6055_v24, %v4086_v4  ;;  %v5227_v8 = vpop.f32.mrb[175].mxu1 }
0x4c43   :  { %v4096_v10 = vmul.f32 0.023809513, %v4095_v7 }
0x4c45   :  { %v4097_v14 = vadd.f32 %v4096_v10, %v5985_v62 }
0x4c47   :  { %v4111_v11 = vpack.c.bf16 %v4097_v14, %v5985_v62 }
0x4c49   :  { %5235 = vmatmul.mubr.msk.bf16.gmra.mrb[180].mxu0 %vm326_vm6, %v4111_v11 }
0x4c4e   :  { %v5248_v16 = vpop.f32.mrb[176].mxu1 }
0x4c4f   :  { %v4271_v19 = vadd.f32 %v5248_v16, %v4400_v15  ;;  %v4262_v20 = vpop.f32.mrb[177].mxu1 }
0x4c50   :  { %v4263_v23 = vadd.f32 %v4400_v15, %v4262_v20  ;;  %v5249_v26 = vpop.f32.mrb[178].mxu1 }
0x4c51   :  { %4295 = vst.msk [vmem:[%s6131_s3 + $0x10] sm:$0xff] %vm40_vm2, %v4271_v19  ;;  %v4274_v24 = vadd.f32 %v5249_v26, %v4400_v15  ;;  %v4265_v1 = vpop.f32.mrb[179].mxu1 }
0x4c52   :  { %4293 = vst.msk [vmem:[%s6131_s3] sm:$0xff] %vm40_vm2, %v4263_v23  ;;  %v4266_v62 = vadd.f32 %v4400_v15, %v4265_v1 }
0x4c53   :  { %4296 = vst.msk [vmem:[%s6131_s3 + $0x18] sm:$0xff] %vm40_vm2, %v4274_v24 }
0x4c54   :  { %4294 = vst.msk [vmem:[%s6131_s3 + $0x8] sm:$0xff] %vm40_vm2, %v4266_v62 }
0x4d1c   :  { %v5236_v61 = vpop.f32.mrb[180].mxu0 }
0x4d1d   :  { %v4186_v22 = vadd.f32 %v5236_v61, %v6077_v39  ;;  %v4177_v27 = vpop.f32.mrb[181].mxu0 }
0x4d1e   :  { %v4178_v28 = vadd.f32 %v6077_v39, %v4177_v27  ;;  %v5237_v29 = vpop.f32.mrb[182].mxu0 }
0x4d1f   :  { %v4189_v30 = vadd.f32 %v5237_v29, %v6077_v39  ;;  %v4180_v31 = vpop.f32.mrb[183].mxu0  ;;  %v4198_v9 = vmax.f32 %v4186_v22, 0.0 }
0x4d20   :  { %v4181_v25 = vadd.f32 %v6077_v39, %v4180_v31  ;;  %v4196_v12 = vmax.f32 %v4178_v28, 0.0 }
0x4d21   :  { %v4199_v0 = vmax.f32 %v4189_v30, 0.0 }
0x4d22   :  { %v4197_v32 = vmax.f32 %v4181_v25, 0.0 }
0x4d23   :  { %v4203_v33 = vpack.c.bf16 %v4199_v0, %v4198_v9 }
0x4d24   :  { %v4202_v34 = vpack.c.bf16 %v4197_v32, %v4196_v12 }
0x4d26   :  { %5250 = vmatprep.mubr.msk.bf16.mxu1 %vm156_vm5, %v4202_v34 }
0x4d27   :  { %5251 = vmatmul.mubr.msk.bf16.gmra.mrb[180].mxu1 %vm156_vm5, %v4203_v33 }
0x4dfa   :  { %v5252_v56 = vpop.f32.mrb[180].mxu1 }
0x4dfb   :  { %v4287_v41 = vadd.f32 %v5252_v56, %v4400_v15  ;;  %v4278_v35 = vpop.f32.mrb[181].mxu1 }
0x4dfc   :  { %v4279_v38 = vadd.f32 %v4400_v15, %v4278_v35  ;;  %v5253_v13 = vpop.f32.mrb[182].mxu1 }
0x4dfd   :  { %4299 = vst.msk [vmem:[%s6131_s3 + $0x30] sm:$0xff] %vm40_vm2, %v4287_v41  ;;  %v4290_v39 = vadd.f32 %v5253_v13, %v4400_v15  ;;  %v4281_v17 = vpop.f32.mrb[183].mxu1 }
0x4dfe   :  { %4297 = vst.msk [vmem:[%s6131_s3 + $0x20] sm:$0xff] %vm40_vm2, %v4279_v38  ;;  %v4282_v55 = vadd.f32 %v4400_v15, %v4281_v17 }
0x4dff   :  { %4300 = vst.msk [vmem:[%s6131_s3 + $0x38] sm:$0xff] %vm40_vm2, %v4290_v39 }
0x4e00   :  { %4298 = vst.msk [vmem:[%s6131_s3 + $0x28] sm:$0xff] %vm40_vm2, %v4282_v55 }
0x4e01   :  { %4305 = vsyncpa [#allocation3], 1 }

</bundles_post_ra>
